<compile_context>
chip_gen: v7x
topology: tpu7x:2x2x1
jax: 0.10.0
libtpu: 0.0.40
codegen_flags: <defaults>
</compile_context>

<pallas_src>
import functools

import jax
import jax.numpy as jnp
import numpy as np
from jax.experimental import pallas as pl
from jax.experimental.pallas import tpu as pltpu

EPS = 1e-5      # GlobalLayerNorm epsilon
LANE = 128      # TPU lane width


def _round_up(n, m):
    return ((n + m - 1) // m) * m


# -----------------------------------------------------------------------------
# Fused kernel: all TCN blocks for one batch element per grid step.
# -----------------------------------------------------------------------------
def _stacked_tcn_kernel(x_ref, v_ref,
                        w1_ref, b1_ref, wd_ref, bd_ref, w2_ref, b2_ref,
                        g1_ref, be1_ref, g2_ref, be2_ref,
                        alphas_ref,            # SMEM (n_blocks, 2) PReLU slopes
                        out_ref,
                        *, dilations, hidden, cpad):
    x = x_ref[0]                               # (T, Cpad) f32
    v = v_ref[0]                               # (1, Spad) f32
    T = x.shape[0]
    hpad = w1_ref.shape[2]
    # Row-index iota for depthwise-conv edge masking (built once, reused).
    row = jax.lax.broadcasted_iota(jnp.int32, (T, hpad), 0)
    # gLN statistics are over the REAL (unpadded) channels x time; padded
    # channels are exactly zero so they contribute nothing to the sums.
    inv_n = 1.0 / float(T * hidden)

    for i, d in enumerate(dilations):          # statically unrolled over blocks
        a1 = alphas_ref[i, 0]
        a2 = alphas_ref[i, 1]

        # ---- 1x1 conv (bf16 MXU, f32 accumulate) --------------------------
        w1 = w1_ref[i]                         # (Cpad + Spad, Hpad) bf16
        y = jnp.dot(x.astype(jnp.bfloat16), w1[:cpad],
                    preferred_element_type=jnp.float32)
        if i == 0:
            # FirstTCNBlock: speaker embedding concat == extra matmul term.
            y = y + jnp.dot(v.astype(jnp.bfloat16), w1[cpad:],
                            preferred_element_type=jnp.float32)
        y = y + b1_ref[i]

        # ---- PReLU + gLN (one-pass stats) ---------------------------------
        y = jnp.where(y > 0, y, a1 * y)
        mean = jnp.sum(y) * inv_n
        var = jnp.sum(y * y) * inv_n - mean * mean
        y = g1_ref[i] * (y - mean) * jax.lax.rsqrt(var + EPS) + be1_ref[i]

        # ---- depthwise dilated conv, k=3, padding=d ('same') ---------------
        # z[t] = wd0*y[t-d] + wd1*y[t] + wd2*y[t+d], zero-padded edges.
        # Implemented with XLU sublane rolls + iota masks (no concat/relayout).
        wd = wd_ref[i]                         # (3, Hpad) f32
        y_m = jnp.where(row >= d, pltpu.roll(y, shift=d, axis=0), 0.0)
        y_p = jnp.where(row < T - d, pltpu.roll(y, shift=T - d, axis=0), 0.0)
        z = y_m * wd[0:1] + y * wd[1:2] + y_p * wd[2:3] + bd_ref[i]

        # ---- PReLU + gLN (one-pass stats) ---------------------------------
        z = jnp.where(z > 0, z, a2 * z)
        mean2 = jnp.sum(z) * inv_n
        var2 = jnp.sum(z * z) * inv_n - mean2 * mean2
        z = g2_ref[i] * (z - mean2) * jax.lax.rsqrt(var2 + EPS) + be2_ref[i]

        # ---- 1x1 conv back to input channels + residual (f32) --------------
        out = jnp.dot(z.astype(jnp.bfloat16), w2_ref[i],
                      preferred_element_type=jnp.float32) + b2_ref[i]
        x = x + out

    out_ref[0] = x.astype(out_ref.dtype)


# -----------------------------------------------------------------------------
# Parameter packing: pad channel dims to lane multiples, stack across blocks.
# Zero padding is semantics-preserving: padded input channels are zero, padded
# gamma/beta are zero, so padded lanes stay exactly zero through every block.
# -----------------------------------------------------------------------------
_PACK_ORDER = ("w1", "b1", "wd", "bd", "w2", "b2", "g1", "be1", "g2", "be2")


def _pack_params(all_params, in_channels, spk_dim, hidden):
    cpad = _round_up(in_channels, LANE)
    spad = _round_up(spk_dim, LANE)
    hpad = _round_up(hidden, LANE)

    def pad2(a, rows, cols):
        return jnp.pad(a, ((0, rows - a.shape[0]), (0, cols - a.shape[1])))

    stacks = {k: [] for k in _PACK_ORDER}
    alphas = []
    for i, p in enumerate(all_params):
        w1 = jnp.zeros((cpad + spad, hpad), jnp.float32)
        w1 = w1.at[:in_channels, :hidden].set(p["w1"][:in_channels])
        if i == 0:  # speaker-embedding rows live at offset cpad
            w1 = w1.at[cpad:cpad + spk_dim, :hidden].set(p["w1"][in_channels:])
        stacks["w1"].append(w1)
        stacks["b1"].append(pad2(p["b1"], 1, hpad))
        stacks["wd"].append(pad2(p["wd"], 3, hpad))
        stacks["bd"].append(pad2(p["bd"], 1, hpad))
        stacks["w2"].append(pad2(p["w2"], hpad, cpad))
        stacks["b2"].append(pad2(p["b2"], 1, cpad))
        stacks["g1"].append(pad2(p["g1"], 1, hpad))
        stacks["be1"].append(pad2(p["be1"], 1, hpad))
        stacks["g2"].append(pad2(p["g2"], 1, hpad))
        stacks["be2"].append(pad2(p["be2"], 1, hpad))
        alphas.append(p["alphas"])

    packed = {k: jnp.stack(vs) for k, vs in stacks.items()}
    packed["w1"] = packed["w1"].astype(jnp.bfloat16)   # MXU operands in bf16
    packed["w2"] = packed["w2"].astype(jnp.bfloat16)
    packed["alphas"] = jnp.stack(alphas)
    return packed, cpad, spad, hpad


# -----------------------------------------------------------------------------
# Public forward: (B, C, T) PyTorch layout in, same layout out.
# -----------------------------------------------------------------------------
def stacked_tcns_forward(Y, v, all_params, n_blocks=4):
    B, Cin, T = Y.shape
    S = v.shape[1]
    H = all_params[0]["wd"].shape[1]

    packed, cpad, spad, hpad = _pack_params(all_params, Cin, S, H)

    # Boundary transpose + channel pad fuse into one XLA op; the kernel then
    # sees a lane-dense channels-last activation.
    x = jnp.transpose(Y, (0, 2, 1)).astype(jnp.float32)              # (B, T, Cin)
    x = jnp.pad(x, ((0, 0), (0, 0), (0, cpad - Cin)))                # (B, T, Cpad)
    vv = jnp.pad(v.astype(jnp.float32), ((0, 0), (0, spad - S)))[:, None, :]

    dilations = tuple(1 if i == 0 else 2 ** i for i in range(n_blocks))
    kernel = functools.partial(_stacked_tcn_kernel,
                               dilations=dilations, hidden=H, cpad=cpad)

    args = [x, vv]
    in_specs = [pl.BlockSpec((1, T, cpad), lambda b: (b, 0, 0)),
                pl.BlockSpec((1, 1, spad), lambda b: (b, 0, 0))]
    for name in _PACK_ORDER:                 # params resident (constant index_map)
        p = packed[name]
        args.append(p)
        in_specs.append(pl.BlockSpec(p.shape, lambda b, _n=p.ndim: (0,) * _n))
    args.append(packed["alphas"])            # PReLU slopes: scalar reads from SMEM
    in_specs.append(pl.BlockSpec(memory_space=pltpu.MemorySpace.SMEM))

    out = pl.pallas_call(
        kernel,
        out_shape=jax.ShapeDtypeStruct((B, T, cpad), jnp.float32),
        grid=(B,),
        in_specs=in_specs,
        out_specs=pl.BlockSpec((1, T, cpad), lambda b: (b, 0, 0)),
        compiler_params=pltpu.CompilerParams(
            dimension_semantics=("parallel",),          # megacore over batch
            vmem_limit_bytes=48 * 1024 * 1024),         # safe on v5e/v6e/v7x
    )(*args)

    return jnp.transpose(out[:, :, :Cin], (0, 2, 1))    # -> (B, Cin, T)


# -----------------------------------------------------------------------------
# Parameter init + independent pure-JAX reference (pad / concat formulation).
# -----------------------------------------------------------------------------
def init_params(key, in_channels, spk_dim, hidden, n_blocks):
    params = []
    for i in range(n_blocks):
        cin_eff = in_channels + (spk_dim if i == 0 else 0)
        key, *ks = jax.random.split(key, 7)
        params.append(dict(
            w1=0.1 * jax.random.normal(ks[0], (cin_eff, hidden), jnp.float32),
            b1=0.1 * jax.random.normal(ks[1], (1, hidden), jnp.float32),
            wd=0.1 * jax.random.normal(ks[2], (3, hidden), jnp.float32),
            bd=0.1 * jax.random.normal(ks[3], (1, hidden), jnp.float32),
            w2=0.1 * jax.random.normal(ks[4], (hidden, in_channels), jnp.float32),
            b2=0.1 * jax.random.normal(ks[5], (1, in_channels), jnp.float32),
            g1=jnp.ones((1, hidden), jnp.float32),
            be1=jnp.zeros((1, hidden), jnp.float32),
            g2=jnp.ones((1, hidden), jnp.float32),
            be2=jnp.zeros((1, hidden), jnp.float32),
            alphas=jnp.array([0.25, 0.25], jnp.float32),  # PReLU default slopes
        ))
    return params


def _ref_block(x, vb, p, d):
    """One TCN block, pure JAX, PyTorch-style formulation (pad + slice).
    Uses the same bf16 matmul operands as the kernel."""
    T = x.shape[0]
    if vb is None:
        inp = x
    else:
        inp = jnp.concatenate(
            [x, jnp.broadcast_to(vb[None, :], (T, vb.shape[0]))], axis=1)
    y = jnp.dot(inp.astype(jnp.bfloat16), p["w1"].astype(jnp.bfloat16),
                preferred_element_type=jnp.float32) + p["b1"]
    a1, a2 = p["alphas"][0], p["alphas"][1]
    y = jnp.where(y > 0, y, a1 * y)
    m = jnp.mean(y)
    var = jnp.mean(jnp.square(y - m))
    y = p["g1"] * (y - m) * jax.lax.rsqrt(var + EPS) + p["be1"]

    ypad = jnp.pad(y, ((d, d), (0, 0)))
    z = (ypad[0:T] * p["wd"][0] + ypad[d:d + T] * p["wd"][1]
         + ypad[2 * d:2 * d + T] * p["wd"][2]) + p["bd"]
    z = jnp.where(z > 0, z, a2 * z)
    m2 = jnp.mean(z)
    var2 = jnp.mean(jnp.square(z - m2))
    z = p["g2"] * (z - m2) * jax.lax.rsqrt(var2 + EPS) + p["be2"]

    out = jnp.dot(z.astype(jnp.bfloat16), p["w2"].astype(jnp.bfloat16),
                  preferred_element_type=jnp.float32) + p["b2"]
    return x + out


def reference_forward(Y, v, all_params, n_blocks=4):
    x = jnp.transpose(Y, (0, 2, 1)).astype(jnp.float32)
    for i in range(n_blocks):
        p = all_params[i]
        d = 1 if i == 0 else 2 ** i
        if i == 0:
            x = jax.vmap(lambda xb, vb: _ref_block(xb, vb, p, d))(
                x, v.astype(jnp.float32))
        else:
            x = jax.vmap(lambda xb: _ref_block(xb, None, p, d))(x)
    return jnp.transpose(x, (0, 2, 1))


if __name__ == "__main__":
    B, Cin, T = 4, 16, 64       # batch, in_channels, time
    S, H = 8, 32                # speaker_embedding_dim, TCN hidden channels
    n_blocks = 4

    key = jax.random.PRNGKey(0)
    k1, k2, k3 = jax.random.split(key, 3)
    Y = jax.random.normal(k1, (B, Cin, T), jnp.float32)   # (B, C, T) like PyTorch
    v = jax.random.normal(k2, (B, S), jnp.float32)        # speaker embedding
    params = init_params(k3, Cin, S, H, n_blocks)

    out = jax.block_until_ready(stacked_tcns_forward(Y, v, params, n_blocks))
    ref = jax.block_until_ready(reference_forward(Y, v, params, n_blocks))

    assert out.shape == (B, Cin, T)
    np.testing.assert_allclose(np.asarray(out), np.asarray(ref),
                               rtol=5e-3, atol=5e-3)
    print("KERNEL_OK")
</pallas_src>

<mosaic_0001>
module attributes {stable_mosaic.version = 11 : i64} {
  func.func @_stacked_tcn_kernel(%arg0: i32, %arg1: memref<1x64x128xf32, #tpu.memory_space<vmem>>, %arg2: memref<1x1x128xf32, #tpu.memory_space<vmem>>, %arg3: memref<4x256x128xbf16, #tpu.memory_space<vmem>>, %arg4: memref<4x1x128xf32, #tpu.memory_space<vmem>>, %arg5: memref<4x3x128xf32, #tpu.memory_space<vmem>>, %arg6: memref<4x1x128xf32, #tpu.memory_space<vmem>>, %arg7: memref<4x128x128xbf16, #tpu.memory_space<vmem>>, %arg8: memref<4x1x128xf32, #tpu.memory_space<vmem>>, %arg9: memref<4x1x128xf32, #tpu.memory_space<vmem>>, %arg10: memref<4x1x128xf32, #tpu.memory_space<vmem>>, %arg11: memref<4x1x128xf32, #tpu.memory_space<vmem>>, %arg12: memref<4x1x128xf32, #tpu.memory_space<vmem>>, %arg13: memref<4x2xf32, #tpu.memory_space<smem>>, %arg14: memref<1x64x128xf32, #tpu.memory_space<vmem>>) attributes {dimension_semantics = [#tpu.dimension_semantics<parallel>], iteration_bounds = array<i64: 4>, scalar_prefetch = 0 : i64, scratch_operands = 0 : i64, tpu.core_type = #tpu.core_type<tc>, window_params = [{transform_indices = @transform_0, window_bounds = array<i64: 1, 64, 128>}, {transform_indices = @transform_1, window_bounds = array<i64: 1, 1, 128>}, {pipeline_mode = #tpu.pipeline_mode<synchronous>, transform_indices = @transform_2, window_bounds = array<i64: 4, 256, 128>}, {pipeline_mode = #tpu.pipeline_mode<synchronous>, transform_indices = @transform_3, window_bounds = array<i64: 4, 1, 128>}, {pipeline_mode = #tpu.pipeline_mode<synchronous>, transform_indices = @transform_4, window_bounds = array<i64: 4, 3, 128>}, {pipeline_mode = #tpu.pipeline_mode<synchronous>, transform_indices = @transform_5, window_bounds = array<i64: 4, 1, 128>}, {pipeline_mode = #tpu.pipeline_mode<synchronous>, transform_indices = @transform_6, window_bounds = array<i64: 4, 128, 128>}, {pipeline_mode = #tpu.pipeline_mode<synchronous>, transform_indices = @transform_7, window_bounds = array<i64: 4, 1, 128>}, {pipeline_mode = #tpu.pipeline_mode<synchronous>, transform_indices = @transform_8, window_bounds = array<i64: 4, 1, 128>}, {pipeline_mode = #tpu.pipeline_mode<synchronous>, transform_indices = @transform_9, window_bounds = array<i64: 4, 1, 128>}, {pipeline_mode = #tpu.pipeline_mode<synchronous>, transform_indices = @transform_10, window_bounds = array<i64: 4, 1, 128>}, {pipeline_mode = #tpu.pipeline_mode<synchronous>, transform_indices = @transform_11, window_bounds = array<i64: 4, 1, 128>}, {transform_indices = @transform_12, window_bounds = array<i64: 4, 2>}, {transform_indices = @transform_13, window_bounds = array<i64: 1, 64, 128>}]} {
    %c0 = arith.constant 0 : index
    %c0_0 = arith.constant 0 : index
    %c0_1 = arith.constant 0 : index
    %0 = vector.load %arg1[%c0, %c0_0, %c0_1] : memref<1x64x128xf32, #tpu.memory_space<vmem>>, vector<1x64x128xf32>
    %1 = vector.shape_cast %0 : vector<1x64x128xf32> to vector<64x128xf32>
    %c0_2 = arith.constant 0 : index
    %c0_3 = arith.constant 0 : index
    %c0_4 = arith.constant 0 : index
    %2 = vector.load %arg2[%c0_2, %c0_3, %c0_4] : memref<1x1x128xf32, #tpu.memory_space<vmem>>, vector<1x1x128xf32>
    %3 = vector.shape_cast %2 : vector<1x1x128xf32> to vector<1x128xf32>
    %4 = tpu.iota {dimensions = array<i32: 0>} : vector<64x128xi32>
    %c0_5 = arith.constant 0 : index
    %c0_6 = arith.constant 0 : index
    %5 = memref.load %arg13[%c0_5, %c0_6] : memref<4x2xf32, #tpu.memory_space<smem>>
    %c0_7 = arith.constant 0 : index
    %c1 = arith.constant 1 : index
    %6 = memref.load %arg13[%c0_7, %c1] : memref<4x2xf32, #tpu.memory_space<smem>>
    %c0_8 = arith.constant 0 : index
    %c0_9 = arith.constant 0 : index
    %c0_10 = arith.constant 0 : index
    %7 = vector.load %arg3[%c0_8, %c0_9, %c0_10] : memref<4x256x128xbf16, #tpu.memory_space<vmem>>, vector<1x256x128xbf16>
    %8 = vector.shape_cast %7 : vector<1x256x128xbf16> to vector<256x128xbf16>
    %9 = arith.truncf %1 : vector<64x128xf32> to vector<64x128xbf16>
    %10 = vector.extract_strided_slice %8 {offsets = [0, 0], sizes = [128, 128], strides = [1, 1]} : vector<256x128xbf16> to vector<128x128xbf16>
    %cst = arith.constant dense<0.000000e+00> : vector<64x128xf32>
    %11 = tpu.matmul %9, %10, %cst {dimension_numbers = #tpu.dot_dimension_numbers<[1], [0], [0], [1], [0, 0, 1, 1], [], []>} : vector<64x128xbf16>, vector<128x128xbf16>, vector<64x128xf32> -> vector<64x128xf32>
    %12 = arith.truncf %3 : vector<1x128xf32> to vector<1x128xbf16>
    %13 = vector.extract_strided_slice %8 {offsets = [128, 0], sizes = [128, 128], strides = [1, 1]} : vector<256x128xbf16> to vector<128x128xbf16>
    %cst_11 = arith.constant dense<0.000000e+00> : vector<1x128xf32>
    %14 = tpu.matmul %12, %13, %cst_11 {dimension_numbers = #tpu.dot_dimension_numbers<[1], [0], [0], [1], [0, 0, 1, 1], [], []>} : vector<1x128xbf16>, vector<128x128xbf16>, vector<1x128xf32> -> vector<1x128xf32>
    %15 = vector.broadcast %14 : vector<1x128xf32> to vector<64x128xf32>
    %16 = arith.addf %11, %15 : vector<64x128xf32>
    %c0_12 = arith.constant 0 : index
    %c0_13 = arith.constant 0 : index
    %c0_14 = arith.constant 0 : index
    %17 = vector.load %arg4[%c0_12, %c0_13, %c0_14] : memref<4x1x128xf32, #tpu.memory_space<vmem>>, vector<1x1x128xf32>
    %18 = vector.shape_cast %17 : vector<1x1x128xf32> to vector<1x128xf32>
    %19 = vector.broadcast %18 : vector<1x128xf32> to vector<64x128xf32>
    %20 = arith.addf %16, %19 : vector<64x128xf32>
    %cst_15 = arith.constant 0.000000e+00 : f32
    %21 = vector.broadcast %cst_15 : f32 to vector<64x128xf32>
    %22 = arith.cmpf ogt, %20, %21 : vector<64x128xf32>
    %23 = vector.broadcast %5 : f32 to vector<64x128xf32>
    %24 = arith.mulf %23, %20 : vector<64x128xf32>
    %25 = arith.select %22, %20, %24 : vector<64x128xi1>, vector<64x128xf32>
    %26 = vector.shape_cast %25 : vector<64x128xf32> to vector<1x64x128xf32>
    %cst_16 = arith.constant dense<0.000000e+00> : vector<1xf32>
    %27 = vector.multi_reduction <add>, %26, %cst_16 [1, 2] : vector<1x64x128xf32> to vector<1xf32>
    %28 = vector.shape_cast %27 : vector<1xf32> to vector<1x1x1xf32>
    %29 = vector.extract %28[0, 0, 0] : f32 from vector<1x1x1xf32>
    %cst_17 = arith.constant 4.8828125E-4 : f32
    %30 = arith.mulf %29, %cst_17 : f32
    %31 = arith.mulf %25, %25 : vector<64x128xf32>
    %32 = vector.shape_cast %31 : vector<64x128xf32> to vector<1x64x128xf32>
    %cst_18 = arith.constant dense<0.000000e+00> : vector<1xf32>
    %33 = vector.multi_reduction <add>, %32, %cst_18 [1, 2] : vector<1x64x128xf32> to vector<1xf32>
    %34 = vector.shape_cast %33 : vector<1xf32> to vector<1x1x1xf32>
    %35 = vector.extract %34[0, 0, 0] : f32 from vector<1x1x1xf32>
    %cst_19 = arith.constant 4.8828125E-4 : f32
    %36 = arith.mulf %35, %cst_19 : f32
    %37 = arith.mulf %30, %30 : f32
    %38 = arith.subf %36, %37 : f32
    %c0_20 = arith.constant 0 : index
    %c0_21 = arith.constant 0 : index
    %c0_22 = arith.constant 0 : index
    %39 = vector.load %arg9[%c0_20, %c0_21, %c0_22] : memref<4x1x128xf32, #tpu.memory_space<vmem>>, vector<1x1x128xf32>
    %40 = vector.shape_cast %39 : vector<1x1x128xf32> to vector<1x128xf32>
    %41 = vector.broadcast %30 : f32 to vector<64x128xf32>
    %42 = arith.subf %25, %41 : vector<64x128xf32>
    %43 = vector.broadcast %40 : vector<1x128xf32> to vector<64x128xf32>
    %44 = arith.mulf %43, %42 : vector<64x128xf32>
    %cst_23 = arith.constant 9.99999974E-6 : f32
    %45 = arith.addf %38, %cst_23 : f32
    %46 = math.rsqrt %45 : f32
    %47 = vector.broadcast %46 : f32 to vector<64x128xf32>
    %48 = arith.mulf %44, %47 : vector<64x128xf32>
    %c0_24 = arith.constant 0 : index
    %c0_25 = arith.constant 0 : index
    %c0_26 = arith.constant 0 : index
    %49 = vector.load %arg10[%c0_24, %c0_25, %c0_26] : memref<4x1x128xf32, #tpu.memory_space<vmem>>, vector<1x1x128xf32>
    %50 = vector.shape_cast %49 : vector<1x1x128xf32> to vector<1x128xf32>
    %51 = vector.broadcast %50 : vector<1x128xf32> to vector<64x128xf32>
    %52 = arith.addf %48, %51 : vector<64x128xf32>
    %c0_27 = arith.constant 0 : index
    %c0_28 = arith.constant 0 : index
    %c0_29 = arith.constant 0 : index
    %53 = vector.load %arg5[%c0_27, %c0_28, %c0_29] : memref<4x3x128xf32, #tpu.memory_space<vmem>>, vector<1x3x128xf32>
    %54 = vector.shape_cast %53 : vector<1x3x128xf32> to vector<3x128xf32>
    %c1_i32 = arith.constant 1 : i32
    %55 = vector.broadcast %c1_i32 : i32 to vector<64x128xi32>
    %56 = arith.cmpi sge, %4, %55 : vector<64x128xi32>
    %c1_i32_30 = arith.constant 1 : i32
    %57 = tpu.dynamic_rotate %52 by %c1_i32_30 dim 0 : vector<64x128xf32>, i32 -> vector<64x128xf32>
    %cst_31 = arith.constant 0.000000e+00 : f32
    %58 = vector.broadcast %cst_31 : f32 to vector<64x128xf32>
    %59 = arith.select %56, %57, %58 : vector<64x128xi1>, vector<64x128xf32>
    %c63_i32 = arith.constant 63 : i32
    %60 = vector.broadcast %c63_i32 : i32 to vector<64x128xi32>
    %61 = arith.cmpi slt, %4, %60 : vector<64x128xi32>
    %c63_i32_32 = arith.constant 63 : i32
    %62 = tpu.dynamic_rotate %52 by %c63_i32_32 dim 0 : vector<64x128xf32>, i32 -> vector<64x128xf32>
    %cst_33 = arith.constant 0.000000e+00 : f32
    %63 = vector.broadcast %cst_33 : f32 to vector<64x128xf32>
    %64 = arith.select %61, %62, %63 : vector<64x128xi1>, vector<64x128xf32>
    %65 = vector.extract_strided_slice %54 {offsets = [0, 0], sizes = [1, 128], strides = [1, 1]} : vector<3x128xf32> to vector<1x128xf32>
    %66 = vector.broadcast %65 : vector<1x128xf32> to vector<64x128xf32>
    %67 = arith.mulf %59, %66 : vector<64x128xf32>
    %68 = vector.extract_strided_slice %54 {offsets = [1, 0], sizes = [1, 128], strides = [1, 1]} : vector<3x128xf32> to vector<1x128xf32>
    %69 = vector.broadcast %68 : vector<1x128xf32> to vector<64x128xf32>
    %70 = arith.mulf %52, %69 : vector<64x128xf32>
    %71 = arith.addf %67, %70 : vector<64x128xf32>
    %72 = vector.extract_strided_slice %54 {offsets = [2, 0], sizes = [1, 128], strides = [1, 1]} : vector<3x128xf32> to vector<1x128xf32>
    %73 = vector.broadcast %72 : vector<1x128xf32> to vector<64x128xf32>
    %74 = arith.mulf %64, %73 : vector<64x128xf32>
    %75 = arith.addf %71, %74 : vector<64x128xf32>
    %c0_34 = arith.constant 0 : index
    %c0_35 = arith.constant 0 : index
    %c0_36 = arith.constant 0 : index
    %76 = vector.load %arg6[%c0_34, %c0_35, %c0_36] : memref<4x1x128xf32, #tpu.memory_space<vmem>>, vector<1x1x128xf32>
    %77 = vector.shape_cast %76 : vector<1x1x128xf32> to vector<1x128xf32>
    %78 = vector.broadcast %77 : vector<1x128xf32> to vector<64x128xf32>
    %79 = arith.addf %75, %78 : vector<64x128xf32>
    %cst_37 = arith.constant 0.000000e+00 : f32
    %80 = vector.broadcast %cst_37 : f32 to vector<64x128xf32>
    %81 = arith.cmpf ogt, %79, %80 : vector<64x128xf32>
    %82 = vector.broadcast %6 : f32 to vector<64x128xf32>
    %83 = arith.mulf %82, %79 : vector<64x128xf32>
    %84 = arith.select %81, %79, %83 : vector<64x128xi1>, vector<64x128xf32>
    %85 = vector.shape_cast %84 : vector<64x128xf32> to vector<1x64x128xf32>
    %cst_38 = arith.constant dense<0.000000e+00> : vector<1xf32>
    %86 = vector.multi_reduction <add>, %85, %cst_38 [1, 2] : vector<1x64x128xf32> to vector<1xf32>
    %87 = vector.shape_cast %86 : vector<1xf32> to vector<1x1x1xf32>
    %88 = vector.extract %87[0, 0, 0] : f32 from vector<1x1x1xf32>
    %cst_39 = arith.constant 4.8828125E-4 : f32
    %89 = arith.mulf %88, %cst_39 : f32
    %90 = arith.mulf %84, %84 : vector<64x128xf32>
    %91 = vector.shape_cast %90 : vector<64x128xf32> to vector<1x64x128xf32>
    %cst_40 = arith.constant dense<0.000000e+00> : vector<1xf32>
    %92 = vector.multi_reduction <add>, %91, %cst_40 [1, 2] : vector<1x64x128xf32> to vector<1xf32>
    %93 = vector.shape_cast %92 : vector<1xf32> to vector<1x1x1xf32>
    %94 = vector.extract %93[0, 0, 0] : f32 from vector<1x1x1xf32>
    %cst_41 = arith.constant 4.8828125E-4 : f32
    %95 = arith.mulf %94, %cst_41 : f32
    %96 = arith.mulf %89, %89 : f32
    %97 = arith.subf %95, %96 : f32
    %c0_42 = arith.constant 0 : index
    %c0_43 = arith.constant 0 : index
    %c0_44 = arith.constant 0 : index
    %98 = vector.load %arg11[%c0_42, %c0_43, %c0_44] : memref<4x1x128xf32, #tpu.memory_space<vmem>>, vector<1x1x128xf32>
    %99 = vector.shape_cast %98 : vector<1x1x128xf32> to vector<1x128xf32>
    %100 = vector.broadcast %89 : f32 to vector<64x128xf32>
    %101 = arith.subf %84, %100 : vector<64x128xf32>
    %102 = vector.broadcast %99 : vector<1x128xf32> to vector<64x128xf32>
    %103 = arith.mulf %102, %101 : vector<64x128xf32>
    %cst_45 = arith.constant 9.99999974E-6 : f32
    %104 = arith.addf %97, %cst_45 : f32
    %105 = math.rsqrt %104 : f32
    %106 = vector.broadcast %105 : f32 to vector<64x128xf32>
    %107 = arith.mulf %103, %106 : vector<64x128xf32>
    %c0_46 = arith.constant 0 : index
    %c0_47 = arith.constant 0 : index
    %c0_48 = arith.constant 0 : index
    %108 = vector.load %arg12[%c0_46, %c0_47, %c0_48] : memref<4x1x128xf32, #tpu.memory_space<vmem>>, vector<1x1x128xf32>
    %109 = vector.shape_cast %108 : vector<1x1x128xf32> to vector<1x128xf32>
    %110 = vector.broadcast %109 : vector<1x128xf32> to vector<64x128xf32>
    %111 = arith.addf %107, %110 : vector<64x128xf32>
    %112 = arith.truncf %111 : vector<64x128xf32> to vector<64x128xbf16>
    %c0_49 = arith.constant 0 : index
    %c0_50 = arith.constant 0 : index
    %c0_51 = arith.constant 0 : index
    %113 = vector.load %arg7[%c0_49, %c0_50, %c0_51] : memref<4x128x128xbf16, #tpu.memory_space<vmem>>, vector<1x128x128xbf16>
    %114 = vector.shape_cast %113 : vector<1x128x128xbf16> to vector<128x128xbf16>
    %cst_52 = arith.constant dense<0.000000e+00> : vector<64x128xf32>
    %115 = tpu.matmul %112, %114, %cst_52 {dimension_numbers = #tpu.dot_dimension_numbers<[1], [0], [0], [1], [0, 0, 1, 1], [], []>} : vector<64x128xbf16>, vector<128x128xbf16>, vector<64x128xf32> -> vector<64x128xf32>
    %c0_53 = arith.constant 0 : index
    %c0_54 = arith.constant 0 : index
    %c0_55 = arith.constant 0 : index
    %116 = vector.load %arg8[%c0_53, %c0_54, %c0_55] : memref<4x1x128xf32, #tpu.memory_space<vmem>>, vector<1x1x128xf32>
    %117 = vector.shape_cast %116 : vector<1x1x128xf32> to vector<1x128xf32>
    %118 = vector.broadcast %117 : vector<1x128xf32> to vector<64x128xf32>
    %119 = arith.addf %115, %118 : vector<64x128xf32>
    %120 = arith.addf %1, %119 : vector<64x128xf32>
    %c1_56 = arith.constant 1 : index
    %c0_57 = arith.constant 0 : index
    %121 = memref.load %arg13[%c1_56, %c0_57] : memref<4x2xf32, #tpu.memory_space<smem>>
    %c1_58 = arith.constant 1 : index
    %c1_59 = arith.constant 1 : index
    %122 = memref.load %arg13[%c1_58, %c1_59] : memref<4x2xf32, #tpu.memory_space<smem>>
    %c1_60 = arith.constant 1 : index
    %c0_61 = arith.constant 0 : index
    %c0_62 = arith.constant 0 : index
    %123 = vector.load %arg3[%c1_60, %c0_61, %c0_62] : memref<4x256x128xbf16, #tpu.memory_space<vmem>>, vector<1x256x128xbf16>
    %124 = vector.shape_cast %123 : vector<1x256x128xbf16> to vector<256x128xbf16>
    %125 = arith.truncf %120 : vector<64x128xf32> to vector<64x128xbf16>
    %126 = vector.extract_strided_slice %124 {offsets = [0, 0], sizes = [128, 128], strides = [1, 1]} : vector<256x128xbf16> to vector<128x128xbf16>
    %cst_63 = arith.constant dense<0.000000e+00> : vector<64x128xf32>
    %127 = tpu.matmul %125, %126, %cst_63 {dimension_numbers = #tpu.dot_dimension_numbers<[1], [0], [0], [1], [0, 0, 1, 1], [], []>} : vector<64x128xbf16>, vector<128x128xbf16>, vector<64x128xf32> -> vector<64x128xf32>
    %c1_64 = arith.constant 1 : index
    %c0_65 = arith.constant 0 : index
    %c0_66 = arith.constant 0 : index
    %128 = vector.load %arg4[%c1_64, %c0_65, %c0_66] : memref<4x1x128xf32, #tpu.memory_space<vmem>>, vector<1x1x128xf32>
    %129 = vector.shape_cast %128 : vector<1x1x128xf32> to vector<1x128xf32>
    %130 = vector.broadcast %129 : vector<1x128xf32> to vector<64x128xf32>
    %131 = arith.addf %127, %130 : vector<64x128xf32>
    %cst_67 = arith.constant 0.000000e+00 : f32
    %132 = vector.broadcast %cst_67 : f32 to vector<64x128xf32>
    %133 = arith.cmpf ogt, %131, %132 : vector<64x128xf32>
    %134 = vector.broadcast %121 : f32 to vector<64x128xf32>
    %135 = arith.mulf %134, %131 : vector<64x128xf32>
    %136 = arith.select %133, %131, %135 : vector<64x128xi1>, vector<64x128xf32>
    %137 = vector.shape_cast %136 : vector<64x128xf32> to vector<1x64x128xf32>
    %cst_68 = arith.constant dense<0.000000e+00> : vector<1xf32>
    %138 = vector.multi_reduction <add>, %137, %cst_68 [1, 2] : vector<1x64x128xf32> to vector<1xf32>
    %139 = vector.shape_cast %138 : vector<1xf32> to vector<1x1x1xf32>
    %140 = vector.extract %139[0, 0, 0] : f32 from vector<1x1x1xf32>
    %cst_69 = arith.constant 4.8828125E-4 : f32
    %141 = arith.mulf %140, %cst_69 : f32
    %142 = arith.mulf %136, %136 : vector<64x128xf32>
    %143 = vector.shape_cast %142 : vector<64x128xf32> to vector<1x64x128xf32>
    %cst_70 = arith.constant dense<0.000000e+00> : vector<1xf32>
    %144 = vector.multi_reduction <add>, %143, %cst_70 [1, 2] : vector<1x64x128xf32> to vector<1xf32>
    %145 = vector.shape_cast %144 : vector<1xf32> to vector<1x1x1xf32>
    %146 = vector.extract %145[0, 0, 0] : f32 from vector<1x1x1xf32>
    %cst_71 = arith.constant 4.8828125E-4 : f32
    %147 = arith.mulf %146, %cst_71 : f32
    %148 = arith.mulf %141, %141 : f32
    %149 = arith.subf %147, %148 : f32
    %c1_72 = arith.constant 1 : index
    %c0_73 = arith.constant 0 : index
    %c0_74 = arith.constant 0 : index
    %150 = vector.load %arg9[%c1_72, %c0_73, %c0_74] : memref<4x1x128xf32, #tpu.memory_space<vmem>>, vector<1x1x128xf32>
    %151 = vector.shape_cast %150 : vector<1x1x128xf32> to vector<1x128xf32>
    %152 = vector.broadcast %141 : f32 to vector<64x128xf32>
    %153 = arith.subf %136, %152 : vector<64x128xf32>
    %154 = vector.broadcast %151 : vector<1x128xf32> to vector<64x128xf32>
    %155 = arith.mulf %154, %153 : vector<64x128xf32>
    %cst_75 = arith.constant 9.99999974E-6 : f32
    %156 = arith.addf %149, %cst_75 : f32
    %157 = math.rsqrt %156 : f32
    %158 = vector.broadcast %157 : f32 to vector<64x128xf32>
    %159 = arith.mulf %155, %158 : vector<64x128xf32>
    %c1_76 = arith.constant 1 : index
    %c0_77 = arith.constant 0 : index
    %c0_78 = arith.constant 0 : index
    %160 = vector.load %arg10[%c1_76, %c0_77, %c0_78] : memref<4x1x128xf32, #tpu.memory_space<vmem>>, vector<1x1x128xf32>
    %161 = vector.shape_cast %160 : vector<1x1x128xf32> to vector<1x128xf32>
    %162 = vector.broadcast %161 : vector<1x128xf32> to vector<64x128xf32>
    %163 = arith.addf %159, %162 : vector<64x128xf32>
    %c1_79 = arith.constant 1 : index
    %c0_80 = arith.constant 0 : index
    %c0_81 = arith.constant 0 : index
    %164 = vector.load %arg5[%c1_79, %c0_80, %c0_81] : memref<4x3x128xf32, #tpu.memory_space<vmem>>, vector<1x3x128xf32>
    %165 = vector.shape_cast %164 : vector<1x3x128xf32> to vector<3x128xf32>
    %c2_i32 = arith.constant 2 : i32
    %166 = vector.broadcast %c2_i32 : i32 to vector<64x128xi32>
    %167 = arith.cmpi sge, %4, %166 : vector<64x128xi32>
    %c2_i32_82 = arith.constant 2 : i32
    %168 = tpu.dynamic_rotate %163 by %c2_i32_82 dim 0 : vector<64x128xf32>, i32 -> vector<64x128xf32>
    %cst_83 = arith.constant 0.000000e+00 : f32
    %169 = vector.broadcast %cst_83 : f32 to vector<64x128xf32>
    %170 = arith.select %167, %168, %169 : vector<64x128xi1>, vector<64x128xf32>
    %c62_i32 = arith.constant 62 : i32
    %171 = vector.broadcast %c62_i32 : i32 to vector<64x128xi32>
    %172 = arith.cmpi slt, %4, %171 : vector<64x128xi32>
    %c62_i32_84 = arith.constant 62 : i32
    %173 = tpu.dynamic_rotate %163 by %c62_i32_84 dim 0 : vector<64x128xf32>, i32 -> vector<64x128xf32>
    %cst_85 = arith.constant 0.000000e+00 : f32
    %174 = vector.broadcast %cst_85 : f32 to vector<64x128xf32>
    %175 = arith.select %172, %173, %174 : vector<64x128xi1>, vector<64x128xf32>
    %176 = vector.extract_strided_slice %165 {offsets = [0, 0], sizes = [1, 128], strides = [1, 1]} : vector<3x128xf32> to vector<1x128xf32>
    %177 = vector.broadcast %176 : vector<1x128xf32> to vector<64x128xf32>
    %178 = arith.mulf %170, %177 : vector<64x128xf32>
    %179 = vector.extract_strided_slice %165 {offsets = [1, 0], sizes = [1, 128], strides = [1, 1]} : vector<3x128xf32> to vector<1x128xf32>
    %180 = vector.broadcast %179 : vector<1x128xf32> to vector<64x128xf32>
    %181 = arith.mulf %163, %180 : vector<64x128xf32>
    %182 = arith.addf %178, %181 : vector<64x128xf32>
    %183 = vector.extract_strided_slice %165 {offsets = [2, 0], sizes = [1, 128], strides = [1, 1]} : vector<3x128xf32> to vector<1x128xf32>
    %184 = vector.broadcast %183 : vector<1x128xf32> to vector<64x128xf32>
    %185 = arith.mulf %175, %184 : vector<64x128xf32>
    %186 = arith.addf %182, %185 : vector<64x128xf32>
    %c1_86 = arith.constant 1 : index
    %c0_87 = arith.constant 0 : index
    %c0_88 = arith.constant 0 : index
    %187 = vector.load %arg6[%c1_86, %c0_87, %c0_88] : memref<4x1x128xf32, #tpu.memory_space<vmem>>, vector<1x1x128xf32>
    %188 = vector.shape_cast %187 : vector<1x1x128xf32> to vector<1x128xf32>
    %189 = vector.broadcast %188 : vector<1x128xf32> to vector<64x128xf32>
    %190 = arith.addf %186, %189 : vector<64x128xf32>
    %cst_89 = arith.constant 0.000000e+00 : f32
    %191 = vector.broadcast %cst_89 : f32 to vector<64x128xf32>
    %192 = arith.cmpf ogt, %190, %191 : vector<64x128xf32>
    %193 = vector.broadcast %122 : f32 to vector<64x128xf32>
    %194 = arith.mulf %193, %190 : vector<64x128xf32>
    %195 = arith.select %192, %190, %194 : vector<64x128xi1>, vector<64x128xf32>
    %196 = vector.shape_cast %195 : vector<64x128xf32> to vector<1x64x128xf32>
    %cst_90 = arith.constant dense<0.000000e+00> : vector<1xf32>
    %197 = vector.multi_reduction <add>, %196, %cst_90 [1, 2] : vector<1x64x128xf32> to vector<1xf32>
    %198 = vector.shape_cast %197 : vector<1xf32> to vector<1x1x1xf32>
    %199 = vector.extract %198[0, 0, 0] : f32 from vector<1x1x1xf32>
    %cst_91 = arith.constant 4.8828125E-4 : f32
    %200 = arith.mulf %199, %cst_91 : f32
    %201 = arith.mulf %195, %195 : vector<64x128xf32>
    %202 = vector.shape_cast %201 : vector<64x128xf32> to vector<1x64x128xf32>
    %cst_92 = arith.constant dense<0.000000e+00> : vector<1xf32>
    %203 = vector.multi_reduction <add>, %202, %cst_92 [1, 2] : vector<1x64x128xf32> to vector<1xf32>
    %204 = vector.shape_cast %203 : vector<1xf32> to vector<1x1x1xf32>
    %205 = vector.extract %204[0, 0, 0] : f32 from vector<1x1x1xf32>
    %cst_93 = arith.constant 4.8828125E-4 : f32
    %206 = arith.mulf %205, %cst_93 : f32
    %207 = arith.mulf %200, %200 : f32
    %208 = arith.subf %206, %207 : f32
    %c1_94 = arith.constant 1 : index
    %c0_95 = arith.constant 0 : index
    %c0_96 = arith.constant 0 : index
    %209 = vector.load %arg11[%c1_94, %c0_95, %c0_96] : memref<4x1x128xf32, #tpu.memory_space<vmem>>, vector<1x1x128xf32>
    %210 = vector.shape_cast %209 : vector<1x1x128xf32> to vector<1x128xf32>
    %211 = vector.broadcast %200 : f32 to vector<64x128xf32>
    %212 = arith.subf %195, %211 : vector<64x128xf32>
    %213 = vector.broadcast %210 : vector<1x128xf32> to vector<64x128xf32>
    %214 = arith.mulf %213, %212 : vector<64x128xf32>
    %cst_97 = arith.constant 9.99999974E-6 : f32
    %215 = arith.addf %208, %cst_97 : f32
    %216 = math.rsqrt %215 : f32
    %217 = vector.broadcast %216 : f32 to vector<64x128xf32>
    %218 = arith.mulf %214, %217 : vector<64x128xf32>
    %c1_98 = arith.constant 1 : index
    %c0_99 = arith.constant 0 : index
    %c0_100 = arith.constant 0 : index
    %219 = vector.load %arg12[%c1_98, %c0_99, %c0_100] : memref<4x1x128xf32, #tpu.memory_space<vmem>>, vector<1x1x128xf32>
    %220 = vector.shape_cast %219 : vector<1x1x128xf32> to vector<1x128xf32>
    %221 = vector.broadcast %220 : vector<1x128xf32> to vector<64x128xf32>
    %222 = arith.addf %218, %221 : vector<64x128xf32>
    %223 = arith.truncf %222 : vector<64x128xf32> to vector<64x128xbf16>
    %c1_101 = arith.constant 1 : index
    %c0_102 = arith.constant 0 : index
    %c0_103 = arith.constant 0 : index
    %224 = vector.load %arg7[%c1_101, %c0_102, %c0_103] : memref<4x128x128xbf16, #tpu.memory_space<vmem>>, vector<1x128x128xbf16>
    %225 = vector.shape_cast %224 : vector<1x128x128xbf16> to vector<128x128xbf16>
    %cst_104 = arith.constant dense<0.000000e+00> : vector<64x128xf32>
    %226 = tpu.matmul %223, %225, %cst_104 {dimension_numbers = #tpu.dot_dimension_numbers<[1], [0], [0], [1], [0, 0, 1, 1], [], []>} : vector<64x128xbf16>, vector<128x128xbf16>, vector<64x128xf32> -> vector<64x128xf32>
    %c1_105 = arith.constant 1 : index
    %c0_106 = arith.constant 0 : index
    %c0_107 = arith.constant 0 : index
    %227 = vector.load %arg8[%c1_105, %c0_106, %c0_107] : memref<4x1x128xf32, #tpu.memory_space<vmem>>, vector<1x1x128xf32>
    %228 = vector.shape_cast %227 : vector<1x1x128xf32> to vector<1x128xf32>
    %229 = vector.broadcast %228 : vector<1x128xf32> to vector<64x128xf32>
    %230 = arith.addf %226, %229 : vector<64x128xf32>
    %231 = arith.addf %120, %230 : vector<64x128xf32>
    %c2 = arith.constant 2 : index
    %c0_108 = arith.constant 0 : index
    %232 = memref.load %arg13[%c2, %c0_108] : memref<4x2xf32, #tpu.memory_space<smem>>
    %c2_109 = arith.constant 2 : index
    %c1_110 = arith.constant 1 : index
    %233 = memref.load %arg13[%c2_109, %c1_110] : memref<4x2xf32, #tpu.memory_space<smem>>
    %c2_111 = arith.constant 2 : index
    %c0_112 = arith.constant 0 : index
    %c0_113 = arith.constant 0 : index
    %234 = vector.load %arg3[%c2_111, %c0_112, %c0_113] : memref<4x256x128xbf16, #tpu.memory_space<vmem>>, vector<1x256x128xbf16>
    %235 = vector.shape_cast %234 : vector<1x256x128xbf16> to vector<256x128xbf16>
    %236 = arith.truncf %231 : vector<64x128xf32> to vector<64x128xbf16>
    %237 = vector.extract_strided_slice %235 {offsets = [0, 0], sizes = [128, 128], strides = [1, 1]} : vector<256x128xbf16> to vector<128x128xbf16>
    %cst_114 = arith.constant dense<0.000000e+00> : vector<64x128xf32>
    %238 = tpu.matmul %236, %237, %cst_114 {dimension_numbers = #tpu.dot_dimension_numbers<[1], [0], [0], [1], [0, 0, 1, 1], [], []>} : vector<64x128xbf16>, vector<128x128xbf16>, vector<64x128xf32> -> vector<64x128xf32>
    %c2_115 = arith.constant 2 : index
    %c0_116 = arith.constant 0 : index
    %c0_117 = arith.constant 0 : index
    %239 = vector.load %arg4[%c2_115, %c0_116, %c0_117] : memref<4x1x128xf32, #tpu.memory_space<vmem>>, vector<1x1x128xf32>
    %240 = vector.shape_cast %239 : vector<1x1x128xf32> to vector<1x128xf32>
    %241 = vector.broadcast %240 : vector<1x128xf32> to vector<64x128xf32>
    %242 = arith.addf %238, %241 : vector<64x128xf32>
    %cst_118 = arith.constant 0.000000e+00 : f32
    %243 = vector.broadcast %cst_118 : f32 to vector<64x128xf32>
    %244 = arith.cmpf ogt, %242, %243 : vector<64x128xf32>
    %245 = vector.broadcast %232 : f32 to vector<64x128xf32>
    %246 = arith.mulf %245, %242 : vector<64x128xf32>
    %247 = arith.select %244, %242, %246 : vector<64x128xi1>, vector<64x128xf32>
    %248 = vector.shape_cast %247 : vector<64x128xf32> to vector<1x64x128xf32>
    %cst_119 = arith.constant dense<0.000000e+00> : vector<1xf32>
    %249 = vector.multi_reduction <add>, %248, %cst_119 [1, 2] : vector<1x64x128xf32> to vector<1xf32>
    %250 = vector.shape_cast %249 : vector<1xf32> to vector<1x1x1xf32>
    %251 = vector.extract %250[0, 0, 0] : f32 from vector<1x1x1xf32>
    %cst_120 = arith.constant 4.8828125E-4 : f32
    %252 = arith.mulf %251, %cst_120 : f32
    %253 = arith.mulf %247, %247 : vector<64x128xf32>
    %254 = vector.shape_cast %253 : vector<64x128xf32> to vector<1x64x128xf32>
    %cst_121 = arith.constant dense<0.000000e+00> : vector<1xf32>
    %255 = vector.multi_reduction <add>, %254, %cst_121 [1, 2] : vector<1x64x128xf32> to vector<1xf32>
    %256 = vector.shape_cast %255 : vector<1xf32> to vector<1x1x1xf32>
    %257 = vector.extract %256[0, 0, 0] : f32 from vector<1x1x1xf32>
    %cst_122 = arith.constant 4.8828125E-4 : f32
    %258 = arith.mulf %257, %cst_122 : f32
    %259 = arith.mulf %252, %252 : f32
    %260 = arith.subf %258, %259 : f32
    %c2_123 = arith.constant 2 : index
    %c0_124 = arith.constant 0 : index
    %c0_125 = arith.constant 0 : index
    %261 = vector.load %arg9[%c2_123, %c0_124, %c0_125] : memref<4x1x128xf32, #tpu.memory_space<vmem>>, vector<1x1x128xf32>
    %262 = vector.shape_cast %261 : vector<1x1x128xf32> to vector<1x128xf32>
    %263 = vector.broadcast %252 : f32 to vector<64x128xf32>
    %264 = arith.subf %247, %263 : vector<64x128xf32>
    %265 = vector.broadcast %262 : vector<1x128xf32> to vector<64x128xf32>
    %266 = arith.mulf %265, %264 : vector<64x128xf32>
    %cst_126 = arith.constant 9.99999974E-6 : f32
    %267 = arith.addf %260, %cst_126 : f32
    %268 = math.rsqrt %267 : f32
    %269 = vector.broadcast %268 : f32 to vector<64x128xf32>
    %270 = arith.mulf %266, %269 : vector<64x128xf32>
    %c2_127 = arith.constant 2 : index
    %c0_128 = arith.constant 0 : index
    %c0_129 = arith.constant 0 : index
    %271 = vector.load %arg10[%c2_127, %c0_128, %c0_129] : memref<4x1x128xf32, #tpu.memory_space<vmem>>, vector<1x1x128xf32>
    %272 = vector.shape_cast %271 : vector<1x1x128xf32> to vector<1x128xf32>
    %273 = vector.broadcast %272 : vector<1x128xf32> to vector<64x128xf32>
    %274 = arith.addf %270, %273 : vector<64x128xf32>
    %c2_130 = arith.constant 2 : index
    %c0_131 = arith.constant 0 : index
    %c0_132 = arith.constant 0 : index
    %275 = vector.load %arg5[%c2_130, %c0_131, %c0_132] : memref<4x3x128xf32, #tpu.memory_space<vmem>>, vector<1x3x128xf32>
    %276 = vector.shape_cast %275 : vector<1x3x128xf32> to vector<3x128xf32>
    %c4_i32 = arith.constant 4 : i32
    %277 = vector.broadcast %c4_i32 : i32 to vector<64x128xi32>
    %278 = arith.cmpi sge, %4, %277 : vector<64x128xi32>
    %c4_i32_133 = arith.constant 4 : i32
    %279 = tpu.dynamic_rotate %274 by %c4_i32_133 dim 0 : vector<64x128xf32>, i32 -> vector<64x128xf32>
    %cst_134 = arith.constant 0.000000e+00 : f32
    %280 = vector.broadcast %cst_134 : f32 to vector<64x128xf32>
    %281 = arith.select %278, %279, %280 : vector<64x128xi1>, vector<64x128xf32>
    %c60_i32 = arith.constant 60 : i32
    %282 = vector.broadcast %c60_i32 : i32 to vector<64x128xi32>
    %283 = arith.cmpi slt, %4, %282 : vector<64x128xi32>
    %c60_i32_135 = arith.constant 60 : i32
    %284 = tpu.dynamic_rotate %274 by %c60_i32_135 dim 0 : vector<64x128xf32>, i32 -> vector<64x128xf32>
    %cst_136 = arith.constant 0.000000e+00 : f32
    %285 = vector.broadcast %cst_136 : f32 to vector<64x128xf32>
    %286 = arith.select %283, %284, %285 : vector<64x128xi1>, vector<64x128xf32>
    %287 = vector.extract_strided_slice %276 {offsets = [0, 0], sizes = [1, 128], strides = [1, 1]} : vector<3x128xf32> to vector<1x128xf32>
    %288 = vector.broadcast %287 : vector<1x128xf32> to vector<64x128xf32>
    %289 = arith.mulf %281, %288 : vector<64x128xf32>
    %290 = vector.extract_strided_slice %276 {offsets = [1, 0], sizes = [1, 128], strides = [1, 1]} : vector<3x128xf32> to vector<1x128xf32>
    %291 = vector.broadcast %290 : vector<1x128xf32> to vector<64x128xf32>
    %292 = arith.mulf %274, %291 : vector<64x128xf32>
    %293 = arith.addf %289, %292 : vector<64x128xf32>
    %294 = vector.extract_strided_slice %276 {offsets = [2, 0], sizes = [1, 128], strides = [1, 1]} : vector<3x128xf32> to vector<1x128xf32>
    %295 = vector.broadcast %294 : vector<1x128xf32> to vector<64x128xf32>
    %296 = arith.mulf %286, %295 : vector<64x128xf32>
    %297 = arith.addf %293, %296 : vector<64x128xf32>
    %c2_137 = arith.constant 2 : index
    %c0_138 = arith.constant 0 : index
    %c0_139 = arith.constant 0 : index
    %298 = vector.load %arg6[%c2_137, %c0_138, %c0_139] : memref<4x1x128xf32, #tpu.memory_space<vmem>>, vector<1x1x128xf32>
    %299 = vector.shape_cast %298 : vector<1x1x128xf32> to vector<1x128xf32>
    %300 = vector.broadcast %299 : vector<1x128xf32> to vector<64x128xf32>
    %301 = arith.addf %297, %300 : vector<64x128xf32>
    %cst_140 = arith.constant 0.000000e+00 : f32
    %302 = vector.broadcast %cst_140 : f32 to vector<64x128xf32>
    %303 = arith.cmpf ogt, %301, %302 : vector<64x128xf32>
    %304 = vector.broadcast %233 : f32 to vector<64x128xf32>
    %305 = arith.mulf %304, %301 : vector<64x128xf32>
    %306 = arith.select %303, %301, %305 : vector<64x128xi1>, vector<64x128xf32>
    %307 = vector.shape_cast %306 : vector<64x128xf32> to vector<1x64x128xf32>
    %cst_141 = arith.constant dense<0.000000e+00> : vector<1xf32>
    %308 = vector.multi_reduction <add>, %307, %cst_141 [1, 2] : vector<1x64x128xf32> to vector<1xf32>
    %309 = vector.shape_cast %308 : vector<1xf32> to vector<1x1x1xf32>
    %310 = vector.extract %309[0, 0, 0] : f32 from vector<1x1x1xf32>
    %cst_142 = arith.constant 4.8828125E-4 : f32
    %311 = arith.mulf %310, %cst_142 : f32
    %312 = arith.mulf %306, %306 : vector<64x128xf32>
    %313 = vector.shape_cast %312 : vector<64x128xf32> to vector<1x64x128xf32>
    %cst_143 = arith.constant dense<0.000000e+00> : vector<1xf32>
    %314 = vector.multi_reduction <add>, %313, %cst_143 [1, 2] : vector<1x64x128xf32> to vector<1xf32>
    %315 = vector.shape_cast %314 : vector<1xf32> to vector<1x1x1xf32>
    %316 = vector.extract %315[0, 0, 0] : f32 from vector<1x1x1xf32>
    %cst_144 = arith.constant 4.8828125E-4 : f32
    %317 = arith.mulf %316, %cst_144 : f32
    %318 = arith.mulf %311, %311 : f32
    %319 = arith.subf %317, %318 : f32
    %c2_145 = arith.constant 2 : index
    %c0_146 = arith.constant 0 : index
    %c0_147 = arith.constant 0 : index
    %320 = vector.load %arg11[%c2_145, %c0_146, %c0_147] : memref<4x1x128xf32, #tpu.memory_space<vmem>>, vector<1x1x128xf32>
    %321 = vector.shape_cast %320 : vector<1x1x128xf32> to vector<1x128xf32>
    %322 = vector.broadcast %311 : f32 to vector<64x128xf32>
    %323 = arith.subf %306, %322 : vector<64x128xf32>
    %324 = vector.broadcast %321 : vector<1x128xf32> to vector<64x128xf32>
    %325 = arith.mulf %324, %323 : vector<64x128xf32>
    %cst_148 = arith.constant 9.99999974E-6 : f32
    %326 = arith.addf %319, %cst_148 : f32
    %327 = math.rsqrt %326 : f32
    %328 = vector.broadcast %327 : f32 to vector<64x128xf32>
    %329 = arith.mulf %325, %328 : vector<64x128xf32>
    %c2_149 = arith.constant 2 : index
    %c0_150 = arith.constant 0 : index
    %c0_151 = arith.constant 0 : index
    %330 = vector.load %arg12[%c2_149, %c0_150, %c0_151] : memref<4x1x128xf32, #tpu.memory_space<vmem>>, vector<1x1x128xf32>
    %331 = vector.shape_cast %330 : vector<1x1x128xf32> to vector<1x128xf32>
    %332 = vector.broadcast %331 : vector<1x128xf32> to vector<64x128xf32>
    %333 = arith.addf %329, %332 : vector<64x128xf32>
    %334 = arith.truncf %333 : vector<64x128xf32> to vector<64x128xbf16>
    %c2_152 = arith.constant 2 : index
    %c0_153 = arith.constant 0 : index
    %c0_154 = arith.constant 0 : index
    %335 = vector.load %arg7[%c2_152, %c0_153, %c0_154] : memref<4x128x128xbf16, #tpu.memory_space<vmem>>, vector<1x128x128xbf16>
    %336 = vector.shape_cast %335 : vector<1x128x128xbf16> to vector<128x128xbf16>
    %cst_155 = arith.constant dense<0.000000e+00> : vector<64x128xf32>
    %337 = tpu.matmul %334, %336, %cst_155 {dimension_numbers = #tpu.dot_dimension_numbers<[1], [0], [0], [1], [0, 0, 1, 1], [], []>} : vector<64x128xbf16>, vector<128x128xbf16>, vector<64x128xf32> -> vector<64x128xf32>
    %c2_156 = arith.constant 2 : index
    %c0_157 = arith.constant 0 : index
    %c0_158 = arith.constant 0 : index
    %338 = vector.load %arg8[%c2_156, %c0_157, %c0_158] : memref<4x1x128xf32, #tpu.memory_space<vmem>>, vector<1x1x128xf32>
    %339 = vector.shape_cast %338 : vector<1x1x128xf32> to vector<1x128xf32>
    %340 = vector.broadcast %339 : vector<1x128xf32> to vector<64x128xf32>
    %341 = arith.addf %337, %340 : vector<64x128xf32>
    %342 = arith.addf %231, %341 : vector<64x128xf32>
    %c3 = arith.constant 3 : index
    %c0_159 = arith.constant 0 : index
    %343 = memref.load %arg13[%c3, %c0_159] : memref<4x2xf32, #tpu.memory_space<smem>>
    %c3_160 = arith.constant 3 : index
    %c1_161 = arith.constant 1 : index
    %344 = memref.load %arg13[%c3_160, %c1_161] : memref<4x2xf32, #tpu.memory_space<smem>>
    %c3_162 = arith.constant 3 : index
    %c0_163 = arith.constant 0 : index
    %c0_164 = arith.constant 0 : index
    %345 = vector.load %arg3[%c3_162, %c0_163, %c0_164] : memref<4x256x128xbf16, #tpu.memory_space<vmem>>, vector<1x256x128xbf16>
    %346 = vector.shape_cast %345 : vector<1x256x128xbf16> to vector<256x128xbf16>
    %347 = arith.truncf %342 : vector<64x128xf32> to vector<64x128xbf16>
    %348 = vector.extract_strided_slice %346 {offsets = [0, 0], sizes = [128, 128], strides = [1, 1]} : vector<256x128xbf16> to vector<128x128xbf16>
    %cst_165 = arith.constant dense<0.000000e+00> : vector<64x128xf32>
    %349 = tpu.matmul %347, %348, %cst_165 {dimension_numbers = #tpu.dot_dimension_numbers<[1], [0], [0], [1], [0, 0, 1, 1], [], []>} : vector<64x128xbf16>, vector<128x128xbf16>, vector<64x128xf32> -> vector<64x128xf32>
    %c3_166 = arith.constant 3 : index
    %c0_167 = arith.constant 0 : index
    %c0_168 = arith.constant 0 : index
    %350 = vector.load %arg4[%c3_166, %c0_167, %c0_168] : memref<4x1x128xf32, #tpu.memory_space<vmem>>, vector<1x1x128xf32>
    %351 = vector.shape_cast %350 : vector<1x1x128xf32> to vector<1x128xf32>
    %352 = vector.broadcast %351 : vector<1x128xf32> to vector<64x128xf32>
    %353 = arith.addf %349, %352 : vector<64x128xf32>
    %cst_169 = arith.constant 0.000000e+00 : f32
    %354 = vector.broadcast %cst_169 : f32 to vector<64x128xf32>
    %355 = arith.cmpf ogt, %353, %354 : vector<64x128xf32>
    %356 = vector.broadcast %343 : f32 to vector<64x128xf32>
    %357 = arith.mulf %356, %353 : vector<64x128xf32>
    %358 = arith.select %355, %353, %357 : vector<64x128xi1>, vector<64x128xf32>
    %359 = vector.shape_cast %358 : vector<64x128xf32> to vector<1x64x128xf32>
    %cst_170 = arith.constant dense<0.000000e+00> : vector<1xf32>
    %360 = vector.multi_reduction <add>, %359, %cst_170 [1, 2] : vector<1x64x128xf32> to vector<1xf32>
    %361 = vector.shape_cast %360 : vector<1xf32> to vector<1x1x1xf32>
    %362 = vector.extract %361[0, 0, 0] : f32 from vector<1x1x1xf32>
    %cst_171 = arith.constant 4.8828125E-4 : f32
    %363 = arith.mulf %362, %cst_171 : f32
    %364 = arith.mulf %358, %358 : vector<64x128xf32>
    %365 = vector.shape_cast %364 : vector<64x128xf32> to vector<1x64x128xf32>
    %cst_172 = arith.constant dense<0.000000e+00> : vector<1xf32>
    %366 = vector.multi_reduction <add>, %365, %cst_172 [1, 2] : vector<1x64x128xf32> to vector<1xf32>
    %367 = vector.shape_cast %366 : vector<1xf32> to vector<1x1x1xf32>
    %368 = vector.extract %367[0, 0, 0] : f32 from vector<1x1x1xf32>
    %cst_173 = arith.constant 4.8828125E-4 : f32
    %369 = arith.mulf %368, %cst_173 : f32
    %370 = arith.mulf %363, %363 : f32
    %371 = arith.subf %369, %370 : f32
    %c3_174 = arith.constant 3 : index
    %c0_175 = arith.constant 0 : index
    %c0_176 = arith.constant 0 : index
    %372 = vector.load %arg9[%c3_174, %c0_175, %c0_176] : memref<4x1x128xf32, #tpu.memory_space<vmem>>, vector<1x1x128xf32>
    %373 = vector.shape_cast %372 : vector<1x1x128xf32> to vector<1x128xf32>
    %374 = vector.broadcast %363 : f32 to vector<64x128xf32>
    %375 = arith.subf %358, %374 : vector<64x128xf32>
    %376 = vector.broadcast %373 : vector<1x128xf32> to vector<64x128xf32>
    %377 = arith.mulf %376, %375 : vector<64x128xf32>
    %cst_177 = arith.constant 9.99999974E-6 : f32
    %378 = arith.addf %371, %cst_177 : f32
    %379 = math.rsqrt %378 : f32
    %380 = vector.broadcast %379 : f32 to vector<64x128xf32>
    %381 = arith.mulf %377, %380 : vector<64x128xf32>
    %c3_178 = arith.constant 3 : index
    %c0_179 = arith.constant 0 : index
    %c0_180 = arith.constant 0 : index
    %382 = vector.load %arg10[%c3_178, %c0_179, %c0_180] : memref<4x1x128xf32, #tpu.memory_space<vmem>>, vector<1x1x128xf32>
    %383 = vector.shape_cast %382 : vector<1x1x128xf32> to vector<1x128xf32>
    %384 = vector.broadcast %383 : vector<1x128xf32> to vector<64x128xf32>
    %385 = arith.addf %381, %384 : vector<64x128xf32>
    %c3_181 = arith.constant 3 : index
    %c0_182 = arith.constant 0 : index
    %c0_183 = arith.constant 0 : index
    %386 = vector.load %arg5[%c3_181, %c0_182, %c0_183] : memref<4x3x128xf32, #tpu.memory_space<vmem>>, vector<1x3x128xf32>
    %387 = vector.shape_cast %386 : vector<1x3x128xf32> to vector<3x128xf32>
    %c8_i32 = arith.constant 8 : i32
    %388 = vector.broadcast %c8_i32 : i32 to vector<64x128xi32>
    %389 = arith.cmpi sge, %4, %388 : vector<64x128xi32>
    %c8_i32_184 = arith.constant 8 : i32
    %390 = tpu.dynamic_rotate %385 by %c8_i32_184 dim 0 : vector<64x128xf32>, i32 -> vector<64x128xf32>
    %cst_185 = arith.constant 0.000000e+00 : f32
    %391 = vector.broadcast %cst_185 : f32 to vector<64x128xf32>
    %392 = arith.select %389, %390, %391 : vector<64x128xi1>, vector<64x128xf32>
    %c56_i32 = arith.constant 56 : i32
    %393 = vector.broadcast %c56_i32 : i32 to vector<64x128xi32>
    %394 = arith.cmpi slt, %4, %393 : vector<64x128xi32>
    %c56_i32_186 = arith.constant 56 : i32
    %395 = tpu.dynamic_rotate %385 by %c56_i32_186 dim 0 : vector<64x128xf32>, i32 -> vector<64x128xf32>
    %cst_187 = arith.constant 0.000000e+00 : f32
    %396 = vector.broadcast %cst_187 : f32 to vector<64x128xf32>
    %397 = arith.select %394, %395, %396 : vector<64x128xi1>, vector<64x128xf32>
    %398 = vector.extract_strided_slice %387 {offsets = [0, 0], sizes = [1, 128], strides = [1, 1]} : vector<3x128xf32> to vector<1x128xf32>
    %399 = vector.broadcast %398 : vector<1x128xf32> to vector<64x128xf32>
    %400 = arith.mulf %392, %399 : vector<64x128xf32>
    %401 = vector.extract_strided_slice %387 {offsets = [1, 0], sizes = [1, 128], strides = [1, 1]} : vector<3x128xf32> to vector<1x128xf32>
    %402 = vector.broadcast %401 : vector<1x128xf32> to vector<64x128xf32>
    %403 = arith.mulf %385, %402 : vector<64x128xf32>
    %404 = arith.addf %400, %403 : vector<64x128xf32>
    %405 = vector.extract_strided_slice %387 {offsets = [2, 0], sizes = [1, 128], strides = [1, 1]} : vector<3x128xf32> to vector<1x128xf32>
    %406 = vector.broadcast %405 : vector<1x128xf32> to vector<64x128xf32>
    %407 = arith.mulf %397, %406 : vector<64x128xf32>
    %408 = arith.addf %404, %407 : vector<64x128xf32>
    %c3_188 = arith.constant 3 : index
    %c0_189 = arith.constant 0 : index
    %c0_190 = arith.constant 0 : index
    %409 = vector.load %arg6[%c3_188, %c0_189, %c0_190] : memref<4x1x128xf32, #tpu.memory_space<vmem>>, vector<1x1x128xf32>
    %410 = vector.shape_cast %409 : vector<1x1x128xf32> to vector<1x128xf32>
    %411 = vector.broadcast %410 : vector<1x128xf32> to vector<64x128xf32>
    %412 = arith.addf %408, %411 : vector<64x128xf32>
    %cst_191 = arith.constant 0.000000e+00 : f32
    %413 = vector.broadcast %cst_191 : f32 to vector<64x128xf32>
    %414 = arith.cmpf ogt, %412, %413 : vector<64x128xf32>
    %415 = vector.broadcast %344 : f32 to vector<64x128xf32>
    %416 = arith.mulf %415, %412 : vector<64x128xf32>
    %417 = arith.select %414, %412, %416 : vector<64x128xi1>, vector<64x128xf32>
    %418 = vector.shape_cast %417 : vector<64x128xf32> to vector<1x64x128xf32>
    %cst_192 = arith.constant dense<0.000000e+00> : vector<1xf32>
    %419 = vector.multi_reduction <add>, %418, %cst_192 [1, 2] : vector<1x64x128xf32> to vector<1xf32>
    %420 = vector.shape_cast %419 : vector<1xf32> to vector<1x1x1xf32>
    %421 = vector.extract %420[0, 0, 0] : f32 from vector<1x1x1xf32>
    %cst_193 = arith.constant 4.8828125E-4 : f32
    %422 = arith.mulf %421, %cst_193 : f32
    %423 = arith.mulf %417, %417 : vector<64x128xf32>
    %424 = vector.shape_cast %423 : vector<64x128xf32> to vector<1x64x128xf32>
    %cst_194 = arith.constant dense<0.000000e+00> : vector<1xf32>
    %425 = vector.multi_reduction <add>, %424, %cst_194 [1, 2] : vector<1x64x128xf32> to vector<1xf32>
    %426 = vector.shape_cast %425 : vector<1xf32> to vector<1x1x1xf32>
    %427 = vector.extract %426[0, 0, 0] : f32 from vector<1x1x1xf32>
    %cst_195 = arith.constant 4.8828125E-4 : f32
    %428 = arith.mulf %427, %cst_195 : f32
    %429 = arith.mulf %422, %422 : f32
    %430 = arith.subf %428, %429 : f32
    %c3_196 = arith.constant 3 : index
    %c0_197 = arith.constant 0 : index
    %c0_198 = arith.constant 0 : index
    %431 = vector.load %arg11[%c3_196, %c0_197, %c0_198] : memref<4x1x128xf32, #tpu.memory_space<vmem>>, vector<1x1x128xf32>
    %432 = vector.shape_cast %431 : vector<1x1x128xf32> to vector<1x128xf32>
    %433 = vector.broadcast %422 : f32 to vector<64x128xf32>
    %434 = arith.subf %417, %433 : vector<64x128xf32>
    %435 = vector.broadcast %432 : vector<1x128xf32> to vector<64x128xf32>
    %436 = arith.mulf %435, %434 : vector<64x128xf32>
    %cst_199 = arith.constant 9.99999974E-6 : f32
    %437 = arith.addf %430, %cst_199 : f32
    %438 = math.rsqrt %437 : f32
    %439 = vector.broadcast %438 : f32 to vector<64x128xf32>
    %440 = arith.mulf %436, %439 : vector<64x128xf32>
    %c3_200 = arith.constant 3 : index
    %c0_201 = arith.constant 0 : index
    %c0_202 = arith.constant 0 : index
    %441 = vector.load %arg12[%c3_200, %c0_201, %c0_202] : memref<4x1x128xf32, #tpu.memory_space<vmem>>, vector<1x1x128xf32>
    %442 = vector.shape_cast %441 : vector<1x1x128xf32> to vector<1x128xf32>
    %443 = vector.broadcast %442 : vector<1x128xf32> to vector<64x128xf32>
    %444 = arith.addf %440, %443 : vector<64x128xf32>
    %445 = arith.truncf %444 : vector<64x128xf32> to vector<64x128xbf16>
    %c3_203 = arith.constant 3 : index
    %c0_204 = arith.constant 0 : index
    %c0_205 = arith.constant 0 : index
    %446 = vector.load %arg7[%c3_203, %c0_204, %c0_205] : memref<4x128x128xbf16, #tpu.memory_space<vmem>>, vector<1x128x128xbf16>
    %447 = vector.shape_cast %446 : vector<1x128x128xbf16> to vector<128x128xbf16>
    %cst_206 = arith.constant dense<0.000000e+00> : vector<64x128xf32>
    %448 = tpu.matmul %445, %447, %cst_206 {dimension_numbers = #tpu.dot_dimension_numbers<[1], [0], [0], [1], [0, 0, 1, 1], [], []>} : vector<64x128xbf16>, vector<128x128xbf16>, vector<64x128xf32> -> vector<64x128xf32>
    %c3_207 = arith.constant 3 : index
    %c0_208 = arith.constant 0 : index
    %c0_209 = arith.constant 0 : index
    %449 = vector.load %arg8[%c3_207, %c0_208, %c0_209] : memref<4x1x128xf32, #tpu.memory_space<vmem>>, vector<1x1x128xf32>
    %450 = vector.shape_cast %449 : vector<1x1x128xf32> to vector<1x128xf32>
    %451 = vector.broadcast %450 : vector<1x128xf32> to vector<64x128xf32>
    %452 = arith.addf %448, %451 : vector<64x128xf32>
    %453 = arith.addf %342, %452 : vector<64x128xf32>
    %c0_210 = arith.constant 0 : index
    %c0_211 = arith.constant 0 : index
    %c0_212 = arith.constant 0 : index
    %454 = vector.load %arg14[%c0_210, %c0_211, %c0_212] : memref<1x64x128xf32, #tpu.memory_space<vmem>>, vector<1x64x128xf32>
    %455 = vector.shape_cast %454 : vector<1x64x128xf32> to vector<64x128xf32>
    %456 = vector.shape_cast %453 : vector<64x128xf32> to vector<1x64x128xf32>
    tpu.vector_store %arg14[%c0_210, %c0_211, %c0_212], %456 {strides = array<i32>} : memref<1x64x128xf32, #tpu.memory_space<vmem>>, vector<1x64x128xf32>,
    return
  }
  func.func @transform_0(%arg0: i32) -> (i32, i32, i32) {
    %c0_i32 = arith.constant 0 : i32
    %c0_i32_0 = arith.constant 0 : i32
    %c0_i32_1 = arith.constant 0 : i32
    return %arg0, %c0_i32, %c0_i32_0 : i32, i32, i32
  }
  func.func @transform_1(%arg0: i32) -> (i32, i32, i32) {
    %c0_i32 = arith.constant 0 : i32
    %c0_i32_0 = arith.constant 0 : i32
    %c0_i32_1 = arith.constant 0 : i32
    return %arg0, %c0_i32, %c0_i32_0 : i32, i32, i32
  }
  func.func @transform_2(%arg0: i32) -> (i32, i32, i32) {
    %c0_i32 = arith.constant 0 : i32
    %c0_i32_0 = arith.constant 0 : i32
    %c0_i32_1 = arith.constant 0 : i32
    %c0_i32_2 = arith.constant 0 : i32
    return %c0_i32, %c0_i32_0, %c0_i32_1 : i32, i32, i32
  }
  func.func @transform_3(%arg0: i32) -> (i32, i32, i32) {
    %c0_i32 = arith.constant 0 : i32
    %c0_i32_0 = arith.constant 0 : i32
    %c0_i32_1 = arith.constant 0 : i32
    %c0_i32_2 = arith.constant 0 : i32
    return %c0_i32, %c0_i32_0, %c0_i32_1 : i32, i32, i32
  }
  func.func @transform_4(%arg0: i32) -> (i32, i32, i32) {
    %c0_i32 = arith.constant 0 : i32
    %c0_i32_0 = arith.constant 0 : i32
    %c0_i32_1 = arith.constant 0 : i32
    %c0_i32_2 = arith.constant 0 : i32
    return %c0_i32, %c0_i32_0, %c0_i32_1 : i32, i32, i32
  }
  func.func @transform_5(%arg0: i32) -> (i32, i32, i32) {
    %c0_i32 = arith.constant 0 : i32
    %c0_i32_0 = arith.constant 0 : i32
    %c0_i32_1 = arith.constant 0 : i32
    %c0_i32_2 = arith.constant 0 : i32
    return %c0_i32, %c0_i32_0, %c0_i32_1 : i32, i32, i32
  }
  func.func @transform_6(%arg0: i32) -> (i32, i32, i32) {
    %c0_i32 = arith.constant 0 : i32
    %c0_i32_0 = arith.constant 0 : i32
    %c0_i32_1 = arith.constant 0 : i32
    %c0_i32_2 = arith.constant 0 : i32
    return %c0_i32, %c0_i32_0, %c0_i32_1 : i32, i32, i32
  }
  func.func @transform_7(%arg0: i32) -> (i32, i32, i32) {
    %c0_i32 = arith.constant 0 : i32
    %c0_i32_0 = arith.constant 0 : i32
    %c0_i32_1 = arith.constant 0 : i32
    %c0_i32_2 = arith.constant 0 : i32
    return %c0_i32, %c0_i32_0, %c0_i32_1 : i32, i32, i32
  }
  func.func @transform_8(%arg0: i32) -> (i32, i32, i32) {
    %c0_i32 = arith.constant 0 : i32
    %c0_i32_0 = arith.constant 0 : i32
    %c0_i32_1 = arith.constant 0 : i32
    %c0_i32_2 = arith.constant 0 : i32
    return %c0_i32, %c0_i32_0, %c0_i32_1 : i32, i32, i32
  }
  func.func @transform_9(%arg0: i32) -> (i32, i32, i32) {
    %c0_i32 = arith.constant 0 : i32
    %c0_i32_0 = arith.constant 0 : i32
    %c0_i32_1 = arith.constant 0 : i32
    %c0_i32_2 = arith.constant 0 : i32
    return %c0_i32, %c0_i32_0, %c0_i32_1 : i32, i32, i32
  }
  func.func @transform_10(%arg0: i32) -> (i32, i32, i32) {
    %c0_i32 = arith.constant 0 : i32
    %c0_i32_0 = arith.constant 0 : i32
    %c0_i32_1 = arith.constant 0 : i32
    %c0_i32_2 = arith.constant 0 : i32
    return %c0_i32, %c0_i32_0, %c0_i32_1 : i32, i32, i32
  }
  func.func @transform_11(%arg0: i32) -> (i32, i32, i32) {
    %c0_i32 = arith.constant 0 : i32
    %c0_i32_0 = arith.constant 0 : i32
    %c0_i32_1 = arith.constant 0 : i32
    %c0_i32_2 = arith.constant 0 : i32
    return %c0_i32, %c0_i32_0, %c0_i32_1 : i32, i32, i32
  }
  func.func @transform_12(%arg0: i32) -> (i32, i32) {
    %c0_i32 = arith.constant 0 : i32
    %c0_i32_0 = arith.constant 0 : i32
    %c0_i32_1 = arith.constant 0 : i32
    return %c0_i32, %c0_i32_0 : i32, i32
  }
  func.func @transform_13(%arg0: i32) -> (i32, i32, i32) {
    %c0_i32 = arith.constant 0 : i32
    %c0_i32_0 = arith.constant 0 : i32
    %c0_i32_1 = arith.constant 0 : i32
    return %arg0, %c0_i32, %c0_i32_0 : i32, i32, i32
  }
}

</mosaic_0001>

<bundles_post_ra>
// kernel: tpu_custom_call.1
= control target key start
LH: loop header
LB: loop body
LE: loop exit
PB: predicated region body
PF: predicated region fallthrough
CT: control target
= control target key end

     0   :  { %s5487_s0 = inlined_call_operand.hbm [shape: f32[4,64,128], index: 0, kind: input, shape index: {}]   ;;  %s5488_s1 = inlined_call_operand.vmem [shape: f32[4,1,128], index: 1, kind: input, shape index: {}]   ;;  %s5489_s2 = inlined_call_operand.hbm [shape: bf16[4,256,128], index: 2, kind: input, shape index: {}]   ;;  %s5490_s3 = inlined_call_operand.vmem [shape: f32[4,1,128], index: 3, kind: input, shape index: {}]   ;;  %s5491_s4 = inlined_call_operand.vmem [shape: f32[4,3,128], index: 4, kind: input, shape index: {}]   ;;  %s5492_s5 = inlined_call_operand.vmem [shape: f32[4,1,128], index: 5, kind: input, shape index: {}]   ;;  %s5493_s6 = inlined_call_operand.hbm [shape: bf16[4,128,128], index: 6, kind: input, shape index: {}]   ;;  %s5494_s7 = inlined_call_operand.vmem [shape: f32[4,1,128], index: 7, kind: input, shape index: {}]   ;;  %s5495_s8 = inlined_call_operand.vmem [shape: f32[4,1,128], index: 8, kind: input, shape index: {}]   ;;  %s5496_s9 = inlined_call_operand.vmem [shape: f32[4,1,128], index: 9, kind: input, shape index: {}]   ;;  %s5497_s10 = inlined_call_operand.vmem [shape: f32[4,1,128], index: 10, kind: input, shape index: {}]   ;;  %s5498_s11 = inlined_call_operand.vmem [shape: f32[4,1,128], index: 11, kind: input, shape index: {}]   ;;  %s5499_s12 = inlined_call_operand.vmem [shape: f32[4,2], index: 12, kind: input, shape index: {}]   ;;  %s5500_s13 = inlined_call_operand.hbm [shape: f32[4,64,128], index: 13, kind: output, shape index: {}]  }
   0x1   :  { %5510 = sst [smem:[#allocation17_spill]] %s5494_s7 }
   0x2   :  { %5511 = sst [smem:[#allocation18_spill]] %s5497_s10 }
   0x3   :  { %5512 = sst [smem:[#allocation19_spill]] %s5498_s11 }
   0x4   :  { %5513 = sst [smem:[#allocation20_spill]] %s5499_s12 }
   0x5   :  { %5514 = sst [smem:[#allocation21_spill]] %s5500_s13 }
   0x6   :  { %18 = vsyncpa [#allocation3], 0 }
   0x7   :  { %20 = vsyncpa [#allocation3 + $0x1], 0 }
   0x8   :  { %21 = vsyncpa [#allocation7], 0 }
   0x9   :  { %22 = vsyncpa [#allocation5], 0 }
   0xa   :  { %23 = vsyncpa [#allocation4], 0 }
   0xb   :  { %25 = vsyncpa [#allocation4 + $0x1], 0  ;;  %s4404_s25 = smov 0   ;;  %s4406_s26 = smov 0  }
   0xc   :  { %s4408_s27 = smov 0   ;;  %s4410_s28 = smov 0  }
   0xd LB: > { %5515 = sst [smem:[#allocation15_spill]] %s4307_s25  ;;  %s4425_s29 = sadd.s32 4294967295, %s4319_s28   ;;  %s4319_s28 = sphi %s4410_s28, %s5543_s28   ;;  %s4315_s27 = sphi %s4408_s27, %s5542_s27   ;;  %s4311_s26 = sphi %s4406_s26, %s5541_s26   ;;  %s4307_s25 = sphi %s4404_s25, %s5540_s25  }
   0xe   : > { %s3430_s30 = sadd.s32 4294967294, %s4319_s28   ;;  %p51_p0 = scmp.ne.s32.totalorder %s4311_s26, %s4307_s25 }
   0xf   : > { %p5505_p1 = scmp.eq.s32.totalorder %s4425_s29, 0  ;;  %p338_p3 = scmp.eq.s32.totalorder %s3430_s30, 3 }
  0x10   : > { %p3431_p5 = scmp.ge.s32.totalorder %s4319_s28, 1  ;;  %p345_p7 = scmp.lt.s32.totalorder %s4319_s28, 5 }
  0x11   : > { %p4434_p4 = por %p5505_p1, %p51_p0  ;;  %p4439_p6 = por %p338_p3, %p51_p0 }
  0x12   : > { %p4444_p8 = pnand %p3431_p5, %p345_p7  ;;  %s4321_s17 = smov [#allocation6]  }
  0x13   : > { %s5516_s14 = scalar_select %p4434_p4, 1, 0 }
  0x14   : > { %s5517_s15 = scalar_select %p4439_p6, 1, 0 }
  0x15   : > { %s357_s18 = sshll.u32 %s4321_s17, 4  ;;  %p3980_p9 = pneg %p4444_p8  ;;  %s4448_s18 = int_to_ptr.vmem [resolvable:$true] %s357_s18 }
  0x16   : > { %5518 = sst [smem:[#allocation16_spill]] %s5517_s15  ;;  %s4322_s20 = smov [#allocation8]  }
  0x17   : > { %p4454_p10 = pnand %p3980_p9, %p5505_p1  ;;  %s379_s21 = sshll.u32 %s4322_s20, 4  ;;  %s4458_s21 = int_to_ptr.vmem [resolvable:$true] %s379_s21 }
  0x18   : > { %s5521_s12 = sld [smem:[#allocation20_spill]]  ;;  %s4144_s15 = scalar_lea.hbm %s5489_s2, 8192 }
  0x19   : > { %p4145_p11 = scmp.ne.s32.totalorder %s5489_s2, %s4144_s15  ;;  %p4473_p12 = pneg %p4454_p10 }
  0x1a   : > { %p4151_p3 = scmp.lt.u32.totalorder %s4144_s15, %s5489_s2 }
  0x1b   : > { %p4147_p13 = pnand %p4473_p12, %p4145_p11 }
  0x1d   : > { %p4148_p0 = pneg %p4147_p13 }
  0x1e   : > { %s408_s24 = sshll.u32 %s5521_s12, 4  ;;  %s4463_s24 = int_to_ptr.vmem [resolvable:$true] %s408_s24 }
  0x1f   : > { %p4153_p5 = pnand %p4151_p3, %p4148_p0 }
  0x21   : > { %4156 = shalt.err (!%p4153_p5)
}
  0x22   : > { %s4157_s13 = scalar_lea.vmem %s4448_s18, 8192  ;;  %p4165_p2 = scmp.lt.s32.totalorder %s4448_s18, %s4448_s18 }
  0x23   : > { %p4158_p7 = scmp.ne.s32.totalorder %s4448_s18, %s4157_s13  ;;  %p4166_p6 = scmp.lt.s32.totalorder %s4157_s13, %s4157_s13 }
  0x25   : > { %p4160_p9 = pnand %p4158_p7, %p4473_p12  ;;  %p4167_p11 = por %p4166_p6, %p4165_p2 }
  0x27   : > { %p4161_p1 = pneg %p4160_p9 }
  0x29   : > { %p4168_p13 = pnand %p4167_p11, %p4161_p1 }
  0x2b   : > { %4171 = shalt.err (!%p4168_p13)
}
  0x2c   : > { %s4323_s25 = smov 64   ;;  %s4324_s15 = smov 4  }
  0x2d   : > { %3983 = dma.hbm_to_vmem [thread:$0]  (!%p4454_p10), %s5489_s2, 8192, %s4448_s18, [#allocation7], %s4323_s25, %s4323_s25, %s4324_s15  }
  0x2e   : > { %s4172_s22 = scalar_lea.hbm %s5493_s6, 4096 }
  0x2f   : > { %p4173_p2 = scmp.ne.s32.totalorder %s5493_s6, %s4172_s22  ;;  %p4179_p0 = scmp.lt.u32.totalorder %s4172_s22, %s5493_s6 }
  0x31   : > { %p4175_p1 = pnand %p4173_p2, %p4473_p12 }
  0x33   : > { %p4176_p6 = pneg %p4175_p1 }
  0x35   : > { %p4181_p3 = pnand %p4179_p0, %p4176_p6 }
  0x37   : > { %4184 = shalt.err (!%p4181_p3)
}
  0x38   : > { %s4185_s18 = scalar_lea.vmem %s4458_s21, 4096  ;;  %p4193_p11 = scmp.lt.s32.totalorder %s4458_s21, %s4458_s21 }
  0x39   : > { %p4186_p5 = scmp.ne.s32.totalorder %s4458_s21, %s4185_s18  ;;  %p4194_p13 = scmp.lt.s32.totalorder %s4185_s18, %s4185_s18 }
  0x3b   : > { %p4188_p7 = pnand %p4186_p5, %p4473_p12  ;;  %p4195_p2 = por %p4194_p13, %p4193_p11 }
  0x3d   : > { %p4189_p9 = pneg %p4188_p7 }
  0x3f   : > { %p4196_p1 = pnand %p4195_p2, %p4189_p9 }
  0x41   : > { %4199 = shalt.err (!%p4196_p1)
}
  0x42   : > { %3986 = dma.hbm_to_vmem [thread:$0]  (!%p4454_p10), %s5493_s6, 4096, %s4458_s21, [#allocation7], %s4323_s25, %s4323_s25, %s4324_s15  }
  0x43   : > { %s4200_s12 = scalar_lea.vmem %s4463_s24, 64  ;;  %p4208_p5 = scmp.lt.s32.totalorder %s4463_s24, %s4463_s24 }
  0x44   : > { %p4201_p6 = scmp.ne.s32.totalorder %s4463_s24, %s4200_s12  ;;  %p4209_p7 = scmp.lt.s32.totalorder %s4200_s12, %s4200_s12 }
  0x46   : > { %p4203_p0 = pnand %p4201_p6, %p4473_p12  ;;  %p4210_p9 = por %p4209_p7, %p4208_p5 }
  0x48   : > { %p4204_p3 = pneg %p4203_p0 }
  0x4a   : > { %p4211_p11 = pnand %p4210_p9, %p4204_p3 }
  0x4c   : > { %4214 = shalt.err (!%p4211_p11)
}
  0x4d   : > { %s4325_s23 = smov [#allocation9]   ;;  %s4527_s7 = sadd.s32 1, %s4319_s28  }
  0x4e   : > { %3989 = dma.vmem_to_smem (!%p4454_p10), %s4463_s24, 64, %s4325_s23, [#allocation5]  }
  0x4f   : > { %s35_s21 = ssub.s32 %s4319_s28, %s4527_s7  ;;  %s38_s25 = sadd.s32 1, %s4315_s27 }
  0x50   : > { %p36_p12 = scmp.eq.s32.totalorder %s35_s21, 0  ;;  %p45_p13 = scmp.ne.s32.totalorder %s4315_s27, %s4311_s26 }
  0x51   : > { %p46_p2 = scmp.eq.s32.totalorder %s4319_s28, 0  ;;  %p4001_p1 = scmp.lt.s32.totalorder %s4319_s28, 4 }
  0x52   : > { %s4537_s19 = scalar_select %p36_p12, %s4315_s27, %s38_s25  }
  0x53   : > { %p47_p6 = por %p46_p2, %p45_p13  ;;  %p5523_p0 = scmp.eq.s32.totalorder %s4425_s29, 3 }
  0x54   : > { %s419_s30 = sand.u32 1, %s4315_s27   ;;  %s3581_s17 = sshll.u32 %s4319_s28, 10 }
  0x55   : > { %p4541_p3 = por %p5523_p0, %p45_p13  ;;  %s3436_s24 = sshll.u32 %s419_s30, 6 }
  0x56   : > { %s4550_s13 = scalar_lea.hbm %s5487_s0, %s3581_s17  ;;  %s423_s18 = scalar_lea.vmem [#allocation2], %s3436_s24 }
  0x57   : > { %s5524_s15 = scalar_select %p4541_p3, 1, 0 }
  0x58   : > { %s430_s10 = sshll.u32 %s423_s18, 4  ;;  %p4552_p10 = pnand %p4001_p1, %p47_p6  ;;  %s4556_s10 = int_to_ptr.vmem [resolvable:$true] %s430_s10 }
  0x59   : > { %s4558_s12 = scalar_lea.sflag [#allocation3], %s419_s30  ;;  %s4215_s23 = scalar_lea.hbm %s4550_s13, 1024 }
  0x5a   : > { %p4216_p5 = scmp.ne.s32.totalorder %s4550_s13, %s4215_s23  ;;  %p4217_p7 = pneg %p4552_p10 }
  0x5b   : > { %s4220_s17 = scalar_lea.hbm %s5487_s0, 4096  ;;  %p4221_p12 = scmp.lt.u32.totalorder %s4550_s13, %s5487_s0 }
  0x5c   : > { %p4218_p9 = pnand %p4217_p7, %p4216_p5  ;;  %p4222_p13 = scmp.lt.u32.totalorder %s4220_s17, %s4215_s23 }
  0x5d   : > { %p4224_p1 = scmp.lt.u32.totalorder %s4215_s23, %s4550_s13 }
  0x5e   : > { %p4219_p11 = pneg %p4218_p9  ;;  %p4223_p2 = por %p4222_p13, %p4221_p12 }
  0x60   : > { %p4225_p6 = por %p4224_p1, %p4223_p2 }
  0x62   : > { %p4226_p0 = pnand %p4225_p6, %p4219_p11 }
  0x64   : > { %4229 = shalt.err (!%p4226_p0)
}
  0x65   : > { %s4230_s30 = scalar_lea.vmem %s4556_s10, 1024  ;;  %s4326_s22 = smov [#allocation2]  }
  0x66   : > { %p4231_p5 = scmp.ne.s32.totalorder %s4556_s10, %s4230_s30  ;;  %s4235_s18 = sshll.u32 %s4326_s22, 4  ;;  %s4236_s18 = int_to_ptr.vmem [resolvable:$false] %s4235_s18 }
  0x67   : > { %s4237_s21 = scalar_lea.vmem %s4236_s18, 2048  ;;  %p4238_p4 = scmp.lt.s32.totalorder %s4556_s10, %s4236_s18 }
  0x68   : > { %p4233_p9 = pnand %p4231_p5, %p4217_p7  ;;  %p4239_p12 = scmp.lt.s32.totalorder %s4237_s21, %s4230_s30 }
  0x6a   : > { %p4234_p3 = pneg %p4233_p9  ;;  %p4240_p13 = por %p4239_p12, %p4238_p4 }
  0x6c   : > { %p4241_p2 = pnand %p4240_p13, %p4234_p3 }
  0x6e   : > { %4244 = shalt.err (!%p4241_p2)
}
  0x6f   : > { %s4327_s23 = smov 128   ;;  %s4328_s25 = smov 8  }
  0x70   : > { %3993 = dma.hbm_to_vmem [thread:$0]  (!%p4552_p10), %s4550_s13, 1024, %s4556_s10, %s4558_s12, %s4327_s23, %s4327_s23, %s4328_s25  }
  0x71   : > { %448 = sbr.rel (%p4444_p8) target bundleno = 4394 (0x112a), region = 72  ;;  %s4589_s17 = sand.u32 (!%p4444_p8), 1, %s4311_s26  }
  0x72   : > { %s3440_s24 = sshll.u32 (!%p4444_p8), %s4589_s17, 6  ;;  %s451_s20 = scalar_lea.sflag (!%p4444_p8), [#allocation3], %s4589_s17 }
  0x73   : > { %s4595_s30 = scalar_lea.vmem (!%p4444_p8), [#allocation2], %s3440_s24  ;;  %p5526_p4 = scmp.ne.s32.totalorder (!%p4444_p8), %s5516_s14, 0 }
  0x78   : > { %4290 = dma.done.wait (%p5526_p4), %s451_s20, 1024  }
  0x79   : > { %4292 = vsyncadd (%p5526_p4), %s451_s20, 4294966272  ;;  %p5527_p3 = scmp.eq.s32.totalorder %s4425_s29, 0 }
  0x7b   : > { %4294 = dma.done.wait (%p5527_p3), [#allocation7], 12288   ;;  %p5528_p8 = pmov %p5527_p3 }
  0x7c   : > { %p5529_p10 = pmov %p5527_p3 }
  0x7d   : > { %4296 = vsyncadd (%p5528_p8), [#allocation7], 4294955008 }
  0x7e   : > { %4298 = dma.done.wait (%p5529_p10), [#allocation5], 64   ;;  %p5530_p7 = pmov %p5527_p3 }
  0x80   : > { %4300 = vsyncadd (%p5530_p7), [#allocation5], 4294967232 }
  0x81   : > { %471 = sfence }
  0x82   : > { %v4049_v0 = vld [vmem:[#allocation6 + $0x40] sm:$0xff]   ;;  %v4329_v1 = vmov 0.0   ;;  %v4051_v3 = vld [vmem:[#allocation6 + $0x48] sm:$0xff]   ;;  %vm4330_vm0 = vmmov 0   ;;  %v4054_v5 = vld [vmem:[#allocation6 + $0x10] sm:$0xff]   ;;  %p513_p11 = scmp.lt.s32.totalorder %s4425_s29, 3  ;;  %v526_v31 = vlaneseq }
  0x83   : > { %3688 = vmatprep.subr.bf16.mxu0 %v4329_v1  ;;  %v4050_v2 = vld [vmem:[#allocation6] sm:$0xff]   ;;  %3704 = vmatprep.mubr.msk.bf16.mxu0 %vm4330_vm0, %v4329_v1  ;;  %v4052_v4 = vld [vmem:[#allocation6 + $0x8] sm:$0xff]   ;;  %v4053_v6 = vld [vmem:[#allocation6 + $0x50] sm:$0xff]   ;;  %s535_s11 = sld [smem:[#allocation9]]  ;;  %p5536_p6 = scmp.ne.s32.totalorder %s5524_s15, 0 }
  0x84   : > { %3689 = vmatpush3.bf16.msra.mxu0 %v4049_v0  ;;  %3708 = vmatprep.subr.bf16.mxu1 %v4050_v2  ;;  %v4056_v7 = vld [vmem:[#allocation6 + $0x18] sm:$0xff]   ;;  %v4058_v9 = vld [vmem:[#allocation6 + $0x20] sm:$0xff]   ;;  %v518_v12 = vld [vmem:[%s4595_s30 + $0x8] sm:$0xff]  ;;  %s514_s14 = scalar_select %p513_p11, %s4425_s29, 3  ;;  %v4625_v32 = vshrl.u32 %v526_v31, 7 }
  0x85   : > { %3690 = vmatprep.subr.bf16.mxu0 %v4329_v1  ;;  %3709 = vmatpush3.bf16.msra.mxu1 %v4050_v2  ;;  %v4055_v8 = vld [vmem:[#allocation6 + $0x58] sm:$0xff]   ;;  %v4057_v10 = vld [vmem:[#allocation6 + $0x60] sm:$0xff]   ;;  %v4060_v13 = vld [vmem:[#allocation6 + $0x28] sm:$0xff]  }
  0x86   : > { %3710 = vmatprep.subr.bf16.mxu1 %v4052_v4  ;;  %v517_v11 = vld [vmem:[%s4595_s30] sm:$0xff]  ;;  %v4059_v15 = vld [vmem:[#allocation6 + $0x68] sm:$0xff]   ;;  %v4062_v16 = vld [vmem:[#allocation6 + $0x30] sm:$0xff]   ;;  %s515_s10 = scalar_lea.vmem %s5488_s1, %s514_s14  ;;  %v4628_v33 = vsub.s32 0, %v4625_v32  ;;  %vm916_vm9 = vcmp.ge.s32.totalorder %v4625_v32, 1  ;;  %vm932_vm10 = vcmp.lt.s32.totalorder %v4625_v32, 1 }
  0x87   : > { %v569_v14 = vpack.c.bf16 %v518_v12, %v517_v11  ;;  %v4061_v17 = vld [vmem:[#allocation6 + $0x70] sm:$0xff]   ;;  %v4064_v18 = vld [vmem:[#allocation6 + $0x38] sm:$0xff]   ;;  %v525_v20 = vld [vmem:[%s515_s10] sm:$0x1]  ;;  %vm965_vm12 = vcmp.lt.s32.totalorder %v4625_v32, 7 }
  0x88   : > { %3691 = vmatpush3.bf16.msra.mxu0 %v4051_v3  ;;  %v4063_v19 = vld [vmem:[#allocation6 + $0x78] sm:$0xff]   ;;  %v519_v21 = vld [vmem:[%s4595_s30 + $0x10] sm:$0xff]  ;;  %v521_v23 = vld [vmem:[%s4595_s30 + $0x20] sm:$0xff]  ;;  %v573_v25 = vpack.c.bf16 %v525_v20, %v525_v20 }
  0x89   : > { %3692 = vmatprep.subr.bf16.mxu0 %v4329_v1  ;;  %3711 = vmatpush3.bf16.msra.mxu1 %v4052_v4  ;;  %v520_v22 = vld [vmem:[%s4595_s30 + $0x18] sm:$0xff]  ;;  %v522_v24 = vld [vmem:[%s4595_s30 + $0x28] sm:$0xff]  ;;  %v523_v28 = vld [vmem:[%s4595_s30 + $0x30] sm:$0xff]  ;;  %v802_v43 = vstv %s535_s11 }
  0x8a   : > { %3712 = vmatprep.subr.bf16.mxu1 %v4054_v5  ;;  %3724 = vmatprep.mubr.bf16.mxu1 %v569_v14  ;;  %v570_v26 = vpack.c.bf16 %v520_v22, %v519_v21  ;;  %v571_v27 = vpack.c.bf16 %v522_v24, %v521_v23  ;;  %v4622_v29 = vld [vmem:[%s4595_s30 + $0x38] sm:$0xff]  ;;  %v3462_v38 = vld [vmem:[%s5490_s3] ss:$0 sm:$0xff] }
  0x8b   : > { %v572_v30 = vpack.c.bf16 %v4622_v29, %v523_v28 }
  0x8c   : > { %3693 = vmatpush3.bf16.msra.mxu0 %v4053_v6 }
  0x8d   : > { %3694 = vmatprep.subr.bf16.mxu0 %v4329_v1  ;;  %3713 = vmatpush3.bf16.msra.mxu1 %v4054_v5 }
  0x8e   : > { %3714 = vmatprep.subr.bf16.mxu1 %v4056_v7 }
  0x90   : > { %3695 = vmatpush3.bf16.msra.mxu0 %v4055_v8 }
  0x91   : > { %3696 = vmatprep.subr.bf16.mxu0 %v4329_v1  ;;  %3715 = vmatpush3.bf16.msra.mxu1 %v4056_v7 }
  0x92   : > { %3716 = vmatprep.subr.bf16.mxu1 %v4058_v9 }
  0x94   : > { %3697 = vmatpush3.bf16.msra.mxu0 %v4057_v10 }
  0x95   : > { %3698 = vmatprep.subr.bf16.mxu0 %v4329_v1  ;;  %3717 = vmatpush3.bf16.msra.mxu1 %v4058_v9 }
  0x96   : > { %3718 = vmatprep.subr.bf16.mxu1 %v4060_v13 }
  0x98   : > { %3699 = vmatpush3.bf16.msra.mxu0 %v4059_v15 }
  0x99   : > { %3700 = vmatprep.subr.bf16.mxu0 %v4329_v1  ;;  %3719 = vmatpush3.bf16.msra.mxu1 %v4060_v13 }
  0x9a   : > { %3720 = vmatprep.subr.bf16.mxu1 %v4062_v16 }
  0x9c   : > { %3701 = vmatpush3.bf16.msra.mxu0 %v4061_v17 }
  0x9d   : > { %3702 = vmatprep.subr.bf16.mxu0 %v4329_v1  ;;  %3721 = vmatpush3.bf16.msra.mxu1 %v4062_v16 }
  0x9e   : > { %3722 = vmatprep.subr.bf16.mxu1 %v4064_v18 }
  0xa0   : > { %3703 = vmatpush3.bf16.msra.mxu0 %v4063_v19 }
  0xa1   : > { %3723 = vmatpush3.bf16.msra.mxu1 %v4064_v18 }
  0xa3   : > { %3705 = vmatmul.mubr.bf16.vlgmr.msra.gmra.mrb[0].mxu0 %v573_v25 }
  0xa4   : > { %3725 = vmatmul.mubr.bf16.vlgmr.msra.gmra.mrb[0].mxu1 %v570_v26 }
  0xa5   : > { %3728 = vmatprep.mubr.bf16.mxu1 %v571_v27 }
  0xac   : > { %3729 = vmatmul.mubr.bf16.gmra.mrb[4].mxu1 %v572_v30 }
 0x176   : > { %v656_v34 = vpop.f32.mrb[0].mxu0 }
 0x177   : > { %v665_v35 = vrot.slane %v656_v34, %v4628_v33  ;;  %v3706_v36 = vpop.f32.mrb[1].mxu0  ;;  %v3726_v37 = vpop.f32.mrb[0].mxu1 }
 0x178   : > { %v659_v39 = vpop.f32.mrb[2].mxu0  ;;  %v748_v41 = vpop.f32.mrb[1].mxu1 }
 0x179   : > { %v757_v40 = vadd.f32 %v3726_v37, %v665_v35  ;;  %v3707_v42 = vpop.f32.mrb[3].mxu0  ;;  %v749_v44 = vadd.f32 %v748_v41, %v665_v35  ;;  %v3727_v45 = vpop.f32.mrb[2].mxu1 }
 0x17a   : > { %v760_v47 = vadd.f32 %v3727_v45, %v665_v35  ;;  %v751_v48 = vpop.f32.mrb[3].mxu1 }
 0x17b   : > { %v788_v46 = vadd.f32 %v3462_v38, %v757_v40  ;;  %v786_v49 = vadd.f32 %v3462_v38, %v749_v44  ;;  %v752_v50 = vadd.f32 %v751_v48, %v665_v35 }
 0x17c   : > { %v789_v52 = vadd.f32 %v3462_v38, %v760_v47 }
 0x17d   : > { %v805_v51 = vmul.f32 %v802_v43, %v788_v46  ;;  %vm796_vm1 = vcmp.gt.f32.partialorder %v788_v46, 0.0  ;;  %vm794_vm2 = vcmp.gt.f32.partialorder %v786_v49, 0.0  ;;  %v803_v53 = vmul.f32 %v802_v43, %v786_v49 }
 0x17e   : > { %v787_v54 = vadd.f32 %v3462_v38, %v752_v50  ;;  %vm797_vm3 = vcmp.gt.f32.partialorder %v789_v52, 0.0  ;;  %v806_v55 = vmul.f32 %v802_v43, %v789_v52 }
 0x17f   : > { %v4634_v56 = vsel %vm794_vm2, %v786_v49, %v803_v53  ;;  %v3730_v58 = vpop.f32.mrb[4].mxu1  ;;  %v4636_v59 = vsel %vm796_vm1, %v788_v46, %v805_v51 }
 0x180   : > { %vm795_vm4 = vcmp.gt.f32.partialorder %v787_v54, 0.0  ;;  %v804_v57 = vmul.f32 %v802_v43, %v787_v54  ;;  %v773_v60 = vadd.f32 %v3730_v58, %v665_v35  ;;  %v764_v61 = vpop.f32.mrb[5].mxu1  ;;  %v836_v62 = vmul.f32 %v4634_v56, %v4634_v56 }
 0x181   : > { %v4640_v63 = vsel %vm797_vm3, %v789_v52, %v806_v55  ;;  %v765_v1 = vadd.f32 %v764_v61, %v665_v35  ;;  %v3731_v2 = vpop.f32.mrb[6].mxu1  ;;  %v838_v10 = vmul.f32 %v4636_v59, %v4636_v59 }
 0x182   : > { %v4642_v0 = vsel %vm795_vm4, %v787_v54, %v804_v57  ;;  %v792_v5 = vadd.f32 %v3462_v38, %v773_v60  ;;  %v776_v6 = vadd.f32 %v3731_v2, %v665_v35  ;;  %v767_v7 = vpop.f32.mrb[7].mxu1  ;;  %v839_v11 = vmul.f32 %v4640_v63, %v4640_v63 }
 0x183   : > { %v819_v3 = vadd.f32 %v4642_v0, %v4634_v56  ;;  %v837_v4 = vmul.f32 %v4642_v0, %v4642_v0  ;;  %v790_v8 = vadd.f32 %v3462_v38, %v765_v1  ;;  %v768_v9 = vadd.f32 %v767_v7, %v665_v35 }
 0x184   : > { %v809_v16 = vmul.f32 %v802_v43, %v792_v5  ;;  %v793_v17 = vadd.f32 %v3462_v38, %v776_v6  ;;  %vm800_vm6 = vcmp.gt.f32.partialorder %v792_v5, 0.0 }
 0x185   : > { %v844_v12 = vadd.f32 %v837_v4, %v836_v62  ;;  %vm798_vm5 = vcmp.gt.f32.partialorder %v790_v8, 0.0  ;;  %v807_v13 = vmul.f32 %v802_v43, %v790_v8  ;;  %v791_v14 = vadd.f32 %v3462_v38, %v768_v9  ;;  %v3463_v4 = vld [vmem:[%s5495_s8] ss:$0 sm:$0xff] }
 0x186   : > { %v820_v15 = vadd.f32 %v819_v3, %v4636_v59  ;;  %v810_v26 = vmul.f32 %v802_v43, %v793_v17  ;;  %v4661_v27 = vsel %vm800_vm6, %v792_v5, %v809_v16  ;;  %vm801_vm8 = vcmp.gt.f32.partialorder %v793_v17, 0.0 }
 0x187   : > { %v845_v18 = vadd.f32 %v844_v12, %v838_v10  ;;  %v4653_v19 = vsel %vm798_vm5, %v790_v8, %v807_v13  ;;  %vm799_vm7 = vcmp.gt.f32.partialorder %v791_v14, 0.0  ;;  %v808_v20 = vmul.f32 %v802_v43, %v791_v14 }
 0x188   : > { %v821_v21 = vadd.f32 %v820_v15, %v4640_v63  ;;  %v840_v22 = vmul.f32 %v4653_v19, %v4653_v19  ;;  %v842_v36 = vmul.f32 %v4661_v27, %v4661_v27  ;;  %v818_v37 = vsel %vm801_vm8, %v793_v17, %v810_v26 }
 0x189   : > { %v846_v23 = vadd.f32 %v845_v18, %v839_v11  ;;  %v4658_v24 = vsel %vm799_vm7, %v791_v14, %v808_v20  ;;  %v843_v40 = vmul.f32 %v818_v37, %v818_v37  ;;  %v4692_v9 = vadd.s32 56, %v4625_v32  ;;  %v3464_v18 = vld [vmem:[%s5496_s9] ss:$0 sm:$0xff] }
 0x18a   : > { %v822_v25 = vadd.f32 %v821_v21, %v4653_v19  ;;  %v841_v28 = vmul.f32 %v4658_v24, %v4658_v24 }
 0x18b   : > { %v847_v30 = vadd.f32 %v846_v23, %v840_v22  ;;  %vm956_vm11 = vcmp.lt.s32.totalorder %v4692_v9, 63 }
 0x18c   : > { %v823_v31 = vadd.f32 %v822_v25, %v4658_v24 }
 0x18d   : > { %v848_v34 = vadd.f32 %v847_v30, %v841_v28 }
 0x18e   : > { %v824_v35 = vadd.f32 %v823_v31, %v4661_v27 }
 0x18f   : > { %v849_v39 = vadd.f32 %v848_v34, %v842_v36 }
 0x190   : > { %v825_v38 = vadd.f32 %v824_v35, %v818_v37 }
 0x191   : > { %v850_v41 = vadd.f32 %v849_v39, %v843_v40 }
 0x192   : > { %826 = vadd.xlane.f32.xlu0 %v825_v38 }
 0x196   : > { %851 = vadd.xlane.f32.xlu0 %v850_v41 }
 0x21f   : > { %v827_v42 = vpop.xlane.xlu0 %826 }
 0x220   : > { %v828_v43 = vrot.slane %v827_v42, 4 }
 0x222   : > { %v829_v44 = vadd.f32 %v828_v43, %v827_v42 }
 0x223   : > { %v852_v45 = vpop.xlane.xlu0 %851 }
 0x224   : > { %v830_v46 = vrot.slane %v829_v44, 2  ;;  %v853_v47 = vrot.slane %v852_v45, 4 }
 0x226   : > { %v854_v48 = vadd.f32 %v853_v47, %v852_v45  ;;  %v831_v49 = vadd.f32 %v830_v46, %v829_v44 }
 0x228   : > { %v855_v50 = vrot.slane %v854_v48, 2  ;;  %v832_v51 = vrot.slane %v831_v49, 1 }
 0x22a   : > { %v833_v52 = vadd.f32 %v832_v51, %v831_v49  ;;  %v856_v53 = vadd.f32 %v855_v50, %v854_v48 }
 0x22c   : > { %3916 = vpush %v833_v52  ;;  %v857_v54 = vrot.slane %v856_v53, 1 }
 0x22e   : > { %v858_v55 = vadd.f32 %v857_v54, %v856_v53 }
 0x230   : > { %3918 = vpush %v858_v55 }
 0x25d   : > { %s3917_s18 = spop %3916 }
 0x25e   : > { %s835_s21 = smul.f32 0.00048828125, %s3917_s18 }
 0x260   : > { %s861_s23 = smul.f32 %s835_s21, %s835_s21  ;;  %v864_v60 = vstv %s835_s21 }
 0x261   : > { %s3919_s25 = spop %3918  ;;  %v865_v61 = vsub.f32 %v4634_v56, %v864_v60  ;;  %v866_v62 = vsub.f32 %v4642_v0, %v864_v60  ;;  %v867_v1 = vsub.f32 %v4636_v59, %v864_v60  ;;  %v868_v2 = vsub.f32 %v4640_v63, %v864_v60  ;;  %v915_v56 = vld [vmem:[%s5491_s4] sm:$0x7] }
 0x262   : > { %s860_s20 = smul.f32 0.00048828125, %s3919_s25  ;;  %v869_v3 = vsub.f32 %v4653_v19, %v864_v60  ;;  %v870_v5 = vsub.f32 %v4658_v24, %v864_v60  ;;  %v871_v6 = vsub.f32 %v4661_v27, %v864_v60  ;;  %v872_v7 = vsub.f32 %v818_v37, %v864_v60 }
 0x263   : > { %v4683_v0 = vsub.s32 1, %v4625_v32  ;;  %v4686_v59 = vrot.slane %v915_v56, %v4628_v33  ;;  %v4689_v63 = vsub.s32 2, %v4625_v32  ;;  %v879_v8 = vmul.f32 %v3463_v4, %v865_v61 }
 0x264   : > { %s862_s14 = ssub.f32 %s860_s20, %s861_s23  ;;  %v880_v10 = vmul.f32 %v3463_v4, %v866_v62  ;;  %v881_v11 = vmul.f32 %v3463_v4, %v867_v1  ;;  %v882_v12 = vmul.f32 %v3463_v4, %v868_v2  ;;  %v883_v13 = vmul.f32 %v3463_v4, %v869_v3  ;;  %s4752_s23 = sld [smem:[#allocation9 + $0x1]] }
 0x265   : > { %v884_v14 = vmul.f32 %v3463_v4, %v870_v5  ;;  %v885_v15 = vmul.f32 %v3463_v4, %v871_v6  ;;  %v886_v16 = vmul.f32 %v3463_v4, %v872_v7  ;;  %v4702_v38 = vrot.slane %v915_v56, %v4683_v0 }
 0x266   : > { %s887_s16 = sadd.f32 1e-05, %s862_s14  ;;  %v4705_v39 = vrot.slane %v915_v56, %v4689_v63 }
 0x268   : > { %v888_v57 = vstv %s887_s16 }
 0x269   : > { %4121 = vrsqrt.f32 %v888_v57 }
 0x273   : > { %v4122_v58 = vpop.eup %4121 }
 0x274   : > { %3920 = vpush %v4122_v58 }
 0x2a5   : > { %s3921_s22 = spop %3920 }
 0x2a6   : > { %v891_v17 = vstv %s3921_s22 }
 0x2a7   : > { %v892_v19 = vmul.f32 %v891_v17, %v879_v8  ;;  %v893_v20 = vmul.f32 %v891_v17, %v880_v10  ;;  %v894_v21 = vmul.f32 %v891_v17, %v881_v11  ;;  %v895_v22 = vmul.f32 %v891_v17, %v882_v12 }
 0x2a8   : > { %v896_v23 = vmul.f32 %v891_v17, %v883_v13  ;;  %v897_v24 = vmul.f32 %v891_v17, %v884_v14  ;;  %v898_v25 = vmul.f32 %v891_v17, %v885_v15  ;;  %v899_v26 = vmul.f32 %v891_v17, %v886_v16 }
 0x2a9   : > { %v907_v27 = vadd.f32 %v3464_v18, %v892_v19  ;;  %v908_v28 = vadd.f32 %v3464_v18, %v893_v20  ;;  %v909_v30 = vadd.f32 %v3464_v18, %v894_v21  ;;  %v910_v31 = vadd.f32 %v3464_v18, %v895_v22 }
 0x2aa   : > { %v911_v34 = vadd.f32 %v3464_v18, %v896_v23  ;;  %v912_v35 = vadd.f32 %v3464_v18, %v897_v24  ;;  %v4697_v36 = vadd.f32 %v3464_v18, %v898_v25  ;;  %v4699_v37 = vadd.f32 %v3464_v18, %v899_v26 }
 0x2ab   : > { %v926_v40 = vrot.slane %v909_v30, 7  ;;  %v927_v41 = vrot.slane %v910_v31, 7  ;;  %v924_v42 = vrot.slane %v907_v27, 7  ;;  %v925_v43 = vrot.slane %v908_v28, 7 }
 0x2ac   : > { %v958_v44 = vrot.slane %v908_v28, 1  ;;  %v959_v45 = vrot.slane %v909_v30, 1  ;;  %v928_v46 = vrot.slane %v911_v34, 7  ;;  %v929_v47 = vrot.slane %v912_v35, 7 }
 0x2ad   : > { %v930_v48 = vrot.slane %v4697_v36, 7  ;;  %v931_v49 = vrot.slane %v4699_v37, 7  ;;  %v960_v50 = vrot.slane %v910_v31, 1  ;;  %v998_v51 = vmul.f32 %v4702_v38, %v907_v27 }
 0x2ae   : > { %v999_v52 = vmul.f32 %v4702_v38, %v908_v28  ;;  %v937_v53 = vsel %vm932_vm10, %v926_v40, %v927_v41  ;;  %v938_v54 = vsel %vm932_vm10, %v925_v43, %v926_v40  ;;  %v961_v57 = vrot.slane %v911_v34, 1 }
 0x2af   : > { %v940_v55 = vsel %vm932_vm10, %v931_v49, %v924_v42  ;;  %v962_v58 = vrot.slane %v912_v35, 1  ;;  %v939_v60 = vsel %vm932_vm10, %v924_v42, %v925_v43  ;;  %v957_v62 = vrot.slane %v907_v27, 1 }
 0x2b0   : > { %v941_v61 = vsel %vm916_vm9, %v940_v55, 0.0  ;;  %v964_v1 = vrot.slane %v4699_v37, 1  ;;  %v934_v2 = vsel %vm932_vm10, %v929_v47, %v930_v48  ;;  %v935_v3 = vsel %vm932_vm10, %v928_v46, %v929_v47 }
 0x2b1   : > { %v936_v4 = vsel %vm932_vm10, %v927_v41, %v928_v46  ;;  %v963_v5 = vrot.slane %v4697_v36, 1  ;;  %v933_v6 = vsel %vm932_vm10, %v930_v48, %v931_v49  ;;  %v968_v7 = vsel %vm965_vm12, %v961_v57, %v962_v58  ;;  %v3465_v46 = vld [vmem:[%s5492_s5] ss:$0 sm:$0xff] }
 0x2b2   : > { %v970_v56 = vsel %vm965_vm12, %v959_v45, %v960_v50  ;;  %v986_v8 = vmul.f32 %v4686_v59, %v941_v61  ;;  %v969_v10 = vsel %vm965_vm12, %v960_v50, %v961_v57  ;;  %v987_v11 = vmul.f32 %v4686_v59, %v939_v60 }
 0x2b3   : > { %v988_v12 = vmul.f32 %v4686_v59, %v938_v54  ;;  %v989_v13 = vmul.f32 %v4686_v59, %v937_v53  ;;  %v971_v14 = vsel %vm965_vm12, %v958_v44, %v959_v45  ;;  %v972_v15 = vsel %vm965_vm12, %v957_v62, %v958_v44 }
 0x2b4   : > { %v973_v16 = vsel %vm965_vm12, %v964_v1, %v957_v62  ;;  %v990_v17 = vmul.f32 %v4686_v59, %v936_v4  ;;  %v966_v18 = vsel %vm965_vm12, %v963_v5, %v964_v1  ;;  %v967_v19 = vsel %vm965_vm12, %v962_v58, %v963_v5 }
 0x2b5   : > { %v1000_v20 = vmul.f32 %v4702_v38, %v909_v30  ;;  %v1001_v21 = vmul.f32 %v4702_v38, %v910_v31  ;;  %v991_v22 = vmul.f32 %v4686_v59, %v935_v3  ;;  %v1002_v23 = vmul.f32 %v4702_v38, %v911_v34 }
 0x2b6   : > { %v1006_v24 = vadd.f32 %v998_v51, %v986_v8  ;;  %v1007_v25 = vadd.f32 %v999_v52, %v987_v11  ;;  %v981_v26 = vsel %vm956_vm11, %v973_v16, 0.0  ;;  %v992_v27 = vmul.f32 %v4686_v59, %v934_v2 }
 0x2b7   : > { %v1008_v28 = vadd.f32 %v1000_v20, %v988_v12  ;;  %v1009_v40 = vadd.f32 %v1001_v21, %v989_v13  ;;  %v1003_v41 = vmul.f32 %v4702_v38, %v912_v35  ;;  %v1010_v42 = vadd.f32 %v1002_v23, %v990_v17 }
 0x2b8   : > { %v1018_v30 = vmul.f32 %v4705_v39, %v972_v15  ;;  %v1019_v31 = vmul.f32 %v4705_v39, %v971_v14  ;;  %v993_v43 = vmul.f32 %v4686_v59, %v933_v6  ;;  %v1004_v34 = vmul.f32 %v4702_v38, %v4697_v36 }
 0x2b9   : > { %v1020_v44 = vmul.f32 %v4705_v39, %v970_v56  ;;  %v1021_v45 = vmul.f32 %v4705_v39, %v969_v10  ;;  %v1011_v35 = vadd.f32 %v1003_v41, %v991_v22  ;;  %v1022_v47 = vmul.f32 %v4705_v39, %v968_v7 }
 0x2ba   : > { %v1026_v48 = vadd.f32 %v1018_v30, %v1006_v24  ;;  %v1027_v49 = vadd.f32 %v1019_v31, %v1007_v25  ;;  %v1005_v59 = vmul.f32 %v4702_v38, %v4699_v37  ;;  %v1012_v50 = vadd.f32 %v1004_v34, %v992_v27 }
 0x2bb   : > { %v1028_v51 = vadd.f32 %v1020_v44, %v1008_v28  ;;  %v1029_v36 = vadd.f32 %v1021_v45, %v1009_v40  ;;  %v1023_v52 = vmul.f32 %v4705_v39, %v967_v19  ;;  %v1030_v53 = vadd.f32 %v1022_v47, %v1010_v42 }
 0x2bc   : > { %v1041_v54 = vadd.f32 %v3465_v46, %v1026_v48  ;;  %v1042_v55 = vadd.f32 %v3465_v46, %v1027_v49  ;;  %v1024_v57 = vmul.f32 %v4705_v39, %v966_v18  ;;  %v1057_v60 = vstv %s4752_s23  ;;  %s5531_s23 = sld [smem:[#allocation18_spill]] }
 0x2bd   : > { %v1043_v58 = vadd.f32 %v3465_v46, %v1028_v51  ;;  %v1013_v61 = vadd.f32 %v1005_v59, %v993_v43  ;;  %v1031_v62 = vadd.f32 %v1023_v52, %v1011_v35  ;;  %v1044_v1 = vadd.f32 %v3465_v46, %v1029_v36  ;;  %v4066_v51 = vld [vmem:[#allocation8 + $0x8] sm:$0xff]   ;;  %v4067_v36 = vld [vmem:[#allocation8 + $0x10] sm:$0xff]   ;;  %v4068_v52 = vld [vmem:[#allocation8 + $0x18] sm:$0xff]  }
 0x2be   : > { %v1025_v2 = vmul.f32 %v4705_v39, %v981_v26  ;;  %v1032_v3 = vadd.f32 %v1024_v57, %v1012_v50  ;;  %vm1049_vm13 = vcmp.gt.f32.partialorder %v1041_v54, 0.0  ;;  %vm1050_vm14 = vcmp.gt.f32.partialorder %v1042_v55, 0.0  ;;  %v4065_v50 = vld [vmem:[#allocation8] sm:$0xff]  }
 0x2bf   : > { %v1045_v37 = vadd.f32 %v3465_v46, %v1030_v53  ;;  %v1058_v38 = vmul.f32 %v1057_v60, %v1041_v54  ;;  %v1059_v4 = vmul.f32 %v1057_v60, %v1042_v55  ;;  %vm1051_vm15 = vcmp.gt.f32.partialorder %v1043_v58, 0.0  ;;  %3732 = vmatprep.subr.bf16.mxu0 %v4065_v50  ;;  %v4069_v53 = vld [vmem:[#allocation8 + $0x20] sm:$0xff]  }
 0x2c0   : > { %v1060_v5 = vmul.f32 %v1057_v60, %v1043_v58  ;;  %v1046_v6 = vadd.f32 %v3465_v46, %v1031_v62  ;;  %v1061_v7 = vmul.f32 %v1057_v60, %v1044_v1  ;;  %v1033_v10 = vadd.f32 %v1025_v2, %v1013_v61  ;;  %3733 = vmatpush3.bf16.msra.mxu0 %v4065_v50 }
 0x2c1   : > { %v4783_v56 = vsel %vm1049_vm13, %v1041_v54, %v1058_v38  ;;  %v4785_v8 = vsel %vm1050_vm14, %v1042_v55, %v1059_v4  ;;  %v1047_v11 = vadd.f32 %v3465_v46, %v1032_v3  ;;  %vm1052_vm0 = vcmp.gt.f32.partialorder %v1044_v1, 0.0  ;;  %3734 = vmatprep.subr.bf16.mxu0 %v4066_v51  ;;  %v4070_v54 = vld [vmem:[#allocation8 + $0x28] sm:$0xff]   ;;  %v4071_v3 = vld [vmem:[#allocation8 + $0x30] sm:$0xff]  }
 0x2c2   : > { %v1062_v12 = vmul.f32 %v1057_v60, %v1045_v37  ;;  %v4787_v13 = vsel %vm1051_vm15, %v1043_v58, %v1060_v5  ;;  %v1074_v39 = vadd.f32 %v4785_v8, %v4783_v56  ;;  %v1091_v14 = vmul.f32 %v4783_v56, %v4783_v56 }
 0x2c3   : > { %vm1053_vm1 = vcmp.gt.f32.partialorder %v1045_v37, 0.0  ;;  %v1092_v15 = vmul.f32 %v4785_v8, %v4785_v8  ;;  %v1063_v16 = vmul.f32 %v1057_v60, %v1046_v6  ;;  %v4795_v17 = vsel %vm1052_vm0, %v1044_v1, %v1061_v7 }
 0x2c4   : > { %v1075_v18 = vadd.f32 %v1074_v39, %v4787_v13  ;;  %v1048_v19 = vadd.f32 %v3465_v46, %v1033_v10  ;;  %vm1054_vm2 = vcmp.gt.f32.partialorder %v1046_v6, 0.0  ;;  %v1093_v20 = vmul.f32 %v4787_v13, %v4787_v13  ;;  %3735 = vmatpush3.bf16.msra.mxu0 %v4066_v51  ;;  %v4075_v39 = vld [vmem:[#allocation6 + $0x90] sm:$0xff]  }
 0x2c5   : > { %v1099_v21 = vadd.f32 %v1092_v15, %v1091_v14  ;;  %v1064_v22 = vmul.f32 %v1057_v60, %v1047_v11  ;;  %v4800_v23 = vsel %vm1053_vm1, %v1045_v37, %v1062_v12  ;;  %vm1055_vm3 = vcmp.gt.f32.partialorder %v1047_v11, 0.0  ;;  %3736 = vmatprep.subr.bf16.mxu0 %v4067_v36  ;;  %v4072_v37 = vld [vmem:[#allocation8 + $0x38] sm:$0xff]   ;;  %v4074_v12 = vld [vmem:[#allocation6 + $0x88] sm:$0xff]   ;;  %v4077_v15 = vld [vmem:[#allocation6 + $0xa0] sm:$0xff]  }
 0x2c6   : > { %v1076_v24 = vadd.f32 %v1075_v18, %v4795_v17  ;;  %v1094_v25 = vmul.f32 %v4795_v17, %v4795_v17  ;;  %v4805_v27 = vsel %vm1054_vm2, %v1046_v6, %v1063_v16  ;;  %v1065_v40 = vmul.f32 %v1057_v60, %v1048_v19  ;;  %v4076_v14 = vld [vmem:[#allocation6 + $0x98] sm:$0xff]   ;;  %v4078_v16 = vld [vmem:[#allocation6 + $0xa8] sm:$0xff]  }
 0x2c7   : > { %v1100_v26 = vadd.f32 %v1099_v21, %v1093_v20  ;;  %v1095_v41 = vmul.f32 %v4800_v23, %v4800_v23  ;;  %vm1056_vm4 = vcmp.gt.f32.partialorder %v1048_v19, 0.0  ;;  %v4810_v30 = vsel %vm1055_vm3, %v1047_v11, %v1064_v22  ;;  %v4073_v11 = vld [vmem:[#allocation6 + $0x80] sm:$0xff]  }
 0x2c8   : > { %v1077_v28 = vadd.f32 %v1076_v24, %v4800_v23  ;;  %v1096_v43 = vmul.f32 %v4805_v27, %v4805_v27  ;;  %v4816_v45 = vsel %vm1056_vm4, %v1048_v19, %v1065_v40  ;;  %v1097_v46 = vmul.f32 %v4810_v30, %v4810_v30  ;;  %3737 = vmatpush3.bf16.msra.mxu0 %v4067_v36 }
 0x2c9   : > { %v1101_v42 = vadd.f32 %v1100_v26, %v1094_v25  ;;  %v1098_v49 = vmul.f32 %v4816_v45, %v4816_v45  ;;  %3738 = vmatprep.subr.bf16.mxu0 %v4068_v52  ;;  %3756 = vmatprep.subr.bf16.mxu1 %v4073_v11  ;;  %v3466_v26 = vld [vmem:[%s5531_s23] ss:$0 sm:$0xff]  ;;  %vm1603_vm13 = vcmp.lt.s32.totalorder %v4625_v32, 2  ;;  %vm1587_vm14 = vcmp.ge.s32.totalorder %v4625_v32, 2 }
 0x2ca   : > { %v1078_v31 = vadd.f32 %v1077_v28, %v4805_v27  ;;  %3757 = vmatpush3.bf16.msra.mxu1 %v4073_v11  ;;  %vm1636_vm15 = vcmp.lt.s32.totalorder %v4625_v32, 6  ;;  %vm1627_vm0 = vcmp.lt.s32.totalorder %v4692_v9, 62 }
 0x2cb   : > { %v1102_v34 = vadd.f32 %v1101_v42, %v1095_v41  ;;  %3758 = vmatprep.subr.bf16.mxu1 %v4074_v12 }
 0x2cc   : > { %v1079_v44 = vadd.f32 %v1078_v31, %v4810_v30  ;;  %3739 = vmatpush3.bf16.msra.mxu0 %v4068_v52 }
 0x2cd   : > { %v1103_v35 = vadd.f32 %v1102_v34, %v1096_v43  ;;  %3740 = vmatprep.subr.bf16.mxu0 %v4069_v53 }
 0x2ce   : > { %v1080_v47 = vadd.f32 %v1079_v44, %v4816_v45  ;;  %3759 = vmatpush3.bf16.msra.mxu1 %v4074_v12  ;;  %v4137_v12 = vld [vmem:[%s4595_s30 + $0x18] sm:$0xff] }
 0x2cf   : > { %v1104_v48 = vadd.f32 %v1103_v35, %v1097_v46  ;;  %3760 = vmatprep.subr.bf16.mxu1 %v4075_v39 }
 0x2d0   : > { %1081 = vadd.xlane.f32.xlu1 %v1080_v47  ;;  %3741 = vmatpush3.bf16.msra.mxu0 %v4069_v53 }
 0x2d1   : > { %v1105_v59 = vadd.f32 %v1104_v48, %v1098_v49  ;;  %3742 = vmatprep.subr.bf16.mxu0 %v4070_v54 }
 0x2d2   : > { %3761 = vmatpush3.bf16.msra.mxu1 %v4075_v39 }
 0x2d3   : > { %3762 = vmatprep.subr.bf16.mxu1 %v4076_v14 }
 0x2d4   : > { %1106 = vadd.xlane.f32.xlu1 %v1105_v59  ;;  %3743 = vmatpush3.bf16.msra.mxu0 %v4070_v54 }
 0x2d5   : > { %3744 = vmatprep.subr.bf16.mxu0 %v4071_v3 }
 0x2d6   : > { %3763 = vmatpush3.bf16.msra.mxu1 %v4076_v14  ;;  %v4138_v14 = vld [vmem:[%s4595_s30] sm:$0xff] }
 0x2d7   : > { %3764 = vmatprep.subr.bf16.mxu1 %v4077_v15 }
 0x2d8   : > { %3745 = vmatpush3.bf16.msra.mxu0 %v4071_v3 }
 0x2d9   : > { %3746 = vmatprep.subr.bf16.mxu0 %v4072_v37 }
 0x2da   : > { %3765 = vmatpush3.bf16.msra.mxu1 %v4077_v15 }
 0x2db   : > { %3766 = vmatprep.subr.bf16.mxu1 %v4078_v16 }
 0x2dc   : > { %3747 = vmatpush3.bf16.msra.mxu0 %v4072_v37 }
 0x2de   : > { %3767 = vmatpush3.bf16.msra.mxu1 %v4078_v16  ;;  %v4139_v16 = vld [vmem:[%s4595_s30 + $0x8] sm:$0xff] }
 0x35d   : > { %v1082_v55 = vpop.xlane.xlu1 %1081 }
 0x35e   : > { %v1083_v57 = vrot.slane %v1082_v55, 4 }
 0x360   : > { %v1084_v58 = vadd.f32 %v1083_v57, %v1082_v55 }
 0x361   : > { %v1107_v60 = vpop.xlane.xlu1 %1106 }
 0x362   : > { %v1085_v61 = vrot.slane %v1084_v58, 2  ;;  %v1108_v62 = vrot.slane %v1107_v60, 4 }
 0x364   : > { %v1109_v1 = vadd.f32 %v1108_v62, %v1107_v60  ;;  %v1086_v2 = vadd.f32 %v1085_v61, %v1084_v58 }
 0x366   : > { %v1110_v38 = vrot.slane %v1109_v1, 2  ;;  %v1087_v4 = vrot.slane %v1086_v2, 1 }
 0x368   : > { %v1088_v5 = vadd.f32 %v1087_v4, %v1086_v2  ;;  %v1111_v6 = vadd.f32 %v1110_v38, %v1109_v1  ;;  %v4079_v1 = vld [vmem:[#allocation6 + $0xb0] sm:$0xff]   ;;  %v4080_v2 = vld [vmem:[#allocation6 + $0xb8] sm:$0xff]  }
 0x369   : > { %3768 = vmatprep.subr.bf16.mxu1 %v4079_v1 }
 0x36a   : > { %3922 = vpush %v1088_v5  ;;  %v1112_v7 = vrot.slane %v1111_v6, 1  ;;  %3769 = vmatpush3.bf16.msra.mxu1 %v4079_v1 }
 0x36b   : > { %3770 = vmatprep.subr.bf16.mxu1 %v4080_v2 }
 0x36c   : > { %v1113_v10 = vadd.f32 %v1112_v7, %v1111_v6 }
 0x36e   : > { %3924 = vpush %v1113_v10  ;;  %3771 = vmatpush3.bf16.msra.mxu1 %v4080_v2 }
 0x39b   : > { %s3923_s14 = spop %3922 }
 0x39c   : > { %s1090_s16 = smul.f32 0.00048828125, %s3923_s14 }
 0x39e   : > { %s1116_s13 = smul.f32 %s1090_s16, %s1090_s16  ;;  %v1119_v20 = vstv %s1090_s16  ;;  %s5532_s16 = sld [smem:[#allocation19_spill]] }
 0x39f   : > { %s3925_s10 = spop %3924  ;;  %v1120_v21 = vsub.f32 %v4783_v56, %v1119_v20  ;;  %v1121_v22 = vsub.f32 %v4785_v8, %v1119_v20  ;;  %v1122_v24 = vsub.f32 %v4787_v13, %v1119_v20  ;;  %v1123_v25 = vsub.f32 %v4795_v17, %v1119_v20 }
 0x3a0   : > { %s1115_s11 = smul.f32 0.00048828125, %s3925_s10  ;;  %v1124_v28 = vsub.f32 %v4800_v23, %v1119_v20  ;;  %v1125_v40 = vsub.f32 %v4805_v27, %v1119_v20  ;;  %v1126_v41 = vsub.f32 %v4810_v30, %v1119_v20  ;;  %v1127_v44 = vsub.f32 %v4816_v45, %v1119_v20 }
 0x3a1   : > { %v1134_v42 = vmul.f32 %v3466_v26, %v1120_v21  ;;  %v1135_v31 = vmul.f32 %v3466_v26, %v1121_v22  ;;  %v1136_v56 = vmul.f32 %v3466_v26, %v1122_v24  ;;  %v1137_v43 = vmul.f32 %v3466_v26, %v1123_v25 }
 0x3a2   : > { %s1117_s12 = ssub.f32 %s1115_s11, %s1116_s13  ;;  %v1138_v17 = vmul.f32 %v3466_v26, %v1124_v28  ;;  %v1139_v34 = vmul.f32 %v3466_v26, %v1125_v40  ;;  %v1140_v52 = vmul.f32 %v3466_v26, %v1126_v41  ;;  %v1141_v53 = vmul.f32 %v3466_v26, %v1127_v44  ;;  %s5533_s11 = sld [smem:[#allocation17_spill]] }
 0x3a4   : > { %s1142_s22 = sadd.f32 1e-05, %s1117_s12  ;;  %v3467_v13 = vld [vmem:[%s5532_s16] ss:$0 sm:$0xff]  ;;  %s3477_s12 = sld [smem:[#allocation9 + $0x80]] }
 0x3a6   : > { %v1143_v18 = vstv %s1142_s22 }
 0x3a7   : > { %4123 = vrsqrt.f32 %v1143_v18 }
 0x3a8   : > { %v3468_v3 = vld [vmem:[%s5533_s11] ss:$0 sm:$0xff] }
 0x3b1   : > { %v4124_v19 = vpop.eup %4123 }
 0x3b2   : > { %3926 = vpush %v4124_v19  ;;  %v4140_v19 = vld [vmem:[%s4595_s30 + $0x10] sm:$0xff] }
 0x3e3   : > { %s3927_s25 = spop %3926 }
 0x3e4   : > { %v1146_v8 = vstv %s3927_s25 }
 0x3e5   : > { %v1147_v46 = vmul.f32 %v1146_v8, %v1134_v42  ;;  %v1148_v23 = vmul.f32 %v1146_v8, %v1135_v31  ;;  %v1149_v35 = vmul.f32 %v1146_v8, %v1136_v56  ;;  %v1150_v27 = vmul.f32 %v1146_v8, %v1137_v43  ;;  %v4141_v43 = vld [vmem:[%s4595_s30 + $0x20] sm:$0xff] }
 0x3e6   : > { %v1151_v47 = vmul.f32 %v1146_v8, %v1138_v17  ;;  %v1152_v30 = vmul.f32 %v1146_v8, %v1139_v34  ;;  %v1153_v57 = vmul.f32 %v1146_v8, %v1140_v52  ;;  %v1154_v58 = vmul.f32 %v1146_v8, %v1141_v53  ;;  %v4143_v34 = vld [vmem:[%s4595_s30 + $0x30] sm:$0xff] }
 0x3e7   : > { %v1162_v48 = vadd.f32 %v3467_v13, %v1147_v46  ;;  %v1163_v49 = vadd.f32 %v3467_v13, %v1148_v23  ;;  %v1164_v59 = vadd.f32 %v3467_v13, %v1149_v35  ;;  %v1165_v50 = vadd.f32 %v3467_v13, %v1150_v27 }
 0x3e8   : > { %v1166_v51 = vadd.f32 %v3467_v13, %v1151_v47  ;;  %v1167_v36 = vadd.f32 %v3467_v13, %v1152_v30  ;;  %v1168_v60 = vadd.f32 %v3467_v13, %v1153_v57  ;;  %v1169_v61 = vadd.f32 %v3467_v13, %v1154_v58  ;;  %v4142_v13 = vld [vmem:[%s4595_s30 + $0x28] sm:$0xff] }
 0x3e9   : > { %v1170_v54 = vpack.c.bf16 %v1163_v49, %v1162_v48  ;;  %v1171_v55 = vpack.c.bf16 %v1165_v50, %v1164_v59  ;;  %v1470_v47 = vstv %s3477_s12 }
 0x3ea   : > { %v1172_v45 = vpack.c.bf16 %v1167_v36, %v1166_v51  ;;  %v1173_v62 = vpack.c.bf16 %v1169_v61, %v1168_v60 }
 0x3eb   : > { %3748 = vmatprep.mubr.bf16.mxu0 %v1170_v54 }
 0x3ec   : > { %3749 = vmatmul.mubr.bf16.vlgmr.msra.gmra.mrb[4].mxu0 %v1171_v55 }
 0x3ed   : > { %3752 = vmatprep.mubr.bf16.mxu0 %v1172_v45 }
 0x3f4   : > { %3753 = vmatmul.mubr.bf16.gmra.mrb[8].mxu0 %v1173_v62 }
 0x4bf   : > { %v3750_v37 = vpop.f32.mrb[4].mxu0 }
 0x4c0   : > { %v1279_v38 = vpop.f32.mrb[5].mxu0  ;;  %v1288_v6 = vadd.f32 %v3750_v37, %v3468_v3 }
 0x4c1   : > { %v1280_v4 = vadd.f32 %v3468_v3, %v1279_v38  ;;  %v3751_v5 = vpop.f32.mrb[6].mxu0 }
 0x4c2   : > { %v1291_v7 = vadd.f32 %v3751_v5, %v3468_v3  ;;  %v1282_v10 = vpop.f32.mrb[7].mxu0  ;;  %v4850_v20 = vadd.f32 %v4140_v19, %v1288_v6 }
 0x4c3   : > { %v1283_v11 = vadd.f32 %v3468_v3, %v1282_v10  ;;  %v4844_v15 = vadd.f32 %v4138_v14, %v1280_v4 }
 0x4c4   : > { %v4841_v39 = vadd.f32 %v4137_v12, %v1291_v7 }
 0x4c5   : > { %v4847_v18 = vadd.f32 %v4139_v16, %v1283_v11 }
 0x4c6   : > { %v1338_v24 = vpack.c.bf16 %v4841_v39, %v4850_v20 }
 0x4c7   : > { %v3754_v21 = vpop.f32.mrb[8].mxu0  ;;  %v1337_v22 = vpack.c.bf16 %v4847_v18, %v4844_v15 }
 0x4c8   : > { %v1295_v25 = vpop.f32.mrb[9].mxu0  ;;  %v1304_v40 = vadd.f32 %v3754_v21, %v3468_v3 }
 0x4c9   : > { %v1296_v26 = vadd.f32 %v3468_v3, %v1295_v25  ;;  %v3755_v28 = vpop.f32.mrb[10].mxu0  ;;  %3772 = vmatprep.mubr.bf16.mxu1 %v1337_v22 }
 0x4ca   : > { %v1307_v41 = vadd.f32 %v3755_v28, %v3468_v3  ;;  %v1298_v42 = vpop.f32.mrb[11].mxu0  ;;  %3773 = vmatmul.mubr.bf16.vlgmr.msra.gmra.mrb[8].mxu1 %v1338_v24  ;;  %v4866_v44 = vadd.f32 %v4143_v34, %v1304_v40 }
 0x4cb   : > { %v1299_v31 = vadd.f32 %v3468_v3, %v1298_v42  ;;  %v4860_v8 = vadd.f32 %v4141_v43, %v1296_v26 }
 0x4cc   : > { %v4857_v56 = vadd.f32 %v1307_v41, %v4622_v29  ;;  %v3480_v29 = vld [vmem:[%s5490_s3 + $0x1] ss:$0 sm:$0xff] }
 0x4cd   : > { %v4863_v17 = vadd.f32 %v4142_v13, %v1299_v31 }
 0x4ce   : > { %v1340_v23 = vpack.c.bf16 %v4857_v56, %v4866_v44 }
 0x4cf   : > { %v1339_v46 = vpack.c.bf16 %v4863_v17, %v4860_v8 }
 0x4d1   : > { %3776 = vmatprep.mubr.bf16.mxu1 %v1339_v46 }
 0x4d2   : > { %3777 = vmatmul.mubr.bf16.gmra.mrb[12].mxu1 %v1340_v23 }
 0x59d   : > { %v3774_v35 = vpop.f32.mrb[8].mxu1 }
 0x59e   : > { %v1440_v27 = vadd.f32 %v3774_v35, %v3480_v29  ;;  %v1431_v30 = vpop.f32.mrb[9].mxu1 }
 0x59f   : > { %v1432_v48 = vadd.f32 %v3480_v29, %v1431_v30  ;;  %v3775_v49 = vpop.f32.mrb[10].mxu1 }
 0x5a0   : > { %v1443_v59 = vadd.f32 %v3775_v49, %v3480_v29  ;;  %v1434_v50 = vpop.f32.mrb[11].mxu1  ;;  %v1473_v51 = vmul.f32 %v1470_v47, %v1440_v27  ;;  %vm1464_vm6 = vcmp.gt.f32.partialorder %v1440_v27, 0.0 }
 0x5a1   : > { %vm1462_vm5 = vcmp.gt.f32.partialorder %v1432_v48, 0.0  ;;  %v1471_v36 = vmul.f32 %v1470_v47, %v1432_v48  ;;  %v1435_v52 = vadd.f32 %v3480_v29, %v1434_v50 }
 0x5a2   : > { %v1474_v55 = vmul.f32 %v1470_v47, %v1443_v59  ;;  %v4877_v57 = vsel %vm1464_vm6, %v1440_v27, %v1473_v51  ;;  %vm1465_vm8 = vcmp.gt.f32.partialorder %v1443_v59, 0.0 }
 0x5a3   : > { %v4875_v53 = vsel %vm1462_vm5, %v1432_v48, %v1471_v36  ;;  %vm1463_vm7 = vcmp.gt.f32.partialorder %v1435_v52, 0.0  ;;  %v1472_v54 = vmul.f32 %v1470_v47, %v1435_v52  ;;  %v1506_v38 = vmul.f32 %v4877_v57, %v4877_v57 }
 0x5a4   : > { %v1504_v60 = vmul.f32 %v4875_v53, %v4875_v53  ;;  %v4889_v4 = vsel %vm1465_vm8, %v1443_v59, %v1474_v55 }
 0x5a5   : > { %v4879_v58 = vsel %vm1463_vm7, %v1435_v52, %v1472_v54  ;;  %v3778_v45 = vpop.f32.mrb[12].mxu1  ;;  %v1507_v21 = vmul.f32 %v4889_v4, %v4889_v4 }
 0x5a6   : > { %v1487_v61 = vadd.f32 %v4879_v58, %v4875_v53  ;;  %v1505_v62 = vmul.f32 %v4879_v58, %v4879_v58  ;;  %v1456_v1 = vadd.f32 %v3778_v45, %v3480_v29  ;;  %v1447_v2 = vpop.f32.mrb[13].mxu1 }
 0x5a7   : > { %v1448_v3 = vadd.f32 %v3480_v29, %v1447_v2  ;;  %v3779_v37 = vpop.f32.mrb[14].mxu1 }
 0x5a8   : > { %v1488_v5 = vadd.f32 %v1487_v61, %v4877_v57  ;;  %v1512_v6 = vadd.f32 %v1505_v62, %v1504_v60  ;;  %v1450_v7 = vpop.f32.mrb[15].mxu1  ;;  %v1459_v11 = vadd.f32 %v3779_v37, %v3480_v29  ;;  %v1477_v16 = vmul.f32 %v1470_v47, %v1456_v1 }
 0x5a9   : > { %vm1466_vm9 = vcmp.gt.f32.partialorder %v1448_v3, 0.0  ;;  %v1475_v10 = vmul.f32 %v1470_v47, %v1448_v3  ;;  %v1451_v12 = vadd.f32 %v3480_v29, %v1450_v7  ;;  %vm1468_vm10 = vcmp.gt.f32.partialorder %v1456_v1, 0.0 }
 0x5aa   : > { %v1513_v14 = vadd.f32 %v1512_v6, %v1506_v38  ;;  %v1489_v19 = vadd.f32 %v1488_v5, %v4889_v4  ;;  %v1478_v26 = vmul.f32 %v1470_v47, %v1459_v11  ;;  %vm1469_vm12 = vcmp.gt.f32.partialorder %v1459_v11, 0.0  ;;  %v3493_v5 = vld [vmem:[%s5491_s4 + $0x4] sm:$0x7] }
 0x5ab   : > { %v4895_v22 = vsel %vm1466_vm9, %v1448_v3, %v1475_v10  ;;  %vm1467_vm11 = vcmp.gt.f32.partialorder %v1451_v12, 0.0  ;;  %v1476_v28 = vmul.f32 %v1470_v47, %v1451_v12  ;;  %v4900_v41 = vsel %vm1468_vm10, %v1456_v1, %v1477_v16 }
 0x5ac   : > { %v1490_v24 = vadd.f32 %v1489_v19, %v4895_v22  ;;  %v1508_v25 = vmul.f32 %v4895_v22, %v4895_v22  ;;  %v1514_v40 = vadd.f32 %v1513_v14, %v1507_v21  ;;  %v1486_v34 = vsel %vm1469_vm12, %v1459_v11, %v1478_v26 }
 0x5ad   : > { %v4902_v42 = vsel %vm1467_vm11, %v1451_v12, %v1476_v28  ;;  %v1510_v23 = vmul.f32 %v4900_v41, %v4900_v41  ;;  %v1511_v27 = vmul.f32 %v1486_v34, %v1486_v34  ;;  %v3490_v12 = vld [vmem:[%s5495_s8 + $0x1] ss:$0 sm:$0xff]  ;;  %v4924_v19 = vrot.slane %v3493_v5, %v4628_v33 }
 0x5ae   : > { %v1509_v31 = vmul.f32 %v4902_v42, %v4902_v42  ;;  %v1491_v43 = vadd.f32 %v1490_v24, %v4902_v42  ;;  %v1515_v13 = vadd.f32 %v1514_v40, %v1508_v25 }
 0x5b0   : > { %v1492_v46 = vadd.f32 %v1491_v43, %v4900_v41  ;;  %v1516_v29 = vadd.f32 %v1515_v13, %v1509_v31 }
 0x5b2   : > { %v1493_v35 = vadd.f32 %v1492_v46, %v1486_v34  ;;  %v1517_v47 = vadd.f32 %v1516_v29, %v1510_v23 }
 0x5b4   : > { %1494 = vadd.xlane.f32.xlu0 %v1493_v35  ;;  %v1518_v30 = vadd.f32 %v1517_v47, %v1511_v27 }
 0x5b6   : > { %1519 = vadd.xlane.f32.xlu1 %v1518_v30 }
 0x641   : > { %v1495_v48 = vpop.xlane.xlu0 %1494 }
 0x642   : > { %v1496_v49 = vrot.slane %v1495_v48, 4 }
 0x643   : > { %v1520_v59 = vpop.xlane.xlu1 %1519 }
 0x644   : > { %v1497_v50 = vadd.f32 %v1496_v49, %v1495_v48  ;;  %v1521_v51 = vrot.slane %v1520_v59, 4 }
 0x646   : > { %v1498_v36 = vrot.slane %v1497_v50, 2  ;;  %v1522_v52 = vadd.f32 %v1521_v51, %v1520_v59 }
 0x648   : > { %v1523_v54 = vrot.slane %v1522_v52, 2  ;;  %v1499_v55 = vadd.f32 %v1498_v36, %v1497_v50 }
 0x64a   : > { %v1500_v45 = vrot.slane %v1499_v55, 1  ;;  %v1524_v60 = vadd.f32 %v1523_v54, %v1522_v52 }
 0x64c   : > { %v1501_v61 = vadd.f32 %v1500_v45, %v1499_v55  ;;  %v1525_v62 = vrot.slane %v1524_v60, 1 }
 0x64e   : > { %3928 = vpush %v1501_v61  ;;  %v1526_v1 = vadd.f32 %v1525_v62, %v1524_v60 }
 0x650   : > { %3930 = vpush %v1526_v1 }
 0x67f   : > { %s3929_s30 = spop %3928 }
 0x680   : > { %s1503_s21 = smul.f32 0.00048828125, %s3929_s30 }
 0x681   : > { %s3931_s25 = spop %3930 }
 0x682   : > { %s1529_s20 = smul.f32 %s1503_s21, %s1503_s21  ;;  %v1533_v37 = vstv %s1503_s21 }
 0x683   : > { %s1528_s14 = smul.f32 0.00048828125, %s3931_s25  ;;  %v1534_v38 = vsub.f32 %v4875_v53, %v1533_v37  ;;  %v1535_v6 = vsub.f32 %v4879_v58, %v1533_v37  ;;  %v1536_v7 = vsub.f32 %v4877_v57, %v1533_v37  ;;  %v1537_v10 = vsub.f32 %v4889_v4, %v1533_v37 }
 0x684   : > { %v1538_v11 = vsub.f32 %v4895_v22, %v1533_v37  ;;  %v1539_v14 = vsub.f32 %v4902_v42, %v1533_v37  ;;  %v1540_v53 = vsub.f32 %v4900_v41, %v1533_v37  ;;  %v1541_v16 = vsub.f32 %v1486_v34, %v1533_v37  ;;  %v3492_v42 = vld [vmem:[%s5496_s9 + $0x1] ss:$0 sm:$0xff] }
 0x685   : > { %s1530_s13 = ssub.f32 %s1528_s14, %s1529_s20  ;;  %v4927_v58 = vrot.slane %v3493_v5, %v4683_v0  ;;  %v4930_v57 = vrot.slane %v3493_v5, %v4689_v63  ;;  %v1548_v4 = vmul.f32 %v3490_v12, %v1534_v38  ;;  %v1549_v21 = vmul.f32 %v3490_v12, %v1535_v6  ;;  %s4985_s14 = sld [smem:[#allocation9 + $0x81]] }
 0x686   : > { %v1550_v22 = vmul.f32 %v3490_v12, %v1536_v7  ;;  %v1551_v24 = vmul.f32 %v3490_v12, %v1537_v10  ;;  %v1552_v25 = vmul.f32 %v3490_v12, %v1538_v11  ;;  %v1553_v26 = vmul.f32 %v3490_v12, %v1539_v14 }
 0x687   : > { %s1556_s10 = sadd.f32 1e-05, %s1530_s13  ;;  %v1554_v28 = vmul.f32 %v3490_v12, %v1540_v53  ;;  %v1555_v40 = vmul.f32 %v3490_v12, %v1541_v16 }
 0x689   : > { %v1557_v2 = vstv %s1556_s10 }
 0x68a   : > { %4125 = vrsqrt.f32 %v1557_v2 }
 0x694   : > { %v4126_v3 = vpop.eup %4125 }
 0x695   : > { %3932 = vpush %v4126_v3 }
 0x6c6   : > { %s3933_s21 = spop %3932 }
 0x6c7   : > { %v1560_v41 = vstv %s3933_s21 }
 0x6c8   : > { %v1561_v31 = vmul.f32 %v1560_v41, %v1548_v4  ;;  %v1562_v43 = vmul.f32 %v1560_v41, %v1549_v21  ;;  %v1563_v13 = vmul.f32 %v1560_v41, %v1550_v22  ;;  %v1564_v34 = vmul.f32 %v1560_v41, %v1551_v24 }
 0x6c9   : > { %v1565_v46 = vmul.f32 %v1560_v41, %v1552_v25  ;;  %v1566_v23 = vmul.f32 %v1560_v41, %v1553_v26  ;;  %v1567_v29 = vmul.f32 %v1560_v41, %v1554_v28  ;;  %v1568_v35 = vmul.f32 %v1560_v41, %v1555_v40 }
 0x6ca   : > { %v1577_v27 = vadd.f32 %v3492_v42, %v1561_v31  ;;  %v1578_v47 = vadd.f32 %v3492_v42, %v1562_v43  ;;  %v1579_v30 = vadd.f32 %v3492_v42, %v1563_v13  ;;  %v1580_v48 = vadd.f32 %v3492_v42, %v1564_v34 }
 0x6cb   : > { %v1581_v49 = vadd.f32 %v3492_v42, %v1565_v46  ;;  %v1582_v59 = vadd.f32 %v3492_v42, %v1566_v23  ;;  %v1583_v50 = vadd.f32 %v3492_v42, %v1567_v29  ;;  %v1584_v51 = vadd.f32 %v3492_v42, %v1568_v35 }
 0x6cc   : > { %v1595_v36 = vrot.slane %v1577_v27, 6  ;;  %v1596_v52 = vrot.slane %v1578_v47, 6  ;;  %v1597_v54 = vrot.slane %v1579_v30, 6  ;;  %v1598_v55 = vrot.slane %v1580_v48, 6 }
 0x6cd   : > { %v1599_v45 = vrot.slane %v1581_v49, 6  ;;  %v1629_v60 = vrot.slane %v1578_v47, 2  ;;  %v1630_v61 = vrot.slane %v1579_v30, 2  ;;  %v1631_v62 = vrot.slane %v1580_v48, 2 }
 0x6ce   : > { %v1632_v1 = vrot.slane %v1581_v49, 2  ;;  %v1669_v2 = vmul.f32 %v4927_v58, %v1577_v27  ;;  %v1670_v3 = vmul.f32 %v4927_v58, %v1578_v47  ;;  %v1671_v37 = vmul.f32 %v4927_v58, %v1579_v30 }
 0x6cf   : > { %v1600_v38 = vrot.slane %v1582_v59, 6  ;;  %v1601_v5 = vrot.slane %v1583_v50, 6  ;;  %v1602_v6 = vrot.slane %v1584_v51, 6  ;;  %v1607_v7 = vsel %vm1603_vm13, %v1598_v55, %v1599_v45 }
 0x6d0   : > { %v1608_v10 = vsel %vm1603_vm13, %v1597_v54, %v1598_v55  ;;  %v1609_v11 = vsel %vm1603_vm13, %v1596_v52, %v1597_v54  ;;  %v1610_v12 = vsel %vm1603_vm13, %v1595_v36, %v1596_v52  ;;  %v1628_v14 = vrot.slane %v1577_v27, 2 }
 0x6d1   : > { %v1604_v53 = vsel %vm1603_vm13, %v1601_v5, %v1602_v6  ;;  %v1605_v16 = vsel %vm1603_vm13, %v1600_v38, %v1601_v5  ;;  %v1606_v4 = vsel %vm1603_vm13, %v1599_v45, %v1600_v38  ;;  %v1611_v21 = vsel %vm1603_vm13, %v1602_v6, %v1595_v36 }
 0x6d2   : > { %v1612_v22 = vsel %vm1587_vm14, %v1611_v21, 0.0  ;;  %v1633_v24 = vrot.slane %v1582_v59, 2  ;;  %v1634_v25 = vrot.slane %v1583_v50, 2  ;;  %v1635_v26 = vrot.slane %v1584_v51, 2 }
 0x6d3   : > { %v1640_v28 = vsel %vm1636_vm15, %v1631_v62, %v1632_v1  ;;  %v1641_v40 = vsel %vm1636_vm15, %v1630_v61, %v1631_v62  ;;  %v1642_v41 = vsel %vm1636_vm15, %v1629_v60, %v1630_v61  ;;  %v1643_v42 = vsel %vm1636_vm15, %v1628_v14, %v1629_v60 }
 0x6d4   : > { %v1637_v31 = vsel %vm1636_vm15, %v1634_v25, %v1635_v26  ;;  %v1638_v43 = vsel %vm1636_vm15, %v1633_v24, %v1634_v25  ;;  %v1639_v13 = vsel %vm1636_vm15, %v1632_v1, %v1633_v24  ;;  %v1644_v34 = vsel %vm1636_vm15, %v1635_v26, %v1628_v14 }
 0x6d5   : > { %v1652_v46 = vsel %vm1627_vm0, %v1644_v34, 0.0  ;;  %v1657_v23 = vmul.f32 %v4924_v19, %v1612_v22  ;;  %v1658_v29 = vmul.f32 %v4924_v19, %v1610_v12  ;;  %v1659_v35 = vmul.f32 %v4924_v19, %v1609_v11 }
 0x6d6   : > { %v1660_v27 = vmul.f32 %v4924_v19, %v1608_v10  ;;  %v1661_v47 = vmul.f32 %v4924_v19, %v1607_v7  ;;  %v1662_v30 = vmul.f32 %v4924_v19, %v1606_v4  ;;  %v1663_v36 = vmul.f32 %v4924_v19, %v1605_v16 }
 0x6d7   : > { %v1664_v52 = vmul.f32 %v4924_v19, %v1604_v53  ;;  %v1672_v54 = vmul.f32 %v4927_v58, %v1580_v48  ;;  %v1673_v55 = vmul.f32 %v4927_v58, %v1581_v49  ;;  %v1674_v45 = vmul.f32 %v4927_v58, %v1582_v59 }
 0x6d8   : > { %v1675_v60 = vmul.f32 %v4927_v58, %v1583_v50  ;;  %v1676_v61 = vmul.f32 %v4927_v58, %v1584_v51  ;;  %v1677_v62 = vadd.f32 %v1669_v2, %v1657_v23  ;;  %v1678_v1 = vadd.f32 %v1670_v3, %v1658_v29  ;;  %v3495_v51 = vld [vmem:[%s5492_s5 + $0x1] ss:$0 sm:$0xff] }
 0x6d9   : > { %v1679_v38 = vadd.f32 %v1671_v37, %v1659_v35  ;;  %v1680_v5 = vadd.f32 %v1672_v54, %v1660_v27  ;;  %v1681_v6 = vadd.f32 %v1673_v55, %v1661_v47  ;;  %v1682_v7 = vadd.f32 %v1674_v45, %v1662_v30 }
 0x6da   : > { %v1683_v10 = vadd.f32 %v1675_v60, %v1663_v36  ;;  %v1684_v11 = vadd.f32 %v1676_v61, %v1664_v52  ;;  %v1689_v19 = vmul.f32 %v4930_v57, %v1643_v42  ;;  %v1690_v48 = vmul.f32 %v4930_v57, %v1642_v41 }
 0x6db   : > { %v1691_v49 = vmul.f32 %v4930_v57, %v1641_v40  ;;  %v1692_v59 = vmul.f32 %v4930_v57, %v1640_v28  ;;  %v1693_v50 = vmul.f32 %v4930_v57, %v1639_v13  ;;  %v1694_v58 = vmul.f32 %v4930_v57, %v1638_v43 }
 0x6dc   : > { %v1695_v2 = vmul.f32 %v4930_v57, %v1637_v31  ;;  %v1696_v3 = vmul.f32 %v4930_v57, %v1652_v46  ;;  %v1697_v37 = vadd.f32 %v1689_v19, %v1677_v62  ;;  %v1698_v12 = vadd.f32 %v1690_v48, %v1678_v1 }
 0x6dd   : > { %v1699_v14 = vadd.f32 %v1691_v49, %v1679_v38  ;;  %v1700_v53 = vadd.f32 %v1692_v59, %v1680_v5  ;;  %v1701_v16 = vadd.f32 %v1693_v50, %v1681_v6  ;;  %v1702_v4 = vadd.f32 %v1694_v58, %v1682_v7 }
 0x6de   : > { %v1703_v21 = vadd.f32 %v1695_v2, %v1683_v10  ;;  %v1704_v22 = vadd.f32 %v1696_v3, %v1684_v11  ;;  %v1713_v24 = vadd.f32 %v3495_v51, %v1697_v37  ;;  %v1714_v25 = vadd.f32 %v3495_v51, %v1698_v12 }
 0x6df   : > { %v1715_v26 = vadd.f32 %v3495_v51, %v1699_v14  ;;  %v1729_v28 = vstv %s4985_s14  ;;  %v1716_v40 = vadd.f32 %v3495_v51, %v1700_v53  ;;  %v1717_v41 = vadd.f32 %v3495_v51, %v1701_v16  ;;  %v4081_v16 = vld [vmem:[#allocation8 + $0x40] sm:$0xff]  }
 0x6e0   : > { %vm1721_vm1 = vcmp.gt.f32.partialorder %v1713_v24, 0.0  ;;  %vm1722_vm2 = vcmp.gt.f32.partialorder %v1714_v25, 0.0  ;;  %v1730_v42 = vmul.f32 %v1729_v28, %v1713_v24  ;;  %v1731_v31 = vmul.f32 %v1729_v28, %v1714_v25  ;;  %3780 = vmatprep.subr.bf16.mxu0 %v4081_v16 }
 0x6e1   : > { %vm1723_vm3 = vcmp.gt.f32.partialorder %v1715_v26, 0.0  ;;  %v1732_v57 = vmul.f32 %v1729_v28, %v1715_v26  ;;  %v1718_v43 = vadd.f32 %v3495_v51, %v1702_v4  ;;  %v1733_v13 = vmul.f32 %v1729_v28, %v1716_v40  ;;  %v4082_v4 = vld [vmem:[#allocation8 + $0x48] sm:$0xff]   ;;  %3781 = vmatpush3.bf16.msra.mxu0 %v4081_v16 }
 0x6e2   : > { %v5005_v34 = vsel %vm1721_vm1, %v1713_v24, %v1730_v42  ;;  %v5007_v46 = vsel %vm1722_vm2, %v1714_v25, %v1731_v31  ;;  %v1719_v23 = vadd.f32 %v3495_v51, %v1703_v21  ;;  %vm1724_vm4 = vcmp.gt.f32.partialorder %v1716_v40, 0.0  ;;  %3782 = vmatprep.subr.bf16.mxu0 %v4082_v4  ;;  %v4083_v21 = vld [vmem:[#allocation8 + $0x50] sm:$0xff]   ;;  %v4085_v24 = vld [vmem:[#allocation8 + $0x60] sm:$0xff]   ;;  %v4086_v25 = vld [vmem:[#allocation8 + $0x68] sm:$0xff]  }
 0x6e3   : > { %v1734_v29 = vmul.f32 %v1729_v28, %v1717_v41  ;;  %v5009_v35 = vsel %vm1723_vm3, %v1715_v26, %v1732_v57  ;;  %v1746_v27 = vadd.f32 %v5007_v46, %v5005_v34  ;;  %v1763_v47 = vmul.f32 %v5005_v34, %v5005_v34 }
 0x6e4   : > { %vm1725_vm5 = vcmp.gt.f32.partialorder %v1717_v41, 0.0  ;;  %v1764_v30 = vmul.f32 %v5007_v46, %v5007_v46  ;;  %v1720_v36 = vadd.f32 %v3495_v51, %v1704_v22  ;;  %v1735_v52 = vmul.f32 %v1729_v28, %v1718_v43  ;;  %v4084_v22 = vld [vmem:[#allocation8 + $0x58] sm:$0xff]  }
 0x6e5   : > { %v5017_v54 = vsel %vm1724_vm4, %v1716_v40, %v1733_v13  ;;  %v1747_v55 = vadd.f32 %v1746_v27, %v5009_v35  ;;  %vm1726_vm6 = vcmp.gt.f32.partialorder %v1718_v43, 0.0  ;;  %v1765_v45 = vmul.f32 %v5009_v35, %v5009_v35  ;;  %3783 = vmatpush3.bf16.msra.mxu0 %v4082_v4  ;;  %v4088_v13 = vld [vmem:[#allocation8 + $0x78] sm:$0xff]  }
 0x6e6   : > { %v1771_v60 = vadd.f32 %v1764_v30, %v1763_v47  ;;  %v1736_v61 = vmul.f32 %v1729_v28, %v1719_v23  ;;  %v5022_v62 = vsel %vm1725_vm5, %v1717_v41, %v1734_v29  ;;  %vm1727_vm7 = vcmp.gt.f32.partialorder %v1719_v23, 0.0  ;;  %3784 = vmatprep.subr.bf16.mxu0 %v4083_v21 }
 0x6e7   : > { %v1748_v1 = vadd.f32 %v1747_v55, %v5017_v54  ;;  %v1766_v38 = vmul.f32 %v5017_v54, %v5017_v54  ;;  %v1737_v6 = vmul.f32 %v1729_v28, %v1720_v36  ;;  %v5027_v7 = vsel %vm1726_vm6, %v1718_v43, %v1735_v52  ;;  %v4087_v43 = vld [vmem:[#allocation8 + $0x70] sm:$0xff]   ;;  %v4089_v55 = vld [vmem:[#allocation6 + $0x100] sm:$0xff]  }
 0x6e8   : > { %v1772_v5 = vadd.f32 %v1771_v60, %v1765_v45  ;;  %vm1728_vm8 = vcmp.gt.f32.partialorder %v1720_v36, 0.0  ;;  %v1767_v11 = vmul.f32 %v5022_v62, %v5022_v62  ;;  %v5032_v48 = vsel %vm1727_vm7, %v1719_v23, %v1736_v61  ;;  %v4090_v45 = vld [vmem:[#allocation6 + $0x108] sm:$0xff]   ;;  %3804 = vmatprep.subr.bf16.mxu1 %v4089_v55  ;;  %v4091_v60 = vld [vmem:[#allocation6 + $0x110] sm:$0xff]   ;;  %v4092_v61 = vld [vmem:[#allocation6 + $0x118] sm:$0xff]  }
 0x6e9   : > { %v1749_v10 = vadd.f32 %v1748_v1, %v5022_v62  ;;  %v1768_v59 = vmul.f32 %v5027_v7, %v5027_v7  ;;  %v5037_v58 = vsel %vm1728_vm8, %v1720_v36, %v1737_v6  ;;  %v1769_v2 = vmul.f32 %v5032_v48, %v5032_v48  ;;  %3785 = vmatpush3.bf16.msra.mxu0 %v4083_v21  ;;  %v4093_v1 = vld [vmem:[#allocation6 + $0x120] sm:$0xff]  }
 0x6ea   : > { %v1773_v19 = vadd.f32 %v1772_v5, %v1766_v38  ;;  %v1770_v12 = vmul.f32 %v5037_v58, %v5037_v58  ;;  %3786 = vmatprep.subr.bf16.mxu0 %v4084_v22  ;;  %3805 = vmatpush3.bf16.msra.mxu1 %v4089_v55  ;;  %v4094_v38 = vld [vmem:[#allocation6 + $0x128] sm:$0xff]   ;;  %vm2279_vm1 = vcmp.lt.s32.totalorder %v4625_v32, 4  ;;  %vm2263_vm2 = vcmp.ge.s32.totalorder %v4625_v32, 4 }
 0x6eb   : > { %v1750_v49 = vadd.f32 %v1749_v10, %v5027_v7  ;;  %3806 = vmatprep.subr.bf16.mxu1 %v4090_v45  ;;  %vm2303_vm3 = vcmp.lt.s32.totalorder %v4692_v9, 60 }
 0x6ec   : > { %v1774_v50 = vadd.f32 %v1773_v19, %v1767_v11 }
 0x6ed   : > { %v1751_v51 = vadd.f32 %v1750_v49, %v5032_v48  ;;  %3787 = vmatpush3.bf16.msra.mxu0 %v4084_v22 }
 0x6ee   : > { %v1775_v3 = vadd.f32 %v1774_v50, %v1768_v59  ;;  %3788 = vmatprep.subr.bf16.mxu0 %v4085_v24  ;;  %3807 = vmatpush3.bf16.msra.mxu1 %v4090_v45  ;;  %v3497_v50 = vld [vmem:[%s5531_s23 + $0x1] ss:$0 sm:$0xff] }
 0x6ef   : > { %v1752_v37 = vadd.f32 %v1751_v51, %v5037_v58  ;;  %3808 = vmatprep.subr.bf16.mxu1 %v4091_v60 }
 0x6f0   : > { %v1776_v14 = vadd.f32 %v1775_v3, %v1769_v2 }
 0x6f1   : > { %1753 = vadd.xlane.f32.xlu0 %v1752_v37  ;;  %3789 = vmatpush3.bf16.msra.mxu0 %v4085_v24 }
 0x6f2   : > { %v1777_v53 = vadd.f32 %v1776_v14, %v1770_v12  ;;  %3790 = vmatprep.subr.bf16.mxu0 %v4086_v25  ;;  %3809 = vmatpush3.bf16.msra.mxu1 %v4091_v60 }
 0x6f3   : > { %3810 = vmatprep.subr.bf16.mxu1 %v4092_v61 }
 0x6f4   : > { %1778 = vadd.xlane.f32.xlu1 %v1777_v53 }
 0x6f5   : > { %3791 = vmatpush3.bf16.msra.mxu0 %v4086_v25 }
 0x6f6   : > { %3792 = vmatprep.subr.bf16.mxu0 %v4087_v43  ;;  %3811 = vmatpush3.bf16.msra.mxu1 %v4092_v61 }
 0x6f7   : > { %3812 = vmatprep.subr.bf16.mxu1 %v4093_v1 }
 0x6f9   : > { %3793 = vmatpush3.bf16.msra.mxu0 %v4087_v43 }
 0x6fa   : > { %3794 = vmatprep.subr.bf16.mxu0 %v4088_v13  ;;  %3813 = vmatpush3.bf16.msra.mxu1 %v4093_v1 }
 0x6fb   : > { %3814 = vmatprep.subr.bf16.mxu1 %v4094_v38 }
 0x6fd   : > { %3795 = vmatpush3.bf16.msra.mxu0 %v4088_v13 }
 0x6fe   : > { %3815 = vmatpush3.bf16.msra.mxu1 %v4094_v38 }
 0x77e   : > { %v1754_v26 = vpop.xlane.xlu0 %1753 }
 0x77f   : > { %v1755_v28 = vrot.slane %v1754_v26, 4 }
 0x781   : > { %v1756_v40 = vadd.f32 %v1755_v28, %v1754_v26  ;;  %v1779_v41 = vpop.xlane.xlu1 %1778 }
 0x782   : > { %v1780_v42 = vrot.slane %v1779_v41, 4 }
 0x783   : > { %v1757_v31 = vrot.slane %v1756_v40, 2 }
 0x784   : > { %v1781_v57 = vadd.f32 %v1780_v42, %v1779_v41 }
 0x785   : > { %v1758_v23 = vadd.f32 %v1757_v31, %v1756_v40 }
 0x786   : > { %v1782_v29 = vrot.slane %v1781_v57, 2 }
 0x787   : > { %v1759_v27 = vrot.slane %v1758_v23, 1 }
 0x788   : > { %v1783_v47 = vadd.f32 %v1782_v29, %v1781_v57 }
 0x789   : > { %v1760_v30 = vadd.f32 %v1759_v27, %v1758_v23 }
 0x78a   : > { %v1784_v36 = vrot.slane %v1783_v47, 1 }
 0x78b   : > { %3934 = vpush %v1760_v30  ;;  %v4095_v30 = vld [vmem:[#allocation6 + $0x130] sm:$0xff]  }
 0x78c   : > { %v1785_v52 = vadd.f32 %v1784_v36, %v1783_v47  ;;  %3816 = vmatprep.subr.bf16.mxu1 %v4095_v30  ;;  %v4096_v36 = vld [vmem:[#allocation6 + $0x138] sm:$0xff]  }
 0x78d   : > { %3817 = vmatpush3.bf16.msra.mxu1 %v4095_v30 }
 0x78e   : > { %3936 = vpush %v1785_v52  ;;  %3818 = vmatprep.subr.bf16.mxu1 %v4096_v36  ;;  %v3501_v52 = vld [vmem:[%s5533_s11 + $0x1] ss:$0 sm:$0xff] }
 0x791   : > { %3819 = vmatpush3.bf16.msra.mxu1 %v4096_v36 }
 0x7bc   : > { %s3935_s12 = spop %3934 }
 0x7bd   : > { %s1762_s22 = smul.f32 0.00048828125, %s3935_s12 }
 0x7bf   : > { %s1788_s18 = smul.f32 %s1762_s22, %s1762_s22  ;;  %s3937_s30 = spop %3936  ;;  %v1792_v10 = vstv %s1762_s22 }
 0x7c0   : > { %s1787_s21 = smul.f32 0.00048828125, %s3937_s30  ;;  %v1795_v11 = vsub.f32 %v5009_v35, %v1792_v10  ;;  %v1796_v19 = vsub.f32 %v5017_v54, %v1792_v10  ;;  %v1793_v49 = vsub.f32 %v5005_v34, %v1792_v10  ;;  %v1794_v59 = vsub.f32 %v5007_v46, %v1792_v10  ;;  %v3499_v34 = vld [vmem:[%s5532_s16 + $0x1] ss:$0 sm:$0xff] }
 0x7c1   : > { %v1797_v51 = vsub.f32 %v5022_v62, %v1792_v10  ;;  %v1798_v2 = vsub.f32 %v5027_v7, %v1792_v10  ;;  %v1799_v3 = vsub.f32 %v5032_v48, %v1792_v10  ;;  %v1800_v16 = vsub.f32 %v5037_v58, %v1792_v10 }
 0x7c2   : > { %s1789_s25 = ssub.f32 %s1787_s21, %s1788_s18  ;;  %v1807_v37 = vmul.f32 %v3497_v50, %v1793_v49  ;;  %v1808_v12 = vmul.f32 %v3497_v50, %v1794_v59  ;;  %v1809_v35 = vmul.f32 %v3497_v50, %v1795_v11  ;;  %v1810_v14 = vmul.f32 %v3497_v50, %v1796_v19  ;;  %s3510_s21 = sld [smem:[#allocation9 + $0x100]] }
 0x7c3   : > { %v1811_v46 = vmul.f32 %v3497_v50, %v1797_v51  ;;  %v1812_v53 = vmul.f32 %v3497_v50, %v1798_v2  ;;  %v1813_v42 = vmul.f32 %v3497_v50, %v1799_v3  ;;  %v1814_v31 = vmul.f32 %v3497_v50, %v1800_v16 }
 0x7c4   : > { %s1815_s20 = sadd.f32 1e-05, %s1789_s25 }
 0x7c6   : > { %v1816_v5 = vstv %s1815_s20 }
 0x7c7   : > { %4127 = vrsqrt.f32 %v1816_v5 }
 0x7d1   : > { %v4128_v6 = vpop.eup %4127 }
 0x7d2   : > { %3938 = vpush %v4128_v6 }
 0x803   : > { %s3939_s10 = spop %3938 }
 0x804   : > { %v1819_v54 = vstv %s3939_s10 }
 0x805   : > { %v1820_v4 = vmul.f32 %v1819_v54, %v1807_v37  ;;  %v1821_v62 = vmul.f32 %v1819_v54, %v1808_v12  ;;  %v1822_v21 = vmul.f32 %v1819_v54, %v1809_v35  ;;  %v1823_v7 = vmul.f32 %v1819_v54, %v1810_v14 }
 0x806   : > { %v1824_v22 = vmul.f32 %v1819_v54, %v1811_v46  ;;  %v1825_v48 = vmul.f32 %v1819_v54, %v1812_v53  ;;  %v1826_v13 = vmul.f32 %v1819_v54, %v1813_v42  ;;  %v1827_v23 = vmul.f32 %v1819_v54, %v1814_v31 }
 0x807   : > { %v1836_v24 = vadd.f32 %v3499_v34, %v1820_v4  ;;  %v1837_v25 = vadd.f32 %v3499_v34, %v1821_v62  ;;  %v1838_v26 = vadd.f32 %v3499_v34, %v1822_v21  ;;  %v1839_v28 = vadd.f32 %v3499_v34, %v1823_v7 }
 0x808   : > { %v1840_v40 = vadd.f32 %v3499_v34, %v1824_v22  ;;  %v1841_v41 = vadd.f32 %v3499_v34, %v1825_v48  ;;  %v1842_v29 = vadd.f32 %v3499_v34, %v1826_v13  ;;  %v1843_v27 = vadd.f32 %v3499_v34, %v1827_v23 }
 0x809   : > { %v1844_v57 = vpack.c.bf16 %v1837_v25, %v1836_v24  ;;  %v1845_v43 = vpack.c.bf16 %v1839_v28, %v1838_v26 }
 0x80a   : > { %v1846_v58 = vpack.c.bf16 %v1841_v41, %v1840_v40  ;;  %v1847_v47 = vpack.c.bf16 %v1843_v27, %v1842_v29 }
 0x80b   : > { %3796 = vmatprep.mubr.bf16.mxu0 %v1844_v57 }
 0x80c   : > { %3797 = vmatmul.mubr.bf16.vlgmr.msra.gmra.mrb[12].mxu0 %v1845_v43 }
 0x80d   : > { %3800 = vmatprep.mubr.bf16.mxu0 %v1846_v58 }
 0x814   : > { %3801 = vmatmul.mubr.bf16.gmra.mrb[16].mxu0 %v1847_v47 }
 0x8df   : > { %v3798_v55 = vpop.f32.mrb[12].mxu0 }
 0x8e0   : > { %v1955_v45 = vpop.f32.mrb[13].mxu0  ;;  %v1964_v1 = vadd.f32 %v3798_v55, %v3501_v52 }
 0x8e1   : > { %v1956_v60 = vadd.f32 %v3501_v52, %v1955_v45  ;;  %v3799_v61 = vpop.f32.mrb[14].mxu0 }
 0x8e2   : > { %v1967_v38 = vadd.f32 %v3799_v61, %v3501_v52  ;;  %v1958_v5 = vpop.f32.mrb[15].mxu0  ;;  %v5072_v49 = vadd.f32 %v1964_v1, %v4850_v20 }
 0x8e3   : > { %v1959_v6 = vadd.f32 %v3501_v52, %v1958_v5  ;;  %v5066_v11 = vadd.f32 %v1956_v60, %v4844_v15 }
 0x8e4   : > { %v5063_v10 = vadd.f32 %v1967_v38, %v4841_v39 }
 0x8e5   : > { %v5069_v19 = vadd.f32 %v1959_v6, %v4847_v18 }
 0x8e6   : > { %v2014_v51 = vpack.c.bf16 %v5063_v10, %v5072_v49 }
 0x8e7   : > { %v3802_v59 = vpop.f32.mrb[16].mxu0  ;;  %v2013_v50 = vpack.c.bf16 %v5069_v19, %v5066_v11 }
 0x8e8   : > { %v1971_v2 = vpop.f32.mrb[17].mxu0  ;;  %v1980_v37 = vadd.f32 %v3802_v59, %v3501_v52 }
 0x8e9   : > { %v1972_v3 = vadd.f32 %v3501_v52, %v1971_v2  ;;  %v3803_v39 = vpop.f32.mrb[18].mxu0  ;;  %3820 = vmatprep.mubr.bf16.mxu1 %v2013_v50 }
 0x8ea   : > { %v1983_v15 = vadd.f32 %v3803_v39, %v3501_v52  ;;  %v1974_v12 = vpop.f32.mrb[19].mxu0  ;;  %3821 = vmatmul.mubr.bf16.vlgmr.msra.gmra.mrb[16].mxu1 %v2014_v51  ;;  %v5088_v54 = vadd.f32 %v1980_v37, %v4866_v44 }
 0x8eb   : > { %v1975_v18 = vadd.f32 %v3501_v52, %v1974_v12  ;;  %v5082_v20 = vadd.f32 %v1972_v3, %v4860_v8 }
 0x8ec   : > { %v5079_v35 = vadd.f32 %v1983_v15, %v4857_v56  ;;  %v3513_v56 = vld [vmem:[%s5490_s3 + $0x2] ss:$0 sm:$0xff] }
 0x8ed   : > { %v5085_v14 = vadd.f32 %v1975_v18, %v4863_v17  ;;  %v2146_v17 = vstv %s3510_s21 }
 0x8ee   : > { %v2016_v46 = vpack.c.bf16 %v5079_v35, %v5088_v54 }
 0x8ef   : > { %v2015_v34 = vpack.c.bf16 %v5085_v14, %v5082_v20 }
 0x8f1   : > { %3824 = vmatprep.mubr.bf16.mxu1 %v2015_v34 }
 0x8f2   : > { %3825 = vmatmul.mubr.bf16.gmra.mrb[20].mxu1 %v2016_v46 }
 0x9bd   : > { %v3822_v8 = vpop.f32.mrb[16].mxu1 }
 0x9be   : > { %v2116_v53 = vadd.f32 %v3822_v8, %v3513_v56  ;;  %v2107_v16 = vpop.f32.mrb[17].mxu1 }
 0x9bf   : > { %v2108_v4 = vadd.f32 %v3513_v56, %v2107_v16  ;;  %v3823_v44 = vpop.f32.mrb[18].mxu1 }
 0x9c0   : > { %v2119_v62 = vadd.f32 %v3823_v44, %v3513_v56  ;;  %v2110_v21 = vpop.f32.mrb[19].mxu1  ;;  %v2149_v7 = vmul.f32 %v2146_v17, %v2116_v53  ;;  %vm2140_vm10 = vcmp.gt.f32.partialorder %v2116_v53, 0.0 }
 0x9c1   : > { %vm2138_vm9 = vcmp.gt.f32.partialorder %v2108_v4, 0.0  ;;  %v2147_v22 = vmul.f32 %v2146_v17, %v2108_v4  ;;  %v2111_v48 = vadd.f32 %v3513_v56, %v2110_v21 }
 0x9c2   : > { %v2150_v26 = vmul.f32 %v2146_v17, %v2119_v62  ;;  %v5099_v28 = vsel %vm2140_vm10, %v2116_v53, %v2149_v7  ;;  %vm2141_vm12 = vcmp.gt.f32.partialorder %v2119_v62, 0.0 }
 0x9c3   : > { %v5097_v24 = vsel %vm2138_vm9, %v2108_v4, %v2147_v22  ;;  %vm2139_vm11 = vcmp.gt.f32.partialorder %v2111_v48, 0.0  ;;  %v2148_v25 = vmul.f32 %v2146_v17, %v2111_v48  ;;  %v2182_v29 = vmul.f32 %v5099_v28, %v5099_v28 }
 0x9c4   : > { %v2180_v42 = vmul.f32 %v5097_v24, %v5097_v24  ;;  %v5111_v27 = vsel %vm2141_vm12, %v2119_v62, %v2150_v26 }
 0x9c5   : > { %v5101_v40 = vsel %vm2139_vm11, %v2111_v48, %v2148_v25  ;;  %v3826_v41 = vpop.f32.mrb[20].mxu1  ;;  %v2183_v38 = vmul.f32 %v5111_v27, %v5111_v27 }
 0x9c6   : > { %v2163_v31 = vadd.f32 %v5101_v40, %v5097_v24  ;;  %v2181_v57 = vmul.f32 %v5101_v40, %v5101_v40  ;;  %v2132_v43 = vadd.f32 %v3826_v41, %v3513_v56  ;;  %v2123_v13 = vpop.f32.mrb[21].mxu1 }
 0x9c7   : > { %v2124_v23 = vadd.f32 %v3513_v56, %v2123_v13  ;;  %v3827_v58 = vpop.f32.mrb[22].mxu1 }
 0x9c8   : > { %v2164_v47 = vadd.f32 %v2163_v31, %v5099_v28  ;;  %v2188_v30 = vadd.f32 %v2181_v57, %v2180_v42  ;;  %v2126_v36 = vpop.f32.mrb[23].mxu1  ;;  %v2135_v55 = vadd.f32 %v3827_v58, %v3513_v56  ;;  %v2153_v61 = vmul.f32 %v2146_v17, %v2132_v43 }
 0x9c9   : > { %vm2142_vm13 = vcmp.gt.f32.partialorder %v2124_v23, 0.0  ;;  %v2151_v52 = vmul.f32 %v2146_v17, %v2124_v23  ;;  %v2127_v45 = vadd.f32 %v3513_v56, %v2126_v36  ;;  %vm2144_vm14 = vcmp.gt.f32.partialorder %v2132_v43, 0.0 }
 0x9ca   : > { %v2189_v60 = vadd.f32 %v2188_v30, %v2182_v29  ;;  %v2165_v1 = vadd.f32 %v2164_v47, %v5111_v27  ;;  %v2154_v50 = vmul.f32 %v2146_v17, %v2135_v55  ;;  %vm2145_vm0 = vcmp.gt.f32.partialorder %v2135_v55, 0.0  ;;  %v3526_v47 = vld [vmem:[%s5491_s4 + $0x8] sm:$0x7] }
 0x9cb   : > { %v5117_v5 = vsel %vm2142_vm13, %v2124_v23, %v2151_v52  ;;  %vm2143_vm15 = vcmp.gt.f32.partialorder %v2127_v45, 0.0  ;;  %v2152_v51 = vmul.f32 %v2146_v17, %v2127_v45  ;;  %v5122_v3 = vsel %vm2144_vm14, %v2132_v43, %v2153_v61 }
 0x9cc   : > { %v2166_v6 = vadd.f32 %v2165_v1, %v5117_v5  ;;  %v2184_v59 = vmul.f32 %v5117_v5, %v5117_v5  ;;  %v2190_v2 = vadd.f32 %v2189_v60, %v2183_v38  ;;  %v5129_v18 = vsel %vm2145_vm0, %v2135_v55, %v2154_v50 }
 0x9cd   : > { %v5124_v39 = vsel %vm2143_vm15, %v2127_v45, %v2152_v51  ;;  %v2186_v46 = vmul.f32 %v5122_v3, %v5122_v3  ;;  %v2187_v53 = vmul.f32 %v5129_v18, %v5129_v18  ;;  %v3523_v45 = vld [vmem:[%s5495_s8 + $0x2] ss:$0 sm:$0xff]  ;;  %v2315_v1 = vrot.slane %v3526_v47, %v4628_v33 }
 0x9ce   : > { %v2185_v37 = vmul.f32 %v5124_v39, %v5124_v39  ;;  %v2167_v15 = vadd.f32 %v2166_v6, %v5124_v39  ;;  %v2191_v12 = vadd.f32 %v2190_v2, %v2184_v59 }
 0x9d0   : > { %v2168_v34 = vadd.f32 %v2167_v15, %v5122_v3  ;;  %v2192_v56 = vadd.f32 %v2191_v12, %v2185_v37 }
 0x9d2   : > { %v2169_v8 = vadd.f32 %v2168_v34, %v5129_v18  ;;  %v2193_v17 = vadd.f32 %v2192_v56, %v2186_v46 }
 0x9d4   : > { %2170 = vadd.xlane.f32.xlu0 %v2169_v8  ;;  %v2194_v16 = vadd.f32 %v2193_v17, %v2187_v53 }
 0x9d6   : > { %2195 = vadd.xlane.f32.xlu1 %v2194_v16 }
 0xa61   : > { %v2171_v4 = vpop.xlane.xlu0 %2170 }
 0xa62   : > { %v2172_v44 = vrot.slane %v2171_v4, 4 }
 0xa63   : > { %v2196_v62 = vpop.xlane.xlu1 %2195 }
 0xa64   : > { %v2173_v21 = vadd.f32 %v2172_v44, %v2171_v4  ;;  %v2197_v7 = vrot.slane %v2196_v62, 4 }
 0xa66   : > { %v2174_v22 = vrot.slane %v2173_v21, 2  ;;  %v2198_v48 = vadd.f32 %v2197_v7, %v2196_v62 }
 0xa68   : > { %v2199_v25 = vrot.slane %v2198_v48, 2  ;;  %v2175_v26 = vadd.f32 %v2174_v22, %v2173_v21 }
 0xa6a   : > { %v2176_v41 = vrot.slane %v2175_v26, 1  ;;  %v2200_v42 = vadd.f32 %v2199_v25, %v2198_v48 }
 0xa6c   : > { %v2177_v31 = vadd.f32 %v2176_v41, %v2175_v26  ;;  %v2201_v57 = vrot.slane %v2200_v42, 1 }
 0xa6e   : > { %3940 = vpush %v2177_v31  ;;  %v2202_v43 = vadd.f32 %v2201_v57, %v2200_v42 }
 0xa70   : > { %3942 = vpush %v2202_v43 }
 0xa9f   : > { %s3941_s14 = spop %3940 }
 0xaa0   : > { %s2179_s13 = smul.f32 0.00048828125, %s3941_s14 }
 0xaa1   : > { %s3943_s10 = spop %3942 }
 0xaa2   : > { %s2205_s12 = smul.f32 %s2179_s13, %s2179_s13  ;;  %v2209_v58 = vstv %s2179_s13 }
 0xaa3   : > { %s2204_s22 = smul.f32 0.00048828125, %s3943_s10  ;;  %v2210_v29 = vsub.f32 %v5097_v24, %v2209_v58  ;;  %v2211_v30 = vsub.f32 %v5101_v40, %v2209_v58  ;;  %v2212_v36 = vsub.f32 %v5099_v28, %v2209_v58  ;;  %v2213_v52 = vsub.f32 %v5111_v27, %v2209_v58 }
 0xaa4   : > { %v2214_v55 = vsub.f32 %v5117_v5, %v2209_v58  ;;  %v2215_v60 = vsub.f32 %v5124_v39, %v2209_v58  ;;  %v2216_v24 = vsub.f32 %v5122_v3, %v2209_v58  ;;  %v2217_v61 = vsub.f32 %v5129_v18, %v2209_v58  ;;  %v3525_v39 = vld [vmem:[%s5496_s9 + $0x2] ss:$0 sm:$0xff] }
 0xaa5   : > { %s2206_s18 = ssub.f32 %s2204_s22, %s2205_s12  ;;  %v5153_v40 = vrot.slane %v3526_v47, %v4683_v0  ;;  %v5156_v28 = vrot.slane %v3526_v47, %v4689_v63  ;;  %v2224_v27 = vmul.f32 %v3523_v45, %v2210_v29  ;;  %v2225_v38 = vmul.f32 %v3523_v45, %v2211_v30  ;;  %s5187_s22 = sld [smem:[#allocation9 + $0x101]] }
 0xaa6   : > { %v2226_v5 = vmul.f32 %v3523_v45, %v2212_v36  ;;  %v2227_v6 = vmul.f32 %v3523_v45, %v2213_v52  ;;  %v2228_v59 = vmul.f32 %v3523_v45, %v2214_v55  ;;  %v2229_v50 = vmul.f32 %v3523_v45, %v2215_v60 }
 0xaa7   : > { %s2232_s30 = sadd.f32 1e-05, %s2206_s18  ;;  %v2230_v51 = vmul.f32 %v3523_v45, %v2216_v24  ;;  %v2231_v2 = vmul.f32 %v3523_v45, %v2217_v61 }
 0xaa9   : > { %v2233_v13 = vstv %s2232_s30 }
 0xaaa   : > { %4129 = vrsqrt.f32 %v2233_v13 }
 0xab4   : > { %v4130_v23 = vpop.eup %4129 }
 0xab5   : > { %3944 = vpush %v4130_v23 }
 0xae6   : > { %s3945_s13 = spop %3944 }
 0xae7   : > { %v2236_v3 = vstv %s3945_s13 }
 0xae8   : > { %v2237_v37 = vmul.f32 %v2236_v3, %v2224_v27  ;;  %v2238_v15 = vmul.f32 %v2236_v3, %v2225_v38  ;;  %v2239_v12 = vmul.f32 %v2236_v3, %v2226_v5  ;;  %v2240_v18 = vmul.f32 %v2236_v3, %v2227_v6 }
 0xae9   : > { %v2241_v34 = vmul.f32 %v2236_v3, %v2228_v59  ;;  %v2242_v46 = vmul.f32 %v2236_v3, %v2229_v50  ;;  %v2243_v56 = vmul.f32 %v2236_v3, %v2230_v51  ;;  %v2244_v8 = vmul.f32 %v2236_v3, %v2231_v2 }
 0xaea   : > { %v2253_v53 = vadd.f32 %v3525_v39, %v2237_v37  ;;  %v2254_v17 = vadd.f32 %v3525_v39, %v2238_v15  ;;  %v2255_v16 = vadd.f32 %v3525_v39, %v2239_v12  ;;  %v2256_v4 = vadd.f32 %v3525_v39, %v2240_v18 }
 0xaeb   : > { %v2257_v44 = vadd.f32 %v3525_v39, %v2241_v34  ;;  %v2258_v62 = vadd.f32 %v3525_v39, %v2242_v46  ;;  %v2259_v21 = vadd.f32 %v3525_v39, %v2243_v56  ;;  %v2260_v7 = vadd.f32 %v3525_v39, %v2244_v8 }
 0xaec   : > { %v2272_v22 = vrot.slane %v2254_v17, 4  ;;  %v2273_v48 = vrot.slane %v2255_v16, 4  ;;  %v2274_v25 = vrot.slane %v2256_v4, 4  ;;  %v2329_v26 = vmul.f32 %v5153_v40, %v2254_v17 }
 0xaed   : > { %v2275_v41 = vrot.slane %v2257_v44, 4  ;;  %v2276_v42 = vrot.slane %v2258_v62, 4  ;;  %v2330_v31 = vmul.f32 %v5153_v40, %v2255_v16  ;;  %v2331_v57 = vmul.f32 %v5153_v40, %v2256_v4 }
 0xaee   : > { %v2285_v43 = vsel %vm2279_vm1, %v2272_v22, %v2273_v48  ;;  %v2271_v13 = vrot.slane %v2253_v53, 4  ;;  %v2277_v23 = vrot.slane %v2259_v21, 4  ;;  %v2278_v58 = vrot.slane %v2260_v7, 4 }
 0xaef   : > { %v2282_v29 = vsel %vm2279_vm1, %v2275_v41, %v2276_v42  ;;  %v2283_v47 = vsel %vm2279_vm1, %v2274_v25, %v2275_v41  ;;  %v2284_v30 = vsel %vm2279_vm1, %v2273_v48, %v2274_v25  ;;  %v2318_v36 = vmul.f32 %v2315_v1, %v2285_v43 }
 0xaf0   : > { %v2280_v52 = vsel %vm2279_vm1, %v2277_v23, %v2278_v58  ;;  %v2281_v55 = vsel %vm2279_vm1, %v2276_v42, %v2277_v23  ;;  %v2286_v45 = vsel %vm2279_vm1, %v2271_v13, %v2272_v22  ;;  %v2287_v60 = vsel %vm2279_vm1, %v2278_v58, %v2271_v13 }
 0xaf1   : > { %v2288_v24 = vsel %vm2263_vm2, %v2287_v60, 0.0  ;;  %v2311_v61 = vsel %vm2303_vm3, %v2287_v60, 0.0  ;;  %v2317_v27 = vmul.f32 %v2315_v1, %v2286_v45  ;;  %v2319_v38 = vmul.f32 %v2315_v1, %v2284_v30 }
 0xaf2   : > { %v2316_v5 = vmul.f32 %v2315_v1, %v2288_v24  ;;  %v2320_v6 = vmul.f32 %v2315_v1, %v2283_v47  ;;  %v2321_v59 = vmul.f32 %v2315_v1, %v2282_v29  ;;  %v2322_v50 = vmul.f32 %v2315_v1, %v2281_v55 }
 0xaf3   : > { %v2323_v51 = vmul.f32 %v2315_v1, %v2280_v52  ;;  %v2328_v2 = vmul.f32 %v5153_v40, %v2253_v53  ;;  %v2332_v3 = vmul.f32 %v5153_v40, %v2257_v44  ;;  %v2333_v39 = vmul.f32 %v5153_v40, %v2258_v62  ;;  %v3528_v44 = vld [vmem:[%s5492_s5 + $0x2] ss:$0 sm:$0xff] }
 0xaf4   : > { %v2334_v32 = vmul.f32 %v5153_v40, %v2259_v21  ;;  %v2335_v9 = vmul.f32 %v5153_v40, %v2260_v7  ;;  %v2337_v37 = vadd.f32 %v2329_v26, %v2317_v27  ;;  %v2338_v15 = vadd.f32 %v2330_v31, %v2318_v36 }
 0xaf5   : > { %v2336_v12 = vadd.f32 %v2328_v2, %v2316_v5  ;;  %v2339_v18 = vadd.f32 %v2331_v57, %v2319_v38  ;;  %v2340_v34 = vadd.f32 %v2332_v3, %v2320_v6  ;;  %v2341_v46 = vadd.f32 %v2333_v39, %v2321_v59 }
 0xaf6   : > { %v2342_v56 = vadd.f32 %v2334_v32, %v2322_v50  ;;  %v2343_v8 = vadd.f32 %v2335_v9, %v2323_v51  ;;  %v2348_v1 = vmul.f32 %v5156_v28, %v2286_v45  ;;  %v2349_v53 = vmul.f32 %v5156_v28, %v2285_v43 }
 0xaf7   : > { %v2350_v17 = vmul.f32 %v5156_v28, %v2284_v30  ;;  %v2351_v16 = vmul.f32 %v5156_v28, %v2283_v47  ;;  %v2352_v4 = vmul.f32 %v5156_v28, %v2282_v29  ;;  %v2353_v40 = vmul.f32 %v5156_v28, %v2281_v55 }
 0xaf8   : > { %v2354_v62 = vmul.f32 %v5156_v28, %v2280_v52  ;;  %v2355_v21 = vmul.f32 %v5156_v28, %v2311_v61  ;;  %v2356_v7 = vadd.f32 %v2348_v1, %v2336_v12  ;;  %v2357_v22 = vadd.f32 %v2349_v53, %v2337_v37 }
 0xaf9   : > { %v2358_v48 = vadd.f32 %v2350_v17, %v2338_v15  ;;  %v2359_v25 = vadd.f32 %v2351_v16, %v2339_v18  ;;  %v2360_v26 = vadd.f32 %v2352_v4, %v2340_v34  ;;  %v2361_v41 = vadd.f32 %v2353_v40, %v2341_v46 }
 0xafa   : > { %v2362_v42 = vadd.f32 %v2354_v62, %v2342_v56  ;;  %v2363_v31 = vadd.f32 %v2355_v21, %v2343_v8  ;;  %v2372_v57 = vadd.f32 %v3528_v44, %v2356_v7  ;;  %v2373_v43 = vadd.f32 %v3528_v44, %v2357_v22 }
 0xafb   : > { %v2374_v13 = vadd.f32 %v3528_v44, %v2358_v48  ;;  %v2388_v23 = vstv %s5187_s22  ;;  %v2375_v58 = vadd.f32 %v3528_v44, %v2359_v25  ;;  %v2376_v29 = vadd.f32 %v3528_v44, %v2360_v26  ;;  %v4097_v48 = vld [vmem:[#allocation8 + $0x80] sm:$0xff]   ;;  %v4098_v25 = vld [vmem:[#allocation8 + $0x88] sm:$0xff]   ;;  %v4099_v26 = vld [vmem:[#allocation8 + $0x90] sm:$0xff]  }
 0xafc   : > { %vm2380_vm4 = vcmp.gt.f32.partialorder %v2372_v57, 0.0  ;;  %vm2381_vm5 = vcmp.gt.f32.partialorder %v2373_v43, 0.0  ;;  %v2389_v47 = vmul.f32 %v2388_v23, %v2372_v57  ;;  %v2390_v30 = vmul.f32 %v2388_v23, %v2373_v43  ;;  %3828 = vmatprep.subr.bf16.mxu0 %v4097_v48 }
 0xafd   : > { %vm2382_vm6 = vcmp.gt.f32.partialorder %v2374_v13, 0.0  ;;  %v2391_v28 = vmul.f32 %v2388_v23, %v2374_v13  ;;  %v2377_v36 = vadd.f32 %v3528_v44, %v2361_v41  ;;  %v2392_v52 = vmul.f32 %v2388_v23, %v2375_v58  ;;  %3829 = vmatpush3.bf16.msra.mxu0 %v4097_v48  ;;  %v4100_v41 = vld [vmem:[#allocation8 + $0x98] sm:$0xff]  }
 0xafe   : > { %v5206_v55 = vsel %vm2380_vm4, %v2372_v57, %v2389_v47  ;;  %v5208_v45 = vsel %vm2381_vm5, %v2373_v43, %v2390_v30  ;;  %v2378_v60 = vadd.f32 %v3528_v44, %v2362_v42  ;;  %vm2383_vm7 = vcmp.gt.f32.partialorder %v2375_v58, 0.0  ;;  %3830 = vmatprep.subr.bf16.mxu0 %v4098_v25  ;;  %v4101_v42 = vld [vmem:[#allocation8 + $0xa0] sm:$0xff]   ;;  %v4103_v30 = vld [vmem:[#allocation8 + $0xb0] sm:$0xff]  }
 0xaff   : > { %v2393_v24 = vmul.f32 %v2388_v23, %v2376_v29  ;;  %v5210_v61 = vsel %vm2382_vm6, %v2374_v13, %v2391_v28  ;;  %v2405_v27 = vadd.f32 %v5208_v45, %v5206_v55  ;;  %v2422_v38 = vmul.f32 %v5206_v55, %v5206_v55  ;;  %v4104_v28 = vld [vmem:[#allocation8 + $0xb8] sm:$0xff]  }
 0xb00   : > { %vm2384_vm8 = vcmp.gt.f32.partialorder %v2376_v29, 0.0  ;;  %v2423_v5 = vmul.f32 %v5208_v45, %v5208_v45  ;;  %v2379_v6 = vadd.f32 %v3528_v44, %v2363_v31  ;;  %v2394_v59 = vmul.f32 %v2388_v23, %v2377_v36  ;;  %v4102_v31 = vld [vmem:[#allocation8 + $0xa8] sm:$0xff]  }
 0xb01   : > { %v5218_v50 = vsel %vm2383_vm7, %v2375_v58, %v2392_v52  ;;  %v2406_v51 = vadd.f32 %v2405_v27, %v5210_v61  ;;  %vm2385_vm9 = vcmp.gt.f32.partialorder %v2377_v36, 0.0  ;;  %v2424_v2 = vmul.f32 %v5210_v61, %v5210_v61  ;;  %3831 = vmatpush3.bf16.msra.mxu0 %v4098_v25 }
 0xb02   : > { %v2430_v3 = vadd.f32 %v2423_v5, %v2422_v38  ;;  %v2395_v39 = vmul.f32 %v2388_v23, %v2378_v60  ;;  %v5223_v32 = vsel %vm2384_vm8, %v2376_v29, %v2393_v24  ;;  %vm2386_vm10 = vcmp.gt.f32.partialorder %v2378_v60, 0.0  ;;  %3832 = vmatprep.subr.bf16.mxu0 %v4099_v26 }
 0xb03   : > { %v2407_v9 = vadd.f32 %v2406_v51, %v5218_v50  ;;  %v2425_v37 = vmul.f32 %v5218_v50, %v5218_v50  ;;  %v2396_v12 = vmul.f32 %v2388_v23, %v2379_v6  ;;  %v5228_v18 = vsel %vm2385_vm9, %v2377_v36, %v2394_v59  ;;  %v4106_v59 = vld [vmem:[#allocation6 + $0x188] sm:$0xff]   ;;  %v4107_v51 = vld [vmem:[#allocation6 + $0x190] sm:$0xff]  }
 0xb04   : > { %v2431_v15 = vadd.f32 %v2430_v3, %v2424_v2  ;;  %vm2387_vm11 = vcmp.gt.f32.partialorder %v2379_v6, 0.0  ;;  %v2426_v46 = vmul.f32 %v5223_v32, %v5223_v32  ;;  %v5233_v8 = vsel %vm2386_vm10, %v2378_v60, %v2395_v39  ;;  %v4108_v2 = vld [vmem:[#allocation6 + $0x198] sm:$0xff]   ;;  %v4109_v3 = vld [vmem:[#allocation6 + $0x1a0] sm:$0xff]   ;;  %v4110_v39 = vld [vmem:[#allocation6 + $0x1a8] sm:$0xff]  }
 0xb05   : > { %v2408_v34 = vadd.f32 %v2407_v9, %v5223_v32  ;;  %v2427_v53 = vmul.f32 %v5228_v18, %v5228_v18  ;;  %v5238_v16 = vsel %vm2387_vm11, %v2379_v6, %v2396_v12  ;;  %v2428_v40 = vmul.f32 %v5233_v8, %v5233_v8  ;;  %3833 = vmatpush3.bf16.msra.mxu0 %v4099_v26  ;;  %v4105_v6 = vld [vmem:[#allocation6 + $0x180] sm:$0xff]  }
 0xb06   : > { %v2432_v56 = vadd.f32 %v2431_v15, %v2425_v37  ;;  %v2429_v21 = vmul.f32 %v5238_v16, %v5238_v16  ;;  %3834 = vmatprep.subr.bf16.mxu0 %v4100_v41  ;;  %3852 = vmatprep.subr.bf16.mxu1 %v4105_v6 }
 0xb07   : > { %v2409_v1 = vadd.f32 %v2408_v34, %v5228_v18  ;;  %3853 = vmatpush3.bf16.msra.mxu1 %v4105_v6 }
 0xb08   : > { %v2433_v17 = vadd.f32 %v2432_v56, %v2426_v46  ;;  %3854 = vmatprep.subr.bf16.mxu1 %v4106_v59 }
 0xb09   : > { %v2410_v4 = vadd.f32 %v2409_v1, %v5233_v8  ;;  %3835 = vmatpush3.bf16.msra.mxu0 %v4100_v41  ;;  %v3530_v1 = vld [vmem:[%s5531_s23 + $0x2] ss:$0 sm:$0xff] }
 0xb0a   : > { %v2434_v44 = vadd.f32 %v2433_v17, %v2427_v53  ;;  %3836 = vmatprep.subr.bf16.mxu0 %v4101_v42 }
 0xb0b   : > { %v2411_v62 = vadd.f32 %v2410_v4, %v5238_v16  ;;  %3855 = vmatpush3.bf16.msra.mxu1 %v4106_v59 }
 0xb0c   : > { %v2435_v7 = vadd.f32 %v2434_v44, %v2428_v40  ;;  %3856 = vmatprep.subr.bf16.mxu1 %v4107_v51 }
 0xb0d   : > { %2412 = vadd.xlane.f32.xlu0 %v2411_v62  ;;  %3837 = vmatpush3.bf16.msra.mxu0 %v4101_v42 }
 0xb0e   : > { %v2436_v22 = vadd.f32 %v2435_v7, %v2429_v21  ;;  %3838 = vmatprep.subr.bf16.mxu0 %v4102_v31 }
 0xb0f   : > { %3857 = vmatpush3.bf16.msra.mxu1 %v4107_v51 }
 0xb10   : > { %2437 = vadd.xlane.f32.xlu1 %v2436_v22  ;;  %3858 = vmatprep.subr.bf16.mxu1 %v4108_v2 }
 0xb11   : > { %3839 = vmatpush3.bf16.msra.mxu0 %v4102_v31 }
 0xb12   : > { %3840 = vmatprep.subr.bf16.mxu0 %v4103_v30 }
 0xb13   : > { %3859 = vmatpush3.bf16.msra.mxu1 %v4108_v2 }
 0xb14   : > { %3860 = vmatprep.subr.bf16.mxu1 %v4109_v3 }
 0xb15   : > { %3841 = vmatpush3.bf16.msra.mxu0 %v4103_v30 }
 0xb16   : > { %3842 = vmatprep.subr.bf16.mxu0 %v4104_v28 }
 0xb17   : > { %3861 = vmatpush3.bf16.msra.mxu1 %v4109_v3 }
 0xb18   : > { %3862 = vmatprep.subr.bf16.mxu1 %v4110_v39 }
 0xb19   : > { %3843 = vmatpush3.bf16.msra.mxu0 %v4104_v28 }
 0xb1b   : > { %3863 = vmatpush3.bf16.msra.mxu1 %v4110_v39 }
 0xb9a   : > { %v2413_v57 = vpop.xlane.xlu0 %2412 }
 0xb9b   : > { %v2414_v43 = vrot.slane %v2413_v57, 4 }
 0xb9d   : > { %v2415_v13 = vadd.f32 %v2414_v43, %v2413_v57  ;;  %v2438_v23 = vpop.xlane.xlu1 %2437 }
 0xb9e   : > { %v2439_v58 = vrot.slane %v2438_v23, 4 }
 0xb9f   : > { %v2416_v29 = vrot.slane %v2415_v13, 2 }
 0xba0   : > { %v2440_v47 = vadd.f32 %v2439_v58, %v2438_v23 }
 0xba1   : > { %v2417_v36 = vadd.f32 %v2416_v29, %v2415_v13 }
 0xba2   : > { %v2441_v52 = vrot.slane %v2440_v47, 2 }
 0xba3   : > { %v2418_v60 = vrot.slane %v2417_v36, 1 }
 0xba4   : > { %v2442_v24 = vadd.f32 %v2441_v52, %v2440_v47 }
 0xba5   : > { %v2419_v27 = vadd.f32 %v2418_v60, %v2417_v36  ;;  %v4111_v60 = vld [vmem:[#allocation6 + $0x1b0] sm:$0xff]  }
 0xba6   : > { %v2443_v38 = vrot.slane %v2442_v24, 1  ;;  %3864 = vmatprep.subr.bf16.mxu1 %v4111_v60 }
 0xba7   : > { %3946 = vpush %v2419_v27  ;;  %3865 = vmatpush3.bf16.msra.mxu1 %v4111_v60  ;;  %v3534_v27 = vld [vmem:[%s5533_s11 + $0x2] ss:$0 sm:$0xff] }
 0xba8   : > { %v2444_v5 = vadd.f32 %v2443_v38, %v2442_v24  ;;  %v4112_v24 = vld [vmem:[#allocation6 + $0x1b8] sm:$0xff]  }
 0xba9   : > { %3866 = vmatprep.subr.bf16.mxu1 %v4112_v24 }
 0xbaa   : > { %3948 = vpush %v2444_v5 }
 0xbab   : > { %3867 = vmatpush3.bf16.msra.mxu1 %v4112_v24 }
 0xbd8   : > { %s3947_s21 = spop %3946 }
 0xbd9   : > { %s2421_s25 = smul.f32 0.00048828125, %s3947_s21 }
 0xbdb   : > { %s2447_s20 = smul.f32 %s2421_s25, %s2421_s25  ;;  %s3949_s14 = spop %3948  ;;  %v2451_v15 = vstv %s2421_s25 }
 0xbdc   : > { %s2446_s13 = smul.f32 0.00048828125, %s3949_s14  ;;  %v2454_v12 = vsub.f32 %v5210_v61, %v2451_v15  ;;  %v2455_v34 = vsub.f32 %v5218_v50, %v2451_v15  ;;  %v2452_v46 = vsub.f32 %v5206_v55, %v2451_v15  ;;  %v2453_v56 = vsub.f32 %v5208_v45, %v2451_v15  ;;  %v3532_v55 = vld [vmem:[%s5532_s16 + $0x2] ss:$0 sm:$0xff] }
 0xbdd   : > { %v2456_v53 = vsub.f32 %v5223_v32, %v2451_v15  ;;  %v2457_v17 = vsub.f32 %v5228_v18, %v2451_v15  ;;  %v2458_v4 = vsub.f32 %v5233_v8, %v2451_v15  ;;  %v2459_v7 = vsub.f32 %v5238_v16, %v2451_v15 }
 0xbde   : > { %s2448_s10 = ssub.f32 %s2446_s13, %s2447_s20  ;;  %v2466_v40 = vmul.f32 %v3530_v1, %v2452_v46  ;;  %v2467_v44 = vmul.f32 %v3530_v1, %v2453_v56  ;;  %v2468_v61 = vmul.f32 %v3530_v1, %v2454_v12  ;;  %v2469_v62 = vmul.f32 %v3530_v1, %v2455_v34  ;;  %s3543_s13 = sld [smem:[#allocation9 + $0x180]] }
 0xbdf   : > { %v2470_v45 = vmul.f32 %v3530_v1, %v2456_v53  ;;  %v2471_v21 = vmul.f32 %v3530_v1, %v2457_v17  ;;  %v2472_v13 = vmul.f32 %v3530_v1, %v2458_v4  ;;  %v2473_v23 = vmul.f32 %v3530_v1, %v2459_v7 }
 0xbe0   : > { %s2474_s12 = sadd.f32 1e-05, %s2448_s10 }
 0xbe2   : > { %v2475_v9 = vstv %s2474_s12 }
 0xbe3   : > { %4131 = vrsqrt.f32 %v2475_v9 }
 0xbed   : > { %v4132_v37 = vpop.eup %4131 }
 0xbee   : > { %3950 = vpush %v4132_v37 }
 0xc1f   : > { %s3951_s30 = spop %3950 }
 0xc20   : > { %v2478_v50 = vstv %s3951_s30 }
 0xc21   : > { %v2479_v22 = vmul.f32 %v2478_v50, %v2466_v40  ;;  %v2480_v32 = vmul.f32 %v2478_v50, %v2467_v44  ;;  %v2481_v48 = vmul.f32 %v2478_v50, %v2468_v61  ;;  %v2482_v18 = vmul.f32 %v2478_v50, %v2469_v62 }
 0xc22   : > { %v2483_v25 = vmul.f32 %v2478_v50, %v2470_v45  ;;  %v2484_v8 = vmul.f32 %v2478_v50, %v2471_v21  ;;  %v2485_v47 = vmul.f32 %v2478_v50, %v2472_v13  ;;  %v2486_v30 = vmul.f32 %v2478_v50, %v2473_v23 }
 0xc23   : > { %v2495_v26 = vadd.f32 %v3532_v55, %v2479_v22  ;;  %v2496_v41 = vadd.f32 %v3532_v55, %v2480_v32  ;;  %v2497_v42 = vadd.f32 %v3532_v55, %v2481_v48  ;;  %v2498_v31 = vadd.f32 %v3532_v55, %v2482_v18 }
 0xc24   : > { %v2499_v57 = vadd.f32 %v3532_v55, %v2483_v25  ;;  %v2500_v43 = vadd.f32 %v3532_v55, %v2484_v8  ;;  %v2501_v28 = vadd.f32 %v3532_v55, %v2485_v47  ;;  %v2502_v36 = vadd.f32 %v3532_v55, %v2486_v30 }
 0xc25   : > { %v2503_v58 = vpack.c.bf16 %v2496_v41, %v2495_v26  ;;  %v2504_v29 = vpack.c.bf16 %v2498_v31, %v2497_v42 }
 0xc26   : > { %v2505_v16 = vpack.c.bf16 %v2500_v43, %v2499_v57  ;;  %v2506_v52 = vpack.c.bf16 %v2502_v36, %v2501_v28 }
 0xc27   : > { %3844 = vmatprep.mubr.bf16.mxu0 %v2503_v58 }
 0xc28   : > { %3845 = vmatmul.mubr.bf16.vlgmr.msra.gmra.mrb[20].mxu0 %v2504_v29 }
 0xc29   : > { %3848 = vmatprep.mubr.bf16.mxu0 %v2505_v16 }
 0xc30   : > { %3849 = vmatmul.mubr.bf16.gmra.mrb[24].mxu0 %v2506_v52 }
 0xcfb   : > { %v3846_v38 = vpop.f32.mrb[20].mxu0 }
 0xcfc   : > { %v2614_v5 = vpop.f32.mrb[21].mxu0  ;;  %v2623_v51 = vadd.f32 %v3846_v38, %v3534_v27 }
 0xcfd   : > { %v2615_v6 = vadd.f32 %v3534_v27, %v2614_v5  ;;  %v3847_v59 = vpop.f32.mrb[22].mxu0 }
 0xcfe   : > { %v2626_v2 = vadd.f32 %v3847_v59, %v3534_v27  ;;  %v2617_v3 = vpop.f32.mrb[23].mxu0  ;;  %v5273_v12 = vadd.f32 %v2623_v51, %v5072_v49 }
 0xcff   : > { %v2618_v39 = vadd.f32 %v3534_v27, %v2617_v3  ;;  %v5267_v37 = vadd.f32 %v2615_v6, %v5066_v11 }
 0xd00   : > { %v5264_v9 = vadd.f32 %v2626_v2, %v5063_v10 }
 0xd01   : > { %v5270_v15 = vadd.f32 %v2618_v39, %v5069_v19 }
 0xd02   : > { %v2673_v56 = vpack.c.bf16 %v5264_v9, %v5273_v12 }
 0xd03   : > { %v3850_v34 = vpop.f32.mrb[24].mxu0  ;;  %v2672_v46 = vpack.c.bf16 %v5270_v15, %v5267_v37 }
 0xd04   : > { %v2630_v1 = vpop.f32.mrb[25].mxu0  ;;  %v2639_v17 = vadd.f32 %v3850_v34, %v3534_v27 }
 0xd05   : > { %v2631_v53 = vadd.f32 %v3534_v27, %v2630_v1  ;;  %v3851_v10 = vpop.f32.mrb[26].mxu0  ;;  %3868 = vmatprep.mubr.bf16.mxu1 %v2672_v46 }
 0xd06   : > { %v2642_v11 = vadd.f32 %v3851_v10, %v3534_v27  ;;  %v2633_v4 = vpop.f32.mrb[27].mxu0  ;;  %3869 = vmatmul.mubr.bf16.vlgmr.msra.gmra.mrb[24].mxu1 %v2673_v56  ;;  %v5289_v61 = vadd.f32 %v2639_v17, %v5088_v54 }
 0xd07   : > { %v2634_v19 = vadd.f32 %v3534_v27, %v2633_v4  ;;  %v5283_v49 = vadd.f32 %v2631_v53, %v5082_v20 }
 0xd08   : > { %v5280_v40 = vadd.f32 %v2642_v11, %v5079_v35  ;;  %v3546_v35 = vld [vmem:[%s5490_s3 + $0x3] ss:$0 sm:$0xff] }
 0xd09   : > { %v5286_v44 = vadd.f32 %v2634_v19, %v5085_v14  ;;  %v2805_v14 = vstv %s3543_s13 }
 0xd0a   : > { %v2675_v50 = vpack.c.bf16 %v5280_v40, %v5289_v61 }
 0xd0b   : > { %v2674_v62 = vpack.c.bf16 %v5286_v44, %v5283_v49 }
 0xd0d   : > { %3872 = vmatprep.mubr.bf16.mxu1 %v2674_v62 }
 0xd0e   : > { %3873 = vmatmul.mubr.bf16.gmra.mrb[28].mxu1 %v2675_v50 }
 0xdd9   : > { %v3870_v20 = vpop.f32.mrb[24].mxu1 }
 0xdda   : > { %v2775_v55 = vadd.f32 %v3870_v20, %v3546_v35  ;;  %v2766_v45 = vpop.f32.mrb[25].mxu1 }
 0xddb   : > { %v2767_v21 = vadd.f32 %v3546_v35, %v2766_v45  ;;  %v3871_v54 = vpop.f32.mrb[26].mxu1 }
 0xddc   : > { %v2778_v7 = vadd.f32 %v3871_v54, %v3546_v35  ;;  %v2769_v22 = vpop.f32.mrb[27].mxu1  ;;  %v2808_v32 = vmul.f32 %v2805_v14, %v2775_v55  ;;  %vm2799_vm13 = vcmp.gt.f32.partialorder %v2775_v55, 0.0 }
 0xddd   : > { %vm2797_vm12 = vcmp.gt.f32.partialorder %v2767_v21, 0.0  ;;  %v2806_v48 = vmul.f32 %v2805_v14, %v2767_v21  ;;  %v2770_v18 = vadd.f32 %v3546_v35, %v2769_v22 }
 0xdde   : > { %v2809_v26 = vmul.f32 %v2805_v14, %v2778_v7  ;;  %v5300_v41 = vsel %vm2799_vm13, %v2775_v55, %v2808_v32  ;;  %vm2800_vm15 = vcmp.gt.f32.partialorder %v2778_v7, 0.0 }
 0xddf   : > { %v5298_v25 = vsel %vm2797_vm12, %v2767_v21, %v2806_v48  ;;  %vm2798_vm14 = vcmp.gt.f32.partialorder %v2770_v18, 0.0  ;;  %v2807_v8 = vmul.f32 %v2805_v14, %v2770_v18  ;;  %v2841_v30 = vmul.f32 %v5300_v41, %v5300_v41 }
 0xde0   : > { %v2839_v57 = vmul.f32 %v5298_v25, %v5298_v25  ;;  %v5312_v16 = vsel %vm2800_vm15, %v2778_v7, %v2809_v26 }
 0xde1   : > { %v5302_v42 = vsel %vm2798_vm14, %v2770_v18, %v2807_v8  ;;  %v3874_v31 = vpop.f32.mrb[28].mxu1  ;;  %v2842_v59 = vmul.f32 %v5312_v16, %v5312_v16 }
 0xde2   : > { %v2822_v43 = vadd.f32 %v5302_v42, %v5298_v25  ;;  %v2840_v13 = vmul.f32 %v5302_v42, %v5302_v42  ;;  %v2791_v23 = vadd.f32 %v3874_v31, %v3546_v35  ;;  %v2782_v58 = vpop.f32.mrb[29].mxu1 }
 0xde3   : > { %v2783_v29 = vadd.f32 %v3546_v35, %v2782_v58  ;;  %v3875_v47 = vpop.f32.mrb[30].mxu1  ;;  %v3559_v58 = vld [vmem:[%s5491_s4 + $0xc] sm:$0x7] }
 0xde4   : > { %v2823_v28 = vadd.f32 %v2822_v43, %v5300_v41  ;;  %v2847_v36 = vadd.f32 %v2840_v13, %v2839_v57  ;;  %v2785_v52 = vpop.f32.mrb[31].mxu1  ;;  %v2794_v24 = vadd.f32 %v3875_v47, %v3546_v35  ;;  %v2812_v5 = vmul.f32 %v2805_v14, %v2791_v23 }
 0xde5   : > { %vm2801_vm0 = vcmp.gt.f32.partialorder %v2783_v29, 0.0  ;;  %v2810_v60 = vmul.f32 %v2805_v14, %v2783_v29  ;;  %v2786_v27 = vadd.f32 %v3546_v35, %v2785_v52  ;;  %vm2803_vm1 = vcmp.gt.f32.partialorder %v2791_v23, 0.0 }
 0xde6   : > { %v2848_v38 = vadd.f32 %v2847_v36, %v2841_v30  ;;  %v2824_v6 = vadd.f32 %v2823_v28, %v5312_v16  ;;  %v2813_v39 = vmul.f32 %v2805_v14, %v2794_v24  ;;  %vm2804_vm3 = vcmp.gt.f32.partialorder %v2794_v24, 0.0 }
 0xde7   : > { %v5318_v51 = vsel %vm2801_vm0, %v2783_v29, %v2810_v60  ;;  %vm2802_vm2 = vcmp.gt.f32.partialorder %v2786_v27, 0.0  ;;  %v2811_v34 = vmul.f32 %v2805_v14, %v2786_v27  ;;  %v5323_v56 = vsel %vm2803_vm1, %v2791_v23, %v2812_v5 }
 0xde8   : > { %v2825_v2 = vadd.f32 %v2824_v6, %v5318_v51  ;;  %v2843_v3 = vmul.f32 %v5318_v51, %v5318_v51  ;;  %v2849_v46 = vadd.f32 %v2848_v38, %v2842_v59  ;;  %v2821_v11 = vsel %vm2804_vm3, %v2794_v24, %v2813_v39  ;;  %v3556_v24 = vld [vmem:[%s5495_s8 + $0x3] ss:$0 sm:$0xff] }
 0xde9   : > { %v5325_v1 = vsel %vm2802_vm2, %v2786_v27, %v2811_v34  ;;  %v2845_v19 = vmul.f32 %v5323_v56, %v5323_v56  ;;  %v2846_v35 = vmul.f32 %v2821_v11, %v2821_v11  ;;  %v2957_v47 = vrot.slane %v3559_v58, %v4628_v33 }
 0xdea   : > { %v2844_v53 = vmul.f32 %v5325_v1, %v5325_v1  ;;  %v2826_v10 = vadd.f32 %v2825_v2, %v5325_v1  ;;  %v2850_v17 = vadd.f32 %v2849_v46, %v2843_v3  ;;  %v5346_v27 = vrot.slane %v3559_v58, %v4689_v63  ;;  %v3558_v46 = vld [vmem:[%s5496_s9 + $0x3] ss:$0 sm:$0xff] }
 0xdec   : > { %v2827_v4 = vadd.f32 %v2826_v10, %v5323_v56  ;;  %v2851_v62 = vadd.f32 %v2850_v17, %v2844_v53 }
 0xdee   : > { %v2828_v50 = vadd.f32 %v2827_v4, %v2821_v11  ;;  %v2852_v20 = vadd.f32 %v2851_v62, %v2845_v19 }
 0xdf0   : > { %2829 = vadd.xlane.f32.xlu0 %v2828_v50  ;;  %v2853_v55 = vadd.f32 %v2852_v20, %v2846_v35 }
 0xdf2   : > { %2854 = vadd.xlane.f32.xlu1 %v2853_v55 }
 0xe7d   : > { %v2830_v14 = vpop.xlane.xlu0 %2829 }
 0xe7e   : > { %v2831_v45 = vrot.slane %v2830_v14, 4 }
 0xe7f   : > { %v2855_v21 = vpop.xlane.xlu1 %2854 }
 0xe80   : > { %v2832_v54 = vadd.f32 %v2831_v45, %v2830_v14  ;;  %v2856_v7 = vrot.slane %v2855_v21, 4 }
 0xe82   : > { %v2833_v22 = vrot.slane %v2832_v54, 2  ;;  %v2857_v32 = vadd.f32 %v2856_v7, %v2855_v21 }
 0xe84   : > { %v2858_v48 = vrot.slane %v2857_v32, 2  ;;  %v2834_v18 = vadd.f32 %v2833_v22, %v2832_v54 }
 0xe86   : > { %v2835_v8 = vrot.slane %v2834_v18, 1  ;;  %v2859_v26 = vadd.f32 %v2858_v48, %v2857_v32 }
 0xe88   : > { %v2836_v31 = vadd.f32 %v2835_v8, %v2834_v18  ;;  %v2860_v57 = vrot.slane %v2859_v26, 1 }
 0xe8a   : > { %3952 = vpush %v2836_v31  ;;  %v2861_v43 = vadd.f32 %v2860_v57, %v2859_v26 }
 0xe8c   : > { %3954 = vpush %v2861_v43 }
 0xebb   : > { %s3953_s22 = spop %3952 }
 0xebc   : > { %s2838_s18 = smul.f32 0.00048828125, %s3953_s22 }
 0xebd   : > { %s3955_s30 = spop %3954 }
 0xebe   : > { %s2864_s21 = smul.f32 %s2838_s18, %s2838_s18  ;;  %v2868_v29 = vstv %s2838_s18 }
 0xebf   : > { %s2863_s25 = smul.f32 0.00048828125, %s3955_s30  ;;  %v2869_v30 = vsub.f32 %v5298_v25, %v2868_v29  ;;  %v2870_v28 = vsub.f32 %v5302_v42, %v2868_v29  ;;  %v2871_v36 = vsub.f32 %v5300_v41, %v2868_v29  ;;  %v2872_v52 = vsub.f32 %v5312_v16, %v2868_v29 }
 0xec0   : > { %v2873_v60 = vsub.f32 %v5318_v51, %v2868_v29  ;;  %v2874_v38 = vsub.f32 %v5325_v1, %v2868_v29  ;;  %v2875_v33 = vsub.f32 %v5323_v56, %v2868_v29  ;;  %v2876_v25 = vsub.f32 %v2821_v11, %v2868_v29 }
 0xec1   : > { %s2865_s20 = ssub.f32 %s2863_s25, %s2864_s21  ;;  %v2969_v42 = vrot.slane %v3559_v58, %v4683_v0  ;;  %v2883_v5 = vmul.f32 %v3556_v24, %v2869_v30  ;;  %v2958_v41 = vmul.f32 0.0, %v2957_v47  ;;  %v5352_v16 = vmul.f32 0.0, %v5346_v27  ;;  %s5359_s25 = sld [smem:[#allocation9 + $0x181]] }
 0xec2   : > { %v2884_v6 = vmul.f32 %v3556_v24, %v2870_v28  ;;  %v2885_v59 = vmul.f32 %v3556_v24, %v2871_v36  ;;  %v2886_v51 = vmul.f32 %v3556_v24, %v2872_v52  ;;  %v2887_v2 = vmul.f32 %v3556_v24, %v2873_v60 }
 0xec3   : > { %s2891_s14 = sadd.f32 1e-05, %s2865_s20  ;;  %v2888_v3 = vmul.f32 %v3556_v24, %v2874_v38  ;;  %v2889_v63 = vmul.f32 %v3556_v24, %v2875_v33  ;;  %v2890_v39 = vmul.f32 %v3556_v24, %v2876_v25 }
 0xec5   : > { %v2892_v13 = vstv %s2891_s14 }
 0xec6   : > { %4133 = vrsqrt.f32 %v2892_v13 }
 0xed0   : > { %v4134_v23 = vpop.eup %4133 }
 0xed1   : > { %3956 = vpush %v4134_v23 }
 0xf02   : > { %s3957_s18 = spop %3956 }
 0xf03   : > { %v2895_v34 = vstv %s3957_s18 }
 0xf04   : > { %v2896_v56 = vmul.f32 %v2895_v34, %v2883_v5  ;;  %v2897_v0 = vmul.f32 %v2895_v34, %v2884_v6  ;;  %v2898_v1 = vmul.f32 %v2895_v34, %v2885_v59  ;;  %v2899_v53 = vmul.f32 %v2895_v34, %v2886_v51 }
 0xf05   : > { %v2900_v10 = vmul.f32 %v2895_v34, %v2887_v2  ;;  %v2901_v17 = vmul.f32 %v2895_v34, %v2888_v3  ;;  %v2902_v11 = vmul.f32 %v2895_v34, %v2889_v63  ;;  %v2903_v4 = vmul.f32 %v2895_v34, %v2890_v39 }
 0xf06   : > { %v2912_v19 = vadd.f32 %v3558_v46, %v2896_v56  ;;  %v2913_v62 = vadd.f32 %v3558_v46, %v2897_v0  ;;  %v2914_v50 = vadd.f32 %v3558_v46, %v2898_v1  ;;  %v2915_v35 = vadd.f32 %v3558_v46, %v2899_v53 }
 0xf07   : > { %v2916_v20 = vadd.f32 %v3558_v46, %v2900_v10  ;;  %v2917_v55 = vadd.f32 %v3558_v46, %v2901_v17  ;;  %v2918_v14 = vadd.f32 %v3558_v46, %v2902_v11  ;;  %v2919_v45 = vadd.f32 %v3558_v46, %v2903_v4 }
 0xf08   : > { %v2959_v21 = vmul.f32 %v2957_v47, %v2912_v19  ;;  %v2960_v54 = vmul.f32 %v2957_v47, %v2913_v62  ;;  %v2970_v7 = vmul.f32 %v2969_v42, %v2912_v19  ;;  %v2971_v22 = vmul.f32 %v2969_v42, %v2913_v62 }
 0xf09   : > { %v2972_v32 = vmul.f32 %v2969_v42, %v2914_v50  ;;  %v2990_v48 = vmul.f32 %v5346_v27, %v2913_v62  ;;  %v2991_v18 = vmul.f32 %v5346_v27, %v2914_v50  ;;  %v2961_v8 = vmul.f32 %v2957_v47, %v2914_v50 }
 0xf0a   : > { %v2978_v26 = vadd.f32 %v2970_v7, %v2958_v41  ;;  %v2979_v31 = vadd.f32 %v2971_v22, %v2959_v21  ;;  %v2962_v57 = vmul.f32 %v2957_v47, %v2915_v35  ;;  %v2963_v43 = vmul.f32 %v2957_v47, %v2916_v20 }
 0xf0b   : > { %v2964_v13 = vmul.f32 %v2957_v47, %v2917_v55  ;;  %v2965_v23 = vmul.f32 %v2957_v47, %v2918_v14  ;;  %v2973_v58 = vmul.f32 %v2969_v42, %v2915_v35  ;;  %v2974_v29 = vmul.f32 %v2969_v42, %v2916_v20  ;;  %v3561_v47 = vld [vmem:[%s5492_s5 + $0x3] ss:$0 sm:$0xff] }
 0xf0c   : > { %v2975_v30 = vmul.f32 %v2969_v42, %v2917_v55  ;;  %v2976_v28 = vmul.f32 %v2969_v42, %v2918_v14  ;;  %v2977_v36 = vmul.f32 %v2969_v42, %v2919_v45  ;;  %v2980_v52 = vadd.f32 %v2972_v32, %v2960_v54 }
 0xf0d   : > { %v2981_v60 = vadd.f32 %v2973_v58, %v2961_v8  ;;  %v2982_v24 = vadd.f32 %v2974_v29, %v2962_v57  ;;  %v2992_v38 = vmul.f32 %v5346_v27, %v2915_v35  ;;  %v2993_v33 = vmul.f32 %v5346_v27, %v2916_v20 }
 0xf0e   : > { %v2983_v25 = vadd.f32 %v2975_v30, %v2963_v43  ;;  %v2984_v5 = vadd.f32 %v2976_v28, %v2964_v13  ;;  %v2985_v41 = vadd.f32 %v2977_v36, %v2965_v23  ;;  %v2994_v6 = vmul.f32 %v5346_v27, %v2917_v55 }
 0xf0f   : > { %v2995_v59 = vmul.f32 %v5346_v27, %v2918_v14  ;;  %v2996_v42 = vmul.f32 %v5346_v27, %v2919_v45  ;;  %v2998_v51 = vadd.f32 %v2990_v48, %v2978_v26  ;;  %v2999_v2 = vadd.f32 %v2991_v18, %v2979_v31 }
 0xf10   : > { %v3000_v3 = vadd.f32 %v2992_v38, %v2980_v52  ;;  %v3001_v63 = vadd.f32 %v2993_v33, %v2981_v60  ;;  %v3002_v39 = vadd.f32 %v2994_v6, %v2982_v24  ;;  %v3005_v34 = vadd.f32 %v5352_v16, %v2985_v41 }
 0xf11   : > { %v3003_v46 = vadd.f32 %v2995_v59, %v2983_v25  ;;  %v3004_v56 = vadd.f32 %v2996_v42, %v2984_v5  ;;  %v3014_v0 = vadd.f32 %v3561_v47, %v2998_v51  ;;  %v3015_v1 = vadd.f32 %v3561_v47, %v2999_v2  ;;  %v4113_v42 = vld [vmem:[#allocation8 + $0xc0] sm:$0xff]   ;;  %v4114_v51 = vld [vmem:[#allocation8 + $0xc8] sm:$0xff]   ;;  %v4115_v2 = vld [vmem:[#allocation8 + $0xd0] sm:$0xff]  }
 0xf12   : > { %v3016_v53 = vadd.f32 %v3561_v47, %v3000_v3  ;;  %v3030_v10 = vstv %s5359_s25  ;;  %v3017_v17 = vadd.f32 %v3561_v47, %v3001_v63  ;;  %v3018_v11 = vadd.f32 %v3561_v47, %v3002_v39  ;;  %3876 = vmatprep.subr.bf16.mxu0 %v4113_v42  ;;  %3900 = vmatprep.subr.bf16.mxu1 %v4113_v42  ;;  %v4116_v3 = vld [vmem:[#allocation8 + $0xd8] sm:$0xff]   ;;  %v4117_v63 = vld [vmem:[#allocation8 + $0xe0] sm:$0xff]   ;;  %v4118_v39 = vld [vmem:[#allocation8 + $0xe8] sm:$0xff]   ;;  %s5534_s25 = sld [smem:[#allocation21_spill]] }
 0xf13   : > { %vm3022_vm4 = vcmp.gt.f32.partialorder %v3014_v0, 0.0  ;;  %vm3023_vm5 = vcmp.gt.f32.partialorder %v3015_v1, 0.0  ;;  %v3031_v4 = vmul.f32 %v3030_v10, %v3014_v0  ;;  %v3032_v19 = vmul.f32 %v3030_v10, %v3015_v1  ;;  %3877 = vmatpush3.bf16.msra.mxu0 %v4113_v42  ;;  %3908 = vmatpush3.bf16.msra.mxu1 %v4113_v42 }
 0xf14   : > { %vm3024_vm6 = vcmp.gt.f32.partialorder %v3016_v53, 0.0  ;;  %v3033_v27 = vmul.f32 %v3030_v10, %v3016_v53  ;;  %v3019_v62 = vadd.f32 %v3561_v47, %v3003_v46  ;;  %v3034_v50 = vmul.f32 %v3030_v10, %v3017_v17  ;;  %3878 = vmatprep.subr.bf16.mxu0 %v4114_v51  ;;  %3901 = vmatprep.subr.bf16.mxu1 %v4114_v51 }
 0xf15   : > { %v5371_v35 = vsel %vm3022_vm4, %v3014_v0, %v3031_v4  ;;  %v5373_v20 = vsel %vm3023_vm5, %v3015_v1, %v3032_v19  ;;  %v3020_v16 = vadd.f32 %v3561_v47, %v3004_v56  ;;  %vm3025_vm7 = vcmp.gt.f32.partialorder %v3017_v17, 0.0  ;;  %v4120_v4 = vld [vmem:[#allocation8 + $0xf8] sm:$0xff]  }
 0xf16   : > { %v3035_v55 = vmul.f32 %v3030_v10, %v3018_v11  ;;  %v5375_v14 = vsel %vm3024_vm6, %v3016_v53, %v3033_v27  ;;  %v3047_v45 = vadd.f32 %v5373_v20, %v5371_v35  ;;  %v3064_v21 = vmul.f32 %v5371_v35, %v5371_v35 }
 0xf17   : > { %vm3026_vm8 = vcmp.gt.f32.partialorder %v3018_v11, 0.0  ;;  %v3065_v54 = vmul.f32 %v5373_v20, %v5373_v20  ;;  %v3021_v7 = vadd.f32 %v3561_v47, %v3005_v34  ;;  %v3036_v22 = vmul.f32 %v3030_v10, %v3019_v62  ;;  %3879 = vmatpush3.bf16.msra.mxu0 %v4114_v51  ;;  %3909 = vmatpush3.bf16.msra.mxu1 %v4114_v51 }
 0xf18   : > { %v5383_v32 = vsel %vm3025_vm7, %v3017_v17, %v3034_v50  ;;  %v3048_v48 = vadd.f32 %v3047_v45, %v5375_v14  ;;  %vm3027_vm9 = vcmp.gt.f32.partialorder %v3019_v62, 0.0  ;;  %v3066_v18 = vmul.f32 %v5375_v14, %v5375_v14  ;;  %3880 = vmatprep.subr.bf16.mxu0 %v4115_v2  ;;  %3902 = vmatprep.subr.bf16.mxu1 %v4115_v2  ;;  %s5535_s20 = smov %s5534_s25 }
 0xf19   : > { %v3072_v8 = vadd.f32 %v3065_v54, %v3064_v21  ;;  %v3037_v26 = vmul.f32 %v3030_v10, %v3020_v16  ;;  %v5388_v31 = vsel %vm3026_vm8, %v3018_v11, %v3035_v55  ;;  %vm3028_vm10 = vcmp.gt.f32.partialorder %v3020_v16, 0.0 }
 0xf1a   : > { %v3049_v57 = vadd.f32 %v3048_v48, %v5383_v32  ;;  %v3067_v43 = vmul.f32 %v5383_v32, %v5383_v32  ;;  %v3038_v23 = vmul.f32 %v3030_v10, %v3021_v7  ;;  %v5393_v58 = vsel %vm3027_vm9, %v3019_v62, %v3036_v22  ;;  %v4119_v10 = vld [vmem:[#allocation8 + $0xf0] sm:$0xff]  }
 0xf1b   : > { %v3073_v13 = vadd.f32 %v3072_v8, %v3066_v18  ;;  %vm3029_vm11 = vcmp.gt.f32.partialorder %v3021_v7, 0.0  ;;  %v3068_v30 = vmul.f32 %v5388_v31, %v5388_v31  ;;  %v5398_v36 = vsel %vm3028_vm10, %v3020_v16, %v3037_v26  ;;  %3881 = vmatpush3.bf16.msra.mxu0 %v4115_v2  ;;  %3910 = vmatpush3.bf16.msra.mxu1 %v4115_v2  ;;  %v3563_v8 = vld [vmem:[%s5531_s23 + $0x3] ss:$0 sm:$0xff] }
 0xf1c   : > { %v3050_v29 = vadd.f32 %v3049_v57, %v5388_v31  ;;  %v3069_v60 = vmul.f32 %v5393_v58, %v5393_v58  ;;  %v5403_v38 = vsel %vm3029_vm11, %v3021_v7, %v3038_v23  ;;  %v3070_v25 = vmul.f32 %v5398_v36, %v5398_v36  ;;  %3882 = vmatprep.subr.bf16.mxu0 %v4116_v3 }
 0xf1d   : > { %v3074_v28 = vadd.f32 %v3073_v13, %v3067_v43  ;;  %v3071_v6 = vmul.f32 %v5403_v38, %v5403_v38  ;;  %3903 = vmatprep.subr.bf16.mxu1 %v4116_v3 }
 0xf1e   : > { %v3051_v52 = vadd.f32 %v3050_v29, %v5393_v58 }
 0xf1f   : > { %v3075_v24 = vadd.f32 %v3074_v28, %v3068_v30  ;;  %3883 = vmatpush3.bf16.msra.mxu0 %v4116_v3  ;;  %3911 = vmatpush3.bf16.msra.mxu1 %v4116_v3 }
 0xf20   : > { %v3052_v33 = vadd.f32 %v3051_v52, %v5398_v36  ;;  %3884 = vmatprep.subr.bf16.mxu0 %v4117_v63  ;;  %3904 = vmatprep.subr.bf16.mxu1 %v4117_v63  ;;  %v3565_v52 = vld [vmem:[%s5532_s16 + $0x3] ss:$0 sm:$0xff] }
 0xf21   : > { %v3076_v5 = vadd.f32 %v3075_v24, %v3069_v60 }
 0xf22   : > { %v3053_v41 = vadd.f32 %v3052_v33, %v5403_v38 }
 0xf23   : > { %v3077_v47 = vadd.f32 %v3076_v5, %v3070_v25  ;;  %3885 = vmatpush3.bf16.msra.mxu0 %v4117_v63  ;;  %3912 = vmatpush3.bf16.msra.mxu1 %v4117_v63 }
 0xf24   : > { %3054 = vadd.xlane.f32.xlu0 %v3053_v41  ;;  %3886 = vmatprep.subr.bf16.mxu0 %v4118_v39 }
 0xf25   : > { %v3078_v59 = vadd.f32 %v3077_v47, %v3071_v6  ;;  %3905 = vmatprep.subr.bf16.mxu1 %v4118_v39 }
 0xf27   : > { %3079 = vadd.xlane.f32.xlu1 %v3078_v59  ;;  %3887 = vmatpush3.bf16.msra.mxu0 %v4118_v39 }
 0xf28   : > { %3913 = vmatpush3.bf16.msra.mxu1 %v4118_v39  ;;  %3888 = vmatprep.subr.bf16.mxu0 %v4119_v10 }
 0xf29   : > { %3906 = vmatprep.subr.bf16.mxu1 %v4119_v10 }
 0xf2b   : > { %3889 = vmatpush3.bf16.msra.mxu0 %v4119_v10 }
 0xf2c   : > { %3914 = vmatpush3.bf16.msra.mxu1 %v4119_v10  ;;  %3890 = vmatprep.subr.bf16.mxu0 %v4120_v4 }
 0xf2d   : > { %3907 = vmatprep.subr.bf16.mxu1 %v4120_v4 }
 0xf2f   : > { %3891 = vmatpush3.bf16.msra.mxu0 %v4120_v4 }
 0xf30   : > { %3915 = vmatpush3.bf16.msra.mxu1 %v4120_v4 }
 0xfb1   : > { %v3055_v34 = vpop.xlane.xlu0 %3054 }
 0xfb2   : > { %v3056_v46 = vrot.slane %v3055_v34, 4 }
 0xfb4   : > { %v3057_v56 = vadd.f32 %v3056_v46, %v3055_v34  ;;  %v3080_v0 = vpop.xlane.xlu1 %3079 }
 0xfb5   : > { %v3081_v1 = vrot.slane %v3080_v0, 4 }
 0xfb6   : > { %v3058_v53 = vrot.slane %v3057_v56, 2 }
 0xfb7   : > { %v3082_v17 = vadd.f32 %v3081_v1, %v3080_v0 }
 0xfb8   : > { %v3059_v11 = vadd.f32 %v3058_v53, %v3057_v56  ;;  %v3567_v56 = vld [vmem:[%s5533_s11 + $0x3] ss:$0 sm:$0xff] }
 0xfb9   : > { %v3083_v19 = vrot.slane %v3082_v17, 2 }
 0xfba   : > { %v3060_v27 = vrot.slane %v3059_v11, 1 }
 0xfbb   : > { %v3084_v62 = vadd.f32 %v3083_v19, %v3082_v17 }
 0xfbc   : > { %v3061_v50 = vadd.f32 %v3060_v27, %v3059_v11 }
 0xfbd   : > { %v3085_v16 = vrot.slane %v3084_v62, 1 }
 0xfbe   : > { %3958 = vpush %v3061_v50 }
 0xfbf   : > { %v3086_v55 = vadd.f32 %v3085_v16, %v3084_v62 }
 0xfc1   : > { %3960 = vpush %v3086_v55 }
 0xfef   : > { %s3959_s13 = spop %3958 }
 0xff0   : > { %s3063_s10 = smul.f32 0.00048828125, %s3959_s13  ;;  %s3304_s13 = scalar_lea.sflag [#allocation4], %s4589_s17 }
 0xff2   : > { %s3089_s12 = smul.f32 %s3063_s10, %s3063_s10  ;;  %s3961_s22 = spop %3960  ;;  %v3093_v54 = vstv %s3063_s10 }
 0xff3   : > { %s3088_s18 = smul.f32 0.00048828125, %s3961_s22  ;;  %v3096_v7 = vsub.f32 %v5375_v14, %v3093_v54  ;;  %v3097_v22 = vsub.f32 %v5383_v32, %v3093_v54  ;;  %v3100_v48 = vsub.f32 %v5398_v36, %v3093_v54  ;;  %v3101_v18 = vsub.f32 %v5403_v38, %v3093_v54 }
 0xff4   : > { %v3094_v26 = vsub.f32 %v5371_v35, %v3093_v54  ;;  %v3095_v57 = vsub.f32 %v5373_v20, %v3093_v54  ;;  %v3098_v43 = vsub.f32 %v5388_v31, %v3093_v54  ;;  %v3099_v13 = vsub.f32 %v5393_v58, %v3093_v54 }
 0xff5   : > { %s3090_s30 = ssub.f32 %s3088_s18, %s3089_s12  ;;  %v3110_v23 = vmul.f32 %v3563_v8, %v3096_v7  ;;  %v3111_v14 = vmul.f32 %v3563_v8, %v3097_v22  ;;  %v3114_v29 = vmul.f32 %v3563_v8, %v3100_v48  ;;  %v3115_v32 = vmul.f32 %v3563_v8, %v3101_v18  ;;  %s3582_s18 = sshll.u32 %s4425_s29, 10 }
 0xff6   : > { %v3108_v30 = vmul.f32 %v3563_v8, %v3094_v26  ;;  %v3109_v36 = vmul.f32 %v3563_v8, %v3095_v57  ;;  %v3112_v60 = vmul.f32 %v3563_v8, %v3098_v43  ;;  %v3113_v35 = vmul.f32 %v3563_v8, %v3099_v13  ;;  %s4331_s12 = smov [#allocation10]  }
 0xff7   : > { %s3116_s21 = sadd.f32 1e-05, %s3090_s30  ;;  %s512_s30 = scalar_lea.vmem [#allocation10], %s3440_s24 }
 0xff8   : > { %s4249_s22 = sshll.u32 %s4331_s12, 4  ;;  %s4250_s22 = int_to_ptr.vmem [resolvable:$false] %s4249_s22 }
 0xff9   : > { %v3117_v45 = vstv %s3116_s21  ;;  %s3317_s21 = sshll.u32 %s512_s30, 4  ;;  %s5442_s21 = int_to_ptr.vmem [resolvable:$true] %s3317_s21 }
 0xffa   : > { %4135 = vrsqrt.f32 %v3117_v45  ;;  %s4245_s10 = scalar_lea.vmem %s5442_s21, 1024  ;;  %p4252_p9 = scmp.lt.s32.totalorder %s5442_s21, %s4250_s22 }
 0xffb   : > { %p4246_p1 = scmp.ne.s32.totalorder %s5442_s21, %s4245_s10 }
 0xffd   : > { %p4247_p0 = pnand %p4246_p1, %p5536_p6 }
 0xfff   : > { %p4248_p5 = pneg %p4247_p0 }
0x1004   : > { %v4136_v21 = vpop.eup %4135 }
0x1005   : > { %3962 = vpush %v4136_v21 }
0x1036   : > { %s3963_s14 = spop %3962 }
0x1037   : > { %v3120_v28 = vstv %s3963_s14  ;;  %s5440_s14 = scalar_lea.hbm %s5534_s25, %s3582_s18  ;;  %s4251_s18 = scalar_lea.vmem %s4250_s22, 2048 }
0x1038   : > { %v3123_v24 = vmul.f32 %v3120_v28, %v3110_v23  ;;  %v3124_v20 = vmul.f32 %v3120_v28, %v3111_v14  ;;  %v3127_v38 = vmul.f32 %v3120_v28, %v3114_v29  ;;  %v3128_v31 = vmul.f32 %v3120_v28, %v3115_v32  ;;  %p4253_p12 = scmp.lt.s32.totalorder %s4251_s18, %s4245_s10 }
0x1039   : > { %v3121_v33 = vmul.f32 %v3120_v28, %v3108_v30  ;;  %v3122_v58 = vmul.f32 %v3120_v28, %v3109_v36  ;;  %v3125_v25 = vmul.f32 %v3120_v28, %v3112_v60  ;;  %v3126_v5 = vmul.f32 %v3120_v28, %v3113_v35 }
0x103a   : > { %v3139_v41 = vadd.f32 %v3565_v52, %v3123_v24  ;;  %v3140_v6 = vadd.f32 %v3565_v52, %v3124_v20  ;;  %v3143_v47 = vadd.f32 %v3565_v52, %v3127_v38  ;;  %v3144_v59 = vadd.f32 %v3565_v52, %v3128_v31  ;;  %p4254_p13 = por %p4253_p12, %p4252_p9 }
0x103b   : > { %v3137_v42 = vadd.f32 %v3565_v52, %v3121_v33  ;;  %v3138_v51 = vadd.f32 %v3565_v52, %v3122_v58  ;;  %v3141_v2 = vadd.f32 %v3565_v52, %v3125_v25  ;;  %v3142_v3 = vadd.f32 %v3565_v52, %v3126_v5 }
0x103c   : > { %v3146_v63 = vpack.c.bf16 %v3140_v6, %v3139_v41  ;;  %v3148_v39 = vpack.c.bf16 %v3144_v59, %v3143_v47  ;;  %p4255_p2 = pnand %p4254_p13, %p4248_p5 }
0x103d   : > { %v3145_v34 = vpack.c.bf16 %v3138_v51, %v3137_v42  ;;  %v3147_v46 = vpack.c.bf16 %v3142_v3, %v3141_v2 }
0x103f   : > { %3892 = vmatprep.mubr.bf16.mxu0 %v3145_v34  ;;  %3896 = vmatprep.mubr.bf16.mxu1 %v3147_v46 }
0x1040   : > { %3893 = vmatmul.mubr.bf16.vlgmr.msra.gmra.mrb[28].mxu0 %v3146_v63  ;;  %3897 = vmatmul.mubr.bf16.vlgmr.msra.gmra.mrb[32].mxu1 %v3148_v39 }
0x1113   : > { %v3894_v0 = vpop.f32.mrb[28].mxu0  ;;  %v3898_v1 = vpop.f32.mrb[32].mxu1 }
0x1114   : > { %v3265_v53 = vadd.f32 %v3894_v0, %v3567_v56  ;;  %v3281_v10 = vadd.f32 %v3898_v1, %v3567_v56  ;;  %v3256_v17 = vpop.f32.mrb[29].mxu0  ;;  %v3272_v11 = vpop.f32.mrb[33].mxu1 }
0x1115   : > { %v3257_v4 = vadd.f32 %v3567_v56, %v3256_v17  ;;  %v3273_v19 = vadd.f32 %v3567_v56, %v3272_v11  ;;  %v3895_v27 = vpop.f32.mrb[30].mxu0  ;;  %v3899_v62 = vpop.f32.mrb[34].mxu1 }
0x1116   : > { %v3289_v50 = vadd.f32 %v3265_v53, %v5273_v12  ;;  %v3293_v16 = vadd.f32 %v3281_v10, %v5289_v61  ;;  %v3268_v55 = vadd.f32 %v3895_v27, %v3567_v56  ;;  %v3284_v45 = vadd.f32 %v3899_v62, %v3567_v56  ;;  %v3259_v21 = vpop.f32.mrb[31].mxu0  ;;  %v3275_v54 = vpop.f32.mrb[35].mxu1 }
0x1117   : > { %v3287_v7 = vadd.f32 %v3257_v4, %v5267_v37  ;;  %v3291_v22 = vadd.f32 %v3273_v19, %v5283_v49  ;;  %v3260_v48 = vadd.f32 %v3567_v56, %v3259_v21  ;;  %v3276_v18 = vadd.f32 %v3567_v56, %v3275_v54 }
0x1118   : > { %3297 = vst [vmem:[%s512_s30 + $0x10] sm:$0xff] %v3289_v50  ;;  %3301 = vst [vmem:[%s512_s30 + $0x30] sm:$0xff] %v3293_v16  ;;  %v3290_v8 = vadd.f32 %v3268_v55, %v5264_v9  ;;  %v3294_v12 = vadd.f32 %v3284_v45, %v5280_v40 }
0x1119   : > { %3295 = vst [vmem:[%s512_s30] sm:$0xff] %v3287_v7  ;;  %3299 = vst [vmem:[%s512_s30 + $0x20] sm:$0xff] %v3291_v22  ;;  %v3288_v37 = vadd.f32 %v3260_v48, %v5270_v15  ;;  %v3292_v49 = vadd.f32 %v3276_v18, %v5286_v44 }
0x111a   : > { %3298 = vst [vmem:[%s512_s30 + $0x18] sm:$0xff] %v3290_v8  ;;  %3302 = vst [vmem:[%s512_s30 + $0x38] sm:$0xff] %v3294_v12 }
0x111b   : > { %3296 = vst [vmem:[%s512_s30 + $0x8] sm:$0xff] %v3288_v37  ;;  %3300 = vst [vmem:[%s512_s30 + $0x28] sm:$0xff] %v3292_v49 }
0x111c   : > { %4258 = shalt.err (!%p4255_p2)
}
0x111d   : > { %s4259_s30 = scalar_lea.hbm %s5440_s14, 1024  ;;  %s4263_s25 = scalar_lea.hbm %s5535_s20, 4096 }
0x111e   : > { %p4260_p4 = scmp.ne.s32.totalorder %s5440_s14, %s4259_s30  ;;  %p4264_p10 = scmp.lt.u32.totalorder %s5440_s14, %s5535_s20 }
0x111f   : > { %p4265_p7 = scmp.lt.u32.totalorder %s4263_s25, %s4259_s30  ;;  %p4267_p1 = scmp.lt.u32.totalorder %s4259_s30, %s5440_s14 }
0x1120   : > { %p4261_p3 = pnand %p4260_p4, %p5536_p6 }
0x1121   : > { %p4266_p11 = por %p4265_p7, %p4264_p10 }
0x1122   : > { %p4262_p8 = pneg %p4261_p3 }
0x1123   : > { %p4268_p0 = por %p4267_p1, %p4266_p11 }
0x1125   : > { %p4269_p5 = pnand %p4268_p0, %p4262_p8 }
0x1127   : > { %4272 = shalt.err (!%p4269_p5)
}
0x1128   : > { %s4332_s10 = smov 128   ;;  %s4333_s18 = smov 8  }
0x1129   : > { %3978 = dma.vmem_to_hbm [thread:$0]  (%p5536_p6), %s5442_s21, 1024, %s5440_s14, %s3304_s13, %s4332_s10, %s4332_s10, %s4333_s18  }
0x112a PF: > { %s5537_s29 = sld [smem:[#allocation15_spill]]  ;;  %s5538_s24 = sld [smem:[#allocation16_spill]] }
0x112b   : > { %p4005_p9 = scmp.ge.s32.totalorder %s4319_s28, 2 }
0x1130   : > { %s3332_s25 = sand.u32 1, %s5537_s29   ;;  %p5539_p12 = scmp.ne.s32.totalorder %s5538_s24, 0 }
0x1131   : > { %s3333_s30 = scalar_lea.sflag [#allocation4], %s3332_s25 }
0x1132   : > { %p3995_p13 = pnand %p4005_p9, %p5539_p12 }
0x1134   : > { %4302 = dma.done.wait (!%p3995_p13), %s3333_s30, 1024  }
0x1135   : > { %4304 = vsyncadd (!%p3995_p13), %s3333_s30, 4294966272  ;;  %p28_p2 = scmp.ge.s32.totalorder %s4527_s7, 6   ;;  %s5540_s25 = smov %s4311_s26 }
0x1136   : > { %s5541_s26 = smov %s4315_s27  ;;  %s5542_s27 = smov %s4537_s19 }
0x1137   : > { %s5543_s28 = smov %s4527_s7  ;;  %30 = sbr.rel (!%p28_p2) target bundleno = 13 (0xd), region = 163 }
0x113e   :  { %3338 = vsyncpa [#allocation3], 1 }
0x113f   :  { %3340 = vsyncpa [#allocation3 + $0x1], 1 }
0x1140   :  { %3341 = vsyncpa [#allocation7], 1 }
0x1141   :  { %3342 = vsyncpa [#allocation4], 1 }
0x1142   :  { %3344 = vsyncpa [#allocation4 + $0x1], 1 }
0x1143   :  { %3345 = vsyncpa [#allocation5], 1 }
0x1144   :  { %3347 = vsyncpa [#allocation5 + $0x1], 1 }

</bundles_post_ra>
